<compile_context>
chip_gen: v5e
topology: v5e:2x2
jax: 0.10.0
libtpu: 0.0.40
codegen_flags: <defaults>
</compile_context>

<pallas_src>
import math

import jax
import jax.numpy as jnp
from jax.experimental import pallas as pl
from jax.experimental.pallas import tpu as pltpu

_FP8_MAX = 448.0                      # finite max of float8_e4m3fn
_LOG2_E = 1.4426950408889634          # exp2 trick: softmax in base-2 domain
_MASK_VALUE = -0.7 * float(jnp.finfo(jnp.float32).max)   # finite; exp2 underflows to 0


# ----------------------------------------------------------------------------
# Pallas flash-attention forward kernel (fused SDPA).
# ----------------------------------------------------------------------------
def _make_flash_kernel(is_causal, tq, tk, score_scale, out_scale,
                       fp8_out_roundtrip, out_dequant, approx_recip):
    """score_scale already contains log2(e); out_scale folds the fp8 dequant
    scales (all compile-time constants, mirroring ScaleFormat.CONST)."""

    def kernel(q_ref, k_ref, v_ref, o_ref, m_sc, l_sc, acc_sc):
        # Hoist ALL grid queries to the top of the body: pl.program_id inside a
        # pl.when / lax.cond branch does not lower (previous crash).
        qi = pl.program_id(1)
        kv = pl.program_id(2)
        last_kv = pl.num_programs(2) - 1

        @pl.when(kv == 0)
        def _init():
            m_sc[...] = jnp.full_like(m_sc, -jnp.inf)
            l_sc[...] = jnp.zeros_like(l_sc)
            acc_sc[...] = jnp.zeros_like(acc_sc)

        def _tile(apply_mask):
            # fp8 (or bf16) operands are widened to bf16 right after the VMEM
            # load: HBM traffic stays fp8-sized, MXU runs bf16 with f32 accum.
            # TODO(synk): on v7x feed fp8 Q/K/V (and an fp8-quantized P)
            # natively to the MXU instead of widening to bf16.
            q = q_ref[0].astype(jnp.bfloat16)          # (tq, D)
            k = k_ref[0].astype(jnp.bfloat16)          # (tk, D)
            v = v_ref[0].astype(jnp.bfloat16)          # (tk, D)

            # Q K^T on the MXU; d_scale_q*d_scale_k, 1/sqrt(d) and log2(e)
            # are folded into one constant (base-2 softmax domain).
            s = jax.lax.dot_general(
                q, k, (((1,), (1,)), ((), ())),
                preferred_element_type=jnp.float32) * score_scale

            if apply_mask:
                q_pos = qi * tq + jax.lax.broadcasted_iota(jnp.int32, (tq, tk), 0)
                k_pos = kv * tk + jax.lax.broadcasted_iota(jnp.int32, (tq, tk), 1)
                s = jnp.where(q_pos >= k_pos, s, _MASK_VALUE)

            # Numerically stable online softmax (base 2), state in f32 scratch.
            m_prev = m_sc[...]
            m_new = jnp.maximum(m_prev, s.max(axis=-1, keepdims=True))
            alpha = jnp.exp2(m_prev - m_new)
            p = jnp.exp2(s - m_new)
            l_sc[...] = alpha * l_sc[...] + jnp.sum(p, axis=-1, keepdims=True)
            pv = jax.lax.dot_general(
                p.astype(v.dtype), v, (((1,), (0,)), ((), ())),
                preferred_element_type=jnp.float32)
            acc_sc[...] = alpha * acc_sc[...] + pv
            m_sc[...] = m_new

        if is_causal:
            q_min = qi * tq
            q_max = qi * tq + (tq - 1)
            k_min = kv * tk
            k_max = kv * tk + (tk - 1)
            below = k_max <= q_min                                   # no mask needed
            straddle = jnp.logical_and(k_min <= q_max, k_max > q_min)  # mask needed
            # Tiles entirely above the diagonal run neither branch (skipped);
            # their K/V DMA is elided by the clamped index_map below.
            pl.when(below)(lambda: _tile(False))
            pl.when(straddle)(lambda: _tile(True))
        else:
            _tile(False)

        @pl.when(kv == last_kv)
        def _finalize():
            inv_l = pl.reciprocal(l_sc[...], approx=approx_recip)   # EUP slot
            out = acc_sc[...] * (inv_l * out_scale)
            if fp8_out_roundtrip:
                # Fused output epilogue: fp8 quantize (clip + cast) and dequant
                # happen in VMEM — no extra [B,H,S,D] HBM round trips.
                out = jnp.clip(out, -_FP8_MAX, _FP8_MAX).astype(jnp.float8_e4m3fn)
                out = out.astype(jnp.float32) * out_dequant
            o_ref[0] = out.astype(o_ref.dtype)

    return kernel


def _pick_tile(size, preferred):
    """Largest tile <= preferred that divides `size` (falls back to full dim)."""
    if size <= preferred:
        return size
    for t in (preferred, 512, 256, 128, 64, 32, 16, 8):
        if t <= size and size % t == 0:
            return t
    return size


def fused_sdpa_pallas(q, k, v, *, sm_scale=None, is_causal=False,
                      score_descale=1.0, out_scale=1.0, out_dequant=1.0,
                      fp8_output_sim=False, out_dtype=None, tq=512, tk=256):
    """Fused SDPA forward (flash attention) as a single pallas_call.

    q, k, v: [B, H, S, D]; dtype may be float8_e4m3fn (streamed as fp8 and
    widened to bf16 inside the kernel) or bf16/f32.  D must be a multiple of
    128 (lane-dense tiles).  All scales are compile-time constants.
    """
    B, H, Sq, D = q.shape
    Sk = k.shape[2]
    assert k.shape == (B, H, Sk, D) and v.shape == (B, H, Sk, D)
    assert D % 128 == 0, "head_dim must be a multiple of 128"
    if sm_scale is None:
        sm_scale = 1.0 / math.sqrt(D)
    if out_dtype is None:
        out_dtype = q.dtype
    tq = _pick_tile(Sq, tq)
    tk = _pick_tile(Sk, tk)
    assert Sq % tq == 0 and Sk % tk == 0

    BH = B * H
    q3 = q.reshape(BH, Sq, D)
    k3 = k.reshape(BH, Sk, D)
    v3 = v.reshape(BH, Sk, D)

    kernel = _make_flash_kernel(
        bool(is_causal), tq, tk,
        float(sm_scale) * float(score_descale) * _LOG2_E,
        float(out_scale), bool(fp8_output_sim), float(out_dequant),
        approx_recip=bool(fp8_output_sim))

    if is_causal:
        # Clamp the kv block index so tiles entirely above the causal diagonal
        # repeat the previous block index -> Pallas elides their K/V DMA.
        def kv_map(b, qi, ki):
            return (b, jnp.minimum(ki, (qi * tq + tq - 1) // tk), 0)
    else:
        def kv_map(b, qi, ki):
            return (b, ki, 0)

    out3 = pl.pallas_call(
        kernel,
        out_shape=jax.ShapeDtypeStruct((BH, Sq, D), out_dtype),
        grid_spec=pltpu.PrefetchScalarGridSpec(
            num_scalar_prefetch=0,
            grid=(BH, Sq // tq, Sk // tk),            # kv (reduction) innermost
            in_specs=[
                pl.BlockSpec((1, tq, D), lambda b, qi, ki: (b, qi, 0)),
                pl.BlockSpec((1, tk, D), kv_map),
                pl.BlockSpec((1, tk, D), kv_map),
            ],
            out_specs=pl.BlockSpec((1, tq, D), lambda b, qi, ki: (b, qi, 0)),
            scratch_shapes=[
                pltpu.VMEM((tq, 1), jnp.float32),     # running max m (base-2)
                pltpu.VMEM((tq, 1), jnp.float32),     # running denom l
                pltpu.VMEM((tq, D), jnp.float32),     # f32 output accumulator
            ],
        ),
        compiler_params=pltpu.CompilerParams(
            dimension_semantics=("parallel", "parallel", "arbitrary"),
            vmem_limit_bytes=48 * 1024 * 1024,        # <=48 MiB: safe on v7x (64 MiB phys)
        ),
    )(q3, k3, v3)
    return out3.reshape(B, H, Sq, D)


# ----------------------------------------------------------------------------
# fp8 quant/dequant helpers mirroring the module's quant_*/dequant_output.
# ----------------------------------------------------------------------------
def _quantize_fp8(x, scale):
    # Single fused pass: divide + clip + cast; output is streamed into the kernel.
    y = jnp.clip(x.astype(jnp.float32) / scale, -_FP8_MAX, _FP8_MAX)
    return y.astype(jnp.float8_e4m3fn)


class _QuantInput:
    def __init__(self, scale): self.scale = float(scale)
    def __call__(self, x): return _quantize_fp8(x, self.scale)


class _DequantOutput:
    # Kept for API parity; the dequant multiply is fused into the kernel epilogue.
    def __init__(self, scale): self.scale = float(scale)
    def __call__(self, x): return x.astype(jnp.float32) * self.scale


# ----------------------------------------------------------------------------
# JAX port of PatchedModuleFusedSDPA (QUANTIZE / MEASURE modes).
# ----------------------------------------------------------------------------
class PatchedModuleFusedSDPA:
    def __init__(self, scale_q, scale_k, scale_v, scale_output,
                 descale_amax=1.0, quantization_mode="QUANTIZE"):
        self.class_name_org = "ModuleFusedSDPA"
        self.quantization_mode = quantization_mode
        # Constant per-tensor scales (ScaleFormat.CONST).
        self.scale_q = float(scale_q)                   # d_scale_q
        self.scale_k = float(scale_k)                   # d_scale_k
        self.scale_v = float(scale_v)                   # d_scale_v
        self.descale_amax = float(descale_amax)         # d_scale_s
        self.scale_amax = 1.0 / self.descale_amax       # q_scale_s
        self.d_scale_o = float(scale_output)            # d_scale_o (dequant)
        self.scale_output = 1.0 / float(scale_output)   # q_scale_o
        self.quant_q = _QuantInput(self.scale_q)
        self.quant_k = _QuantInput(self.scale_k)
        self.quant_v = _QuantInput(self.scale_v)
        self.dequant_output = _DequantOutput(self.d_scale_o)
        self._measurements = {"inputs": [], "outputs": []}
        if quantization_mode in ("MEASURE", "SHAPE"):
            self.forward = self.forward_measure

    def __call__(self, *args, **kwargs):
        return self.forward(*args, **kwargs)

    def forward(self, q, k, v, attn_mask=None, dropout_p=0.0, is_causal=False,
                scale=None, softmax_mode="None", recompute=None,
                valid_seq_len=None, seq_padding_type="None"):
        # TODO(synk): attn_mask / dropout_p / valid_seq_len padding are not
        # implemented in the Pallas kernel (only the default path is).
        assert attn_mask is None and dropout_p == 0.0 and valid_seq_len is None
        # fp8 quantization of Q/K/V (one clip+cast pass each); the fp8 tensors
        # are streamed straight into the Pallas kernel (half the HBM bytes of
        # widening to bf16 outside the kernel).
        qinput = jax.lax.stop_gradient(self.quant_q(q))   # .detach()
        kinput = jax.lax.stop_gradient(self.quant_k(k))
        vinput = jax.lax.stop_gradient(self.quant_v(v))
        D = q.shape[-1]
        sm_scale = scale if scale is not None else 1.0 / math.sqrt(D)
        # Fused (de)quant scales:
        #   scores : d_scale_q * d_scale_k folded into the softmax scale
        #   output : d_scale_v * q_scale_s * d_scale_s * q_scale_o, then the
        #            fp8 round trip + dequant by d_scale_o in the epilogue.
        # TODO(synk): the fp8 round-trip of the probability matrix itself is
        # not simulated (q_scale_s * d_scale_s cancels); P is cast to bf16.
        return fused_sdpa_pallas(
            qinput, kinput, vinput, sm_scale=sm_scale, is_causal=is_causal,
            score_descale=self.scale_q * self.scale_k,
            out_scale=(self.scale_v * self.scale_amax
                       * self.descale_amax * self.scale_output),
            out_dequant=self.d_scale_o,
            fp8_output_sim=True, out_dtype=jnp.float32)

    def forward_measure(self, q, k, v, attn_mask=None, dropout_p=0.0,
                        is_causal=False, scale=None, softmax_mode="fast",
                        recompute=None, valid_seq_len=None,
                        seq_padding_type="None"):
        assert attn_mask is None and dropout_p == 0.0 and valid_seq_len is None
        dq = jax.lax.stop_gradient(q)
        dk = jax.lax.stop_gradient(k)
        dv = jax.lax.stop_gradient(v)
        # measure_input: per-tensor amax observers.
        self._measurements["inputs"] = [float(jnp.max(jnp.abs(t)))
                                        for t in (dq, dk, dv)]
        D = q.shape[-1]
        sm_scale = scale if scale is not None else 1.0 / math.sqrt(D)
        output = fused_sdpa_pallas(dq.astype(jnp.bfloat16),
                                   dk.astype(jnp.bfloat16),
                                   dv.astype(jnp.bfloat16),
                                   sm_scale=sm_scale, is_causal=is_causal,
                                   out_dtype=q.dtype)
        # TODO(synk): amax of the softmax matrix (is_amax_s=True) is not
        # returned by the Pallas kernel; only output amax is measured.
        self._measurements["outputs"] = [float(jnp.max(jnp.abs(output)))]
        return output

    def extra_repr(self) -> str:
        return (f"original={self.class_name_org}, scale_q dtype=float32, "
                f"scale_k dtype=float32, scale_v dtype=float32, "
                f"descale_amax dtype=float32, scale_amax dtype=float32, "
                f"scale_output dtype=float32")


# ----------------------------------------------------------------------------
# Pure-JAX reference SDPA for validation.
# ----------------------------------------------------------------------------
def _reference_sdpa(q, k, v, sm_scale, is_causal):
    qf, kf, vf = (x.astype(jnp.float32) for x in (q, k, v))
    s = jnp.einsum("bhqd,bhkd->bhqk", qf, kf) * sm_scale
    if is_causal:
        Sq, Sk = s.shape[-2], s.shape[-1]
        mask = jnp.tril(jnp.ones((Sq, Sk), dtype=bool))
        s = jnp.where(mask, s, -jnp.inf)
    p = jax.nn.softmax(s, axis=-1)
    return jnp.einsum("bhqk,bhkd->bhqd", p, vf)


if __name__ == "__main__":
    key = jax.random.PRNGKey(0)
    kq, kk, kv_key, kq2, kk2, kv2 = jax.random.split(key, 6)

    # ---- 1) Non-causal fused SDPA kernel vs reference (bf16, unit scales). ----
    B, H, S, D = 2, 4, 256, 128
    q = jax.random.normal(kq, (B, H, S, D), dtype=jnp.float32)
    k = jax.random.normal(kk, (B, H, S, D), dtype=jnp.float32)
    v = jax.random.normal(kv_key, (B, H, S, D), dtype=jnp.float32)
    qb, kb, vb = (x.astype(jnp.bfloat16) for x in (q, k, v))
    sm_scale = 1.0 / math.sqrt(D)

    out = fused_sdpa_pallas(qb, kb, vb, sm_scale=sm_scale, is_causal=False)
    jax.block_until_ready(out)
    ref = _reference_sdpa(qb, kb, vb, sm_scale, False)
    assert jnp.allclose(out.astype(jnp.float32), ref, atol=2e-2, rtol=2e-2), \
        "fused SDPA mismatch (non-causal)"

    # ---- 2) Causal, multi-tile: exercises clamped K/V index map (DMA elision),
    #         tile skip, masked diagonal tiles and unmasked below-diag tiles. ----
    Bc, Hc, Sc = 1, 2, 512
    qc = jax.random.normal(kq2, (Bc, Hc, Sc, D), dtype=jnp.float32).astype(jnp.bfloat16)
    kc = jax.random.normal(kk2, (Bc, Hc, Sc, D), dtype=jnp.float32).astype(jnp.bfloat16)
    vc = jax.random.normal(kv2, (Bc, Hc, Sc, D), dtype=jnp.float32).astype(jnp.bfloat16)
    out_c = fused_sdpa_pallas(qc, kc, vc, sm_scale=sm_scale, is_causal=True,
                              tq=256, tk=128)
    jax.block_until_ready(out_c)
    ref_c = _reference_sdpa(qc, kc, vc, sm_scale, True)
    assert jnp.allclose(out_c.astype(jnp.float32), ref_c, atol=2e-2, rtol=2e-2), \
        "fused SDPA mismatch (causal)"

    # ---- 3) Full quantized module forward (QUANTIZE), scales from amax. ----
    scale_q_t = float(jnp.max(jnp.abs(q))) / _FP8_MAX
    scale_k_t = float(jnp.max(jnp.abs(k))) / _FP8_MAX
    scale_v_t = float(jnp.max(jnp.abs(v))) / _FP8_MAX
    scale_o_t = float(jnp.max(jnp.abs(ref))) / _FP8_MAX
    mod = PatchedModuleFusedSDPA(scale_q_t, scale_k_t, scale_v_t, scale_o_t)
    assert "ModuleFusedSDPA" in mod.extra_repr()
    d_out = mod(qb, kb, vb, is_causal=False, scale=sm_scale)
    jax.block_until_ready(d_out)

    # Reference on the same fp8-quantized inputs, with the same fp8 output round-trip.
    qdq = mod.quant_q(qb).astype(jnp.float32) * mod.scale_q
    kdq = mod.quant_k(kb).astype(jnp.float32) * mod.scale_k
    vdq = mod.quant_v(vb).astype(jnp.float32) * mod.scale_v
    ref_q = _reference_sdpa(qdq, kdq, vdq, sm_scale, False)
    ref_q = jnp.clip(ref_q / scale_o_t, -_FP8_MAX, _FP8_MAX).astype(jnp.float8_e4m3fn)
    ref_q = ref_q.astype(jnp.float32) * scale_o_t
    num = float(jnp.mean(jnp.abs(d_out - ref_q)))
    den = float(jnp.mean(jnp.abs(ref_q))) + 1e-8
    assert num / den < 0.03, f"quantized fused SDPA error too high: {num / den:.4f}"

    # ---- 4) Measure-mode forward (observers record amax; unquantized math). ----
    mod_measure = PatchedModuleFusedSDPA(1.0, 1.0, 1.0, 1.0,
                                         quantization_mode="MEASURE")
    out_m = mod_measure(qb, kb, vb, is_causal=False, scale=sm_scale)
    jax.block_until_ready(out_m)
    assert len(mod_measure._measurements["inputs"]) == 3

    print("KERNEL_OK")
</pallas_src>

<mosaic_0001>
module attributes {stable_mosaic.version = 11 : i64} {
  func.func @kernel(%arg0: i32, %arg1: i32, %arg2: i32, %arg3: memref<1x256x128xbf16, #tpu.memory_space<vmem>>, %arg4: memref<1x256x128xbf16, #tpu.memory_space<vmem>>, %arg5: memref<1x256x128xbf16, #tpu.memory_space<vmem>>, %arg6: memref<1x256x128xbf16, #tpu.memory_space<vmem>>, %arg7: memref<256x1xf32, #tpu.memory_space<vmem>>, %arg8: memref<256x1xf32, #tpu.memory_space<vmem>>, %arg9: memref<256x128xf32, #tpu.memory_space<vmem>>) attributes {dimension_semantics = [#tpu.dimension_semantics<parallel>, #tpu.dimension_semantics<parallel>, #tpu.dimension_semantics<arbitrary>], iteration_bounds = array<i64: 8, 1, 1>, scalar_prefetch = 0 : i64, scratch_operands = 3 : i64, tpu.core_type = #tpu.core_type<tc>, window_params = [{transform_indices = @transform_0, window_bounds = array<i64: 1, 256, 128>}, {transform_indices = @transform_1, window_bounds = array<i64: 1, 256, 128>}, {transform_indices = @transform_2, window_bounds = array<i64: 1, 256, 128>}, {transform_indices = @transform_3, window_bounds = array<i64: 1, 256, 128>}]} {
    %c0_i32 = arith.constant 0 : i32
    %0 = arith.cmpi eq, %arg2, %c0_i32 : i32
    %1 = arith.extui %0 : i1 to i32
    %c0_i32_0 = arith.constant 0 : i32
    %2 = arith.cmpi ne, %1, %c0_i32_0 : i32
    scf.if %2 {
      %cst_27 = arith.constant 0xFF800000 : f32
      %38 = vector.broadcast %cst_27 : f32 to vector<256x1xf32>
      %c0_28 = arith.constant 0 : index
      %c0_29 = arith.constant 0 : index
      %39 = vector.load %arg7[%c0_28, %c0_29] : memref<256x1xf32, #tpu.memory_space<vmem>>, vector<256x1xf32>
      tpu.vector_store %arg7[%c0_28, %c0_29], %38 {strides = array<i32>} : memref<256x1xf32, #tpu.memory_space<vmem>>, vector<256x1xf32>,
      %cst_30 = arith.constant 0.000000e+00 : f32
      %40 = vector.broadcast %cst_30 : f32 to vector<256x1xf32>
      %c0_31 = arith.constant 0 : index
      %c0_32 = arith.constant 0 : index
      %41 = vector.load %arg8[%c0_31, %c0_32] : memref<256x1xf32, #tpu.memory_space<vmem>>, vector<256x1xf32>
      tpu.vector_store %arg8[%c0_31, %c0_32], %40 {strides = array<i32>} : memref<256x1xf32, #tpu.memory_space<vmem>>, vector<256x1xf32>,
      %cst_33 = arith.constant 0.000000e+00 : f32
      %42 = vector.broadcast %cst_33 : f32 to vector<256x128xf32>
      %c0_34 = arith.constant 0 : index
      %c0_35 = arith.constant 0 : index
      %43 = vector.load %arg9[%c0_34, %c0_35] : memref<256x128xf32, #tpu.memory_space<vmem>>, vector<256x128xf32>
      tpu.vector_store %arg9[%c0_34, %c0_35], %42 {strides = array<i32>} : memref<256x128xf32, #tpu.memory_space<vmem>>, vector<256x128xf32>,
    } else {
    }
    %c0 = arith.constant 0 : index
    %c0_1 = arith.constant 0 : index
    %c0_2 = arith.constant 0 : index
    %3 = vector.load %arg3[%c0, %c0_1, %c0_2] : memref<1x256x128xbf16, #tpu.memory_space<vmem>>, vector<1x256x128xbf16>
    %4 = vector.shape_cast %3 : vector<1x256x128xbf16> to vector<256x128xbf16>
    %c0_3 = arith.constant 0 : index
    %c0_4 = arith.constant 0 : index
    %c0_5 = arith.constant 0 : index
    %5 = vector.load %arg4[%c0_3, %c0_4, %c0_5] : memref<1x256x128xbf16, #tpu.memory_space<vmem>>, vector<1x256x128xbf16>
    %6 = vector.shape_cast %5 : vector<1x256x128xbf16> to vector<256x128xbf16>
    %c0_6 = arith.constant 0 : index
    %c0_7 = arith.constant 0 : index
    %c0_8 = arith.constant 0 : index
    %7 = vector.load %arg5[%c0_6, %c0_7, %c0_8] : memref<1x256x128xbf16, #tpu.memory_space<vmem>>, vector<1x256x128xbf16>
    %8 = vector.shape_cast %7 : vector<1x256x128xbf16> to vector<256x128xbf16>
    %cst = arith.constant dense<0.000000e+00> : vector<256x256xf32>
    %9 = tpu.matmul %4, %6, %cst {dimension_numbers = #tpu.dot_dimension_numbers<[1], [1], [0], [0], [0, 0, 1, 0], [], []>} : vector<256x128xbf16>, vector<256x128xbf16>, vector<256x256xf32> -> vector<256x256xf32>
    %cst_9 = arith.constant 0.127517432 : f32
    %10 = vector.broadcast %cst_9 : f32 to vector<256x256xf32>
    %11 = arith.mulf %9, %10 : vector<256x256xf32>
    %c0_10 = arith.constant 0 : index
    %c0_11 = arith.constant 0 : index
    %12 = vector.load %arg7[%c0_10, %c0_11] : memref<256x1xf32, #tpu.memory_space<vmem>>, vector<256x1xf32>
    %cst_12 = arith.constant dense<0xFF800000> : vector<256xf32>
    %13 = vector.multi_reduction <maximumf>, %11, %cst_12 [1] : vector<256x256xf32> to vector<256xf32>
    %14 = vector.shape_cast %13 : vector<256xf32> to vector<256x1xf32>
    %15 = arith.maximumf %12, %14 : vector<256x1xf32>
    %16 = arith.subf %12, %15 : vector<256x1xf32>
    %17 = math.exp2 %16 : vector<256x1xf32>
    %18 = vector.broadcast %15 : vector<256x1xf32> to vector<256x256xf32>
    %19 = arith.subf %11, %18 : vector<256x256xf32>
    %20 = math.exp2 %19 : vector<256x256xf32>
    %c0_13 = arith.constant 0 : index
    %c0_14 = arith.constant 0 : index
    %21 = vector.load %arg8[%c0_13, %c0_14] : memref<256x1xf32, #tpu.memory_space<vmem>>, vector<256x1xf32>
    %22 = arith.mulf %17, %21 : vector<256x1xf32>
    %cst_15 = arith.constant dense<0.000000e+00> : vector<256xf32>
    %23 = vector.multi_reduction <add>, %20, %cst_15 [1] : vector<256x256xf32> to vector<256xf32>
    %24 = vector.shape_cast %23 : vector<256xf32> to vector<256x1xf32>
    %25 = arith.addf %22, %24 : vector<256x1xf32>
    %c0_16 = arith.constant 0 : index
    %c0_17 = arith.constant 0 : index
    %26 = vector.load %arg8[%c0_16, %c0_17] : memref<256x1xf32, #tpu.memory_space<vmem>>, vector<256x1xf32>
    tpu.vector_store %arg8[%c0_16, %c0_17], %25 {strides = array<i32>} : memref<256x1xf32, #tpu.memory_space<vmem>>, vector<256x1xf32>,
    %27 = arith.truncf %20 : vector<256x256xf32> to vector<256x256xbf16>
    %cst_18 = arith.constant dense<0.000000e+00> : vector<256x128xf32>
    %28 = tpu.matmul %27, %8, %cst_18 {dimension_numbers = #tpu.dot_dimension_numbers<[1], [0], [0], [1], [0, 0, 1, 1], [], []>} : vector<256x256xbf16>, vector<256x128xbf16>, vector<256x128xf32> -> vector<256x128xf32>
    %c0_19 = arith.constant 0 : index
    %c0_20 = arith.constant 0 : index
    %29 = vector.load %arg9[%c0_19, %c0_20] : memref<256x128xf32, #tpu.memory_space<vmem>>, vector<256x128xf32>
    %30 = vector.broadcast %17 : vector<256x1xf32> to vector<256x128xf32>
    %31 = arith.mulf %30, %29 : vector<256x128xf32>
    %32 = arith.addf %31, %28 : vector<256x128xf32>
    %c0_21 = arith.constant 0 : index
    %c0_22 = arith.constant 0 : index
    %33 = vector.load %arg9[%c0_21, %c0_22] : memref<256x128xf32, #tpu.memory_space<vmem>>, vector<256x128xf32>
    tpu.vector_store %arg9[%c0_21, %c0_22], %32 {strides = array<i32>} : memref<256x128xf32, #tpu.memory_space<vmem>>, vector<256x128xf32>,
    %c0_23 = arith.constant 0 : index
    %c0_24 = arith.constant 0 : index
    %34 = vector.load %arg7[%c0_23, %c0_24] : memref<256x1xf32, #tpu.memory_space<vmem>>, vector<256x1xf32>
    tpu.vector_store %arg7[%c0_23, %c0_24], %15 {strides = array<i32>} : memref<256x1xf32, #tpu.memory_space<vmem>>, vector<256x1xf32>,
    %c0_i32_25 = arith.constant 0 : i32
    %35 = arith.cmpi eq, %arg2, %c0_i32_25 : i32
    %36 = arith.extui %35 : i1 to i32
    %c0_i32_26 = arith.constant 0 : i32
    %37 = arith.cmpi ne, %36, %c0_i32_26 : i32
    scf.if %37 {
      %c0_27 = arith.constant 0 : index
      %c0_28 = arith.constant 0 : index
      %38 = vector.load %arg8[%c0_27, %c0_28] : memref<256x1xf32, #tpu.memory_space<vmem>>, vector<256x1xf32>
      %39 = tpu.reciprocal %38 : vector<256x1xf32> -> vector<256x1xf32>
      %c0_29 = arith.constant 0 : index
      %c0_30 = arith.constant 0 : index
      %40 = vector.load %arg9[%c0_29, %c0_30] : memref<256x128xf32, #tpu.memory_space<vmem>>, vector<256x128xf32>
      %cst_31 = arith.constant 1.000000e+00 : f32
      %41 = vector.broadcast %cst_31 : f32 to vector<256x1xf32>
      %42 = arith.mulf %39, %41 : vector<256x1xf32>
      %43 = vector.broadcast %42 : vector<256x1xf32> to vector<256x128xf32>
      %44 = arith.mulf %40, %43 : vector<256x128xf32>
      %45 = arith.truncf %44 : vector<256x128xf32> to vector<256x128xbf16>
      %c0_32 = arith.constant 0 : index
      %c0_33 = arith.constant 0 : index
      %c0_34 = arith.constant 0 : index
      %46 = vector.load %arg6[%c0_32, %c0_33, %c0_34] : memref<1x256x128xbf16, #tpu.memory_space<vmem>>, vector<1x256x128xbf16>
      %47 = vector.shape_cast %46 : vector<1x256x128xbf16> to vector<256x128xbf16>
      %48 = vector.shape_cast %45 : vector<256x128xbf16> to vector<1x256x128xbf16>
      tpu.vector_store %arg6[%c0_32, %c0_33, %c0_34], %48 {strides = array<i32>} : memref<1x256x128xbf16, #tpu.memory_space<vmem>>, vector<1x256x128xbf16>,
    } else {
    }
    return
  }
  func.func @transform_0(%arg0: i32, %arg1: i32, %arg2: i32) -> (i32, i32, i32) {
    %c0_i32 = arith.constant 0 : i32
    %c0_i32_0 = arith.constant 0 : i32
    return %arg0, %arg1, %c0_i32 : i32, i32, i32
  }
  func.func @transform_1(%arg0: i32, %arg1: i32, %arg2: i32) -> (i32, i32, i32) {
    %c0_i32 = arith.constant 0 : i32
    %c0_i32_0 = arith.constant 0 : i32
    return %arg0, %arg2, %c0_i32 : i32, i32, i32
  }
  func.func @transform_2(%arg0: i32, %arg1: i32, %arg2: i32) -> (i32, i32, i32) {
    %c0_i32 = arith.constant 0 : i32
    %c0_i32_0 = arith.constant 0 : i32
    return %arg0, %arg2, %c0_i32 : i32, i32, i32
  }
  func.func @transform_3(%arg0: i32, %arg1: i32, %arg2: i32) -> (i32, i32, i32) {
    %c0_i32 = arith.constant 0 : i32
    %c0_i32_0 = arith.constant 0 : i32
    return %arg0, %arg1, %c0_i32 : i32, i32, i32
  }
}

</mosaic_0001>

<bundles_post_ra>
// kernel: tpu_custom_call.1
= control target key start
LH: loop header
LB: loop body
LE: loop exit
PB: predicated region body
PF: predicated region fallthrough
CT: control target
= control target key end

     0   :  { %s5722_s0 = inlined_call_operand.hbm [shape: bf16[8,256,128], index: 0, kind: input, shape index: {}]   ;;  %s5723_s1 = inlined_call_operand.hbm [shape: bf16[8,256,128], index: 1, kind: input, shape index: {}]   ;;  %s5724_s2 = inlined_call_operand.hbm [shape: bf16[8,256,128], index: 2, kind: input, shape index: {}]   ;;  %s5725_s3 = inlined_call_operand.hbm [shape: bf16[8,256,128], index: 3, kind: output, shape index: {}]  }
   0x1   :  { %5775 = sst [smem:[#allocation81_spill]] %s5723_s1 }
   0x2   :  { %8 = vsyncpa [#allocation6], 0 }
   0x3   :  { %10 = vsyncpa [#allocation6 + $0x1], 0 }
   0x4   :  { %11 = vsyncpa [#allocation9], 0 }
   0x5   :  { %13 = vsyncpa [#allocation9 + $0x1], 0 }
   0x6   :  { %14 = vsyncpa [#allocation7], 0 }
   0x7   :  { %16 = vsyncpa [#allocation7 + $0x1], 0  ;;  %s4136_s12 = smov 0   ;;  %s4138_s13 = smov 0  }
   0x8   :  { %s4140_s14 = smov 0   ;;  %s4142_s15 = smov 0  }
   0x9   :  { %s4144_s16 = smov 0   ;;  %s4146_s17 = smov 0  }
   0xa LB: > { %5776 = sst [smem:[#allocation15_spill]] %s4095_s14  ;;  %s4167_s18 = sadd.s32 4294967295, %s4107_s17   ;;  %s4107_s17 = sphi %s4146_s17, %s22_s17   ;;  %s4103_s16 = sphi %s4144_s16, %s5962_s16   ;;  %s4099_s15 = sphi %s4142_s15, %s5961_s15   ;;  %s4095_s14 = sphi %s4140_s14, %s5965_s14   ;;  %s4091_s13 = sphi %s4138_s13, %s5964_s13   ;;  %s4087_s12 = sphi %s4136_s12, %s5963_s12  }
   0xb   : > { %5777 = sst [smem:[#allocation16_spill]] %s4103_s16  ;;  %s3232_s19 = sadd.s32 4294967294, %s4107_s17  }
   0xc   : > { %s41_s20 = sadd.s32 1, %s4103_s16  ;;  %s50_s21 = sadd.s32 1, %s4095_s14 }
   0xd   : > { %p43_p0 = scmp.ge.s32.totalorder %s41_s20, 8  ;;  %p57_p1 = scmp.ne.s32.totalorder %s4095_s14, %s4091_s13 }
   0xe   : > { %p58_p2 = scmp.eq.s32.totalorder %s4107_s17, 0  ;;  %p63_p3 = scmp.ne.s32.totalorder %s4091_s13, %s4087_s12 }
   0xf   : > { %s5967_s20 = smov (%p43_p0, %s41_s20), 0  ;;  %p64_p5 = scmp.eq.s32.totalorder %s4167_s18, 0 }
  0x10   : > { %5778 = sst [smem:[#allocation17_spill]] %s5967_s20  ;;  %p4179_p4 = por %p58_p2, %p57_p1 }
  0x11   : > { %s45_s23 = ssub.s32 %s4103_s16, %s5967_s20  ;;  %p145_p6 = scmp.eq.s32.totalorder %s4167_s18, 7 }
  0x12   : > { %p48_p7 = scmp.eq.s32.totalorder %s45_s23, 0  ;;  %p4187_p8 = por %p64_p5, %p63_p3 }
  0x13   : > { %p4191_p9 = por %p145_p6, %p57_p1  ;;  %p151_p10 = scmp.eq.s32.totalorder %s3232_s19, 7 }
  0x14   : > { %s4196_s26 = scalar_select %p48_p7, %s4095_s14, %s50_s21  }
  0x15   : > { %p4198_p11 = por %p151_p10, %p63_p3  ;;  %p3615_p12 = scmp.lt.s32.totalorder %s4107_s17, 8 }
  0x16   : > { %5782 = sst [smem:[#allocation18_spill]] %s4196_s26  ;;  %s171_s28 = sand.u32 1, %s4095_s14  }
  0x17   : > { %s5783_s27 = scalar_select %p4198_p11, 1, 0 }
  0x18   : > { %s4204_s29 = sshll.u32 %s171_s28, 7  ;;  %s3446_s30 = sshll.u32 %s4103_s16, 7 }
  0x19   : > { %5784 = sst [smem:[#allocation19_spill]] %s5783_s27  ;;  %p4209_p13 = pnand %p3615_p12, %p4179_p4 }
  0x1a   : > { %s195_s5 = sand.u32 1, %s4107_s17   ;;  %s5786_s1 = sld [smem:[#allocation81_spill]] }
  0x1b   : > { %s199_s10 = scalar_lea.vmem [#allocation8], %s4204_s29  ;;  %s196_s19 = scalar_lea.sflag [#allocation9], %s195_s5 }
  0x1c   : > { %s209_s11 = sshll.u32 %s199_s10, 4  ;;  %s4109_s21 = smov 64   ;;  %s210_s11 = int_to_ptr.vmem [resolvable:$true] %s209_s11 }
  0x1d   : > { %s4110_s22 = smov 4   ;;  %p3244_p0 = scmp.ge.s32.totalorder %s4107_s17, 1 }
  0x1e   : > { %p241_p1 = scmp.lt.s32.totalorder %s4107_s17, 9  ;;  %s172_s5 = scalar_lea.sflag [#allocation6], %s171_s28 }
  0x1f   : > { %s230_s16 = scalar_lea.hbm %s5724_s2, %s3446_s30  ;;  %s223_s14 = scalar_lea.vmem [#allocation10], %s4204_s29 }
  0x20   : > { %s206_s8 = scalar_lea.hbm %s5786_s1, %s3446_s30  ;;  %p4222_p2 = pnand %p3244_p0, %p241_p1 }
  0x21   : > { %s207_s9 = sshll.u32 %s206_s8, 4  ;;  %s182_s8 = scalar_lea.hbm %s5722_s0, %s3446_s30  ;;  %s208_s9 = int_to_ptr.hbm [resolvable:$true] %s207_s9 }
  0x22   : > { %3607 = dma.hbm_to_vmem [thread:$0]  (!%p4209_p13), %s208_s9, 2048, %s210_s11, %s196_s19, %s4109_s21, %s4109_s21, %s4110_s22  }
  0x23   : > { %s183_s10 = sshll.u32 %s182_s8, 4  ;;  %s175_s1 = scalar_lea.vmem [#allocation5], %s4204_s29  ;;  %s184_s10 = int_to_ptr.hbm [resolvable:$true] %s183_s10 }
  0x24   : > { %s185_s20 = sshll.u32 %s175_s1, 4  ;;  %s231_s26 = sshll.u32 %s230_s16, 4  ;;  %s186_s20 = int_to_ptr.vmem [resolvable:$true] %s185_s20  ;;  %s232_s26 = int_to_ptr.hbm [resolvable:$true] %s231_s26 }
  0x25   : > { %3604 = dma.hbm_to_vmem [thread:$0]  (!%p4209_p13), %s184_s10, 2048, %s186_s20, %s172_s5, %s4109_s21, %s4109_s21, %s4110_s22  }
  0x26   : > { %s233_s27 = sshll.u32 %s223_s14, 4  ;;  %245 = sbr.rel (%p4222_p2) target bundleno = 1727 (0x6bf), region = 32  ;;  %s234_s27 = int_to_ptr.vmem [resolvable:$true] %s233_s27 }
  0x27   : > { %3610 = dma.hbm_to_vmem [thread:$0]  (!%p4209_p13), %s232_s26, 2048, %s234_s27, %s196_s19, %s4109_s21, %s4109_s21, %s4110_s22  }
  0x2b   : > { %s4241_s1 = sand.u32 1, %s4091_s13  }
  0x2c   : > { %s4244_s20 = sshll.u32 %s4241_s1, 7  ;;  %s248_s28 = scalar_lea.sflag [#allocation6], %s4241_s1 }
  0x2d   : > { %s4248_s16 = scalar_lea.vmem [#allocation5], %s4244_s20 }
  0x2e   : > { %4074 = dma.done.wait (%p4187_p8), %s248_s28, 2048  }
  0x2f   : > { %4076 = vsyncadd (%p4187_p8), %s248_s28, 4294965248  ;;  %s257_s14 = sand.u32 1, %s4167_s18   ;;  %s4256_s27 = scalar_lea.vmem [#allocation8], %s4244_s20 }
  0x30   : > { %s258_s26 = scalar_lea.sflag [#allocation9], %s257_s14 }
  0x31   : > { %4078 = dma.done.wait (%p4187_p8), %s258_s26, 4096  }
  0x32   : > { %4080 = vsyncadd (%p4187_p8), %s258_s26, 4294963200  ;;  %v3472_v0 = vld [vmem:[%s4256_s27 + $0x38] sm:$0xff]  ;;  %v3471_v2 = vld [vmem:[%s4256_s27 + $0x30] sm:$0xff]  ;;  %vm313_vm0 = vcmask 7168   ;;  %s4579_s18 = scalar_lea.vmem [#allocation10], %s4244_s20  ;;  %s5358_s24 = scalar_lea.vmem [#allocation11], %s4244_s20 }
  0x33   : > { %v3480_v1 = vld [vmem:[%s4256_s27 + $0x78] sm:$0xff]  ;;  %698 = vmatpush.bf16.xpose.msra.mxu0 %v3472_v0  ;;  %v3479_v3 = vld [vmem:[%s4256_s27 + $0x70] sm:$0xff]  ;;  %v3470_v4 = vld [vmem:[%s4256_s27 + $0x28] sm:$0xff]  ;;  %s3497_s29 = sshll.u32 %s4099_s15, 7  ;;  %s3089_s21 = sshll.u32 %s5358_s24, 4  ;;  %s3090_s21 = int_to_ptr.vmem [resolvable:$true] %s3089_s21 }
  0x34   : > { %787 = vmatpush.bf16.xpose.msra.mxu1 %v3480_v1  ;;  %v3478_v5 = vld [vmem:[%s4256_s27 + $0x68] sm:$0xff]  ;;  %v3469_v6 = vld [vmem:[%s4256_s27 + $0x20] sm:$0xff]  ;;  %v3468_v8 = vld [vmem:[%s4256_s27 + $0x18] sm:$0xff]  ;;  %s3088_s19 = scalar_lea.hbm %s5725_s3, %s3497_s29  ;;  %s3075_s15 = scalar_lea.sflag [#allocation7], %s4241_s1 }
  0x35   : > { %v3477_v7 = vld [vmem:[%s4256_s27 + $0x60] sm:$0xff]  ;;  %v3476_v9 = vld [vmem:[%s4256_s27 + $0x58] sm:$0xff]  ;;  %v3467_v10 = vld [vmem:[%s4256_s27 + $0x10] sm:$0xff]  ;;  %s3091_s22 = sshll.u32 %s3088_s19, 4  ;;  %s4041_s10 = scalar_lea.hbm %s5725_s3, 1024  ;;  %s3092_s22 = int_to_ptr.hbm [resolvable:$true] %s3091_s22 }
  0x36   : > { %v3475_v11 = vld [vmem:[%s4256_s27 + $0x50] sm:$0xff]  ;;  %v3466_v12 = vld [vmem:[%s4256_s27 + $0x8] sm:$0xff]  ;;  %v3465_v14 = vld [vmem:[%s4256_s27] sm:$0xff]  ;;  %s4035_s23 = sshra.s32 %s3092_s22, 4  ;;  %s4036_s23 = int_to_ptr.hbm [resolvable:$true] %s4035_s23 }
  0x37   : > { %v3474_v13 = vld [vmem:[%s4256_s27 + $0x48] sm:$0xff]  ;;  %v3473_v15 = vld [vmem:[%s4256_s27 + $0x40] sm:$0xff]  ;;  %v3451_v18 = vld [vmem:[%s4248_s16 + $0x10] sm:$0xff]  ;;  %s4037_s6 = scalar_lea.hbm %s4036_s23, 128  ;;  %p4042_p6 = scmp.lt.s32.totalorder %s4036_s23, %s5725_s3 }
  0x38   : > { %v3449_v16 = vld [vmem:[%s4248_s16] sm:$0xff]  ;;  %v3450_v17 = vld [vmem:[%s4248_s16 + $0x8] sm:$0xff]  ;;  %v3452_v19 = vld [vmem:[%s4248_s16 + $0x18] sm:$0xff]  ;;  %p4038_p3 = scmp.ne.s32.totalorder %s4036_s23, %s4037_s6  ;;  %p4043_p7 = scmp.lt.s32.totalorder %s4041_s10, %s4037_s6 }
  0x39   : > { %v3453_v20 = vld [vmem:[%s4248_s16 + $0x20] sm:$0xff]  ;;  %v3454_v21 = vld [vmem:[%s4248_s16 + $0x28] sm:$0xff]  ;;  %v3455_v22 = vld [vmem:[%s4248_s16 + $0x30] sm:$0xff] }
  0x3a   : > { %v3456_v23 = vld [vmem:[%s4248_s16 + $0x38] sm:$0xff]  ;;  %v3457_v33 = vld [vmem:[%s4248_s16 + $0x40] sm:$0xff]  ;;  %v3458_v45 = vld [vmem:[%s4248_s16 + $0x48] sm:$0xff]  ;;  %p4039_p4 = pnand %p4038_p3, %p4191_p9  ;;  %p4044_p8 = por %p4043_p7, %p4042_p6 }
  0x3b   : > { %699 = vmatpush.bf16.xpose.msra.mxu0 %v3471_v2 }
  0x3c   : > { %788 = vmatpush.bf16.xpose.msra.mxu1 %v3479_v3  ;;  %p4040_p5 = pneg %p4039_p4 }
  0x3e   : > { %p4045_p10 = pnand %p4044_p8, %p4040_p5 }
  0x43   : > { %700 = vmatpush.bf16.xpose.msra.mxu0 %v3470_v4 }
  0x44   : > { %789 = vmatpush.bf16.xpose.msra.mxu1 %v3478_v5 }
  0x4b   : > { %701 = vmatpush.bf16.xpose.msra.mxu0 %v3469_v6 }
  0x4c   : > { %790 = vmatpush.bf16.xpose.msra.mxu1 %v3477_v7 }
  0x53   : > { %702 = vmatpush.bf16.xpose.msra.mxu0 %v3468_v8 }
  0x54   : > { %791 = vmatpush.bf16.xpose.msra.mxu1 %v3476_v9 }
  0x5b   : > { %703 = vmatpush.bf16.xpose.msra.mxu0 %v3467_v10 }
  0x5c   : > { %792 = vmatpush.bf16.xpose.msra.mxu1 %v3475_v11 }
  0x63   : > { %704 = vmatpush.bf16.xpose.msra.mxu0 %v3466_v12 }
  0x64   : > { %793 = vmatpush.bf16.xpose.msra.mxu1 %v3474_v13 }
  0x6b   : > { %705 = vmatpush.bf16.xpose.msra.mxu0 %v3465_v14 }
  0x6c   : > { %794 = vmatpush.bf16.xpose.msra.mxu1 %v3473_v15 }
  0x72   : > { %706 = vmatmul.bf16.vlgmr.msra.gmra.mxu0 %v3449_v16 }
  0x73   : > { %795 = vmatmul.bf16.vlgmr.msra.gmra.mxu1 %v3449_v16  ;;  %v4111_v16 = vmov -inf  }
  0x74   : > { %314 = vst.msk [vmem:[#allocation2] sm:$0xff] %vm313_vm0, %v4111_v16 }
  0x75   : > { %315 = vst.msk [vmem:[#allocation2 + $0x8] sm:$0xff] %vm313_vm0, %v4111_v16 }
  0x76   : > { %316 = vst.msk [vmem:[#allocation2 + $0x10] sm:$0xff] %vm313_vm0, %v4111_v16 }
  0x77   : > { %317 = vst.msk [vmem:[#allocation2 + $0x18] sm:$0xff] %vm313_vm0, %v4111_v16 }
  0x78   : > { %318 = vst.msk [vmem:[#allocation2 + $0x20] sm:$0xff] %vm313_vm0, %v4111_v16 }
  0x79   : > { %319 = vst.msk [vmem:[#allocation2 + $0x28] sm:$0xff] %vm313_vm0, %v4111_v16 }
  0x7a   : > { %320 = vst.msk [vmem:[#allocation2 + $0x30] sm:$0xff] %vm313_vm0, %v4111_v16 }
  0x7b   : > { %321 = vst.msk [vmem:[#allocation2 + $0x38] sm:$0xff] %vm313_vm0, %v4111_v16 }
  0x7c   : > { %322 = vst.msk [vmem:[#allocation2 + $0x40] sm:$0xff] %vm313_vm0, %v4111_v16 }
  0x7d   : > { %323 = vst.msk [vmem:[#allocation2 + $0x48] sm:$0xff] %vm313_vm0, %v4111_v16 }
  0x7e   : > { %324 = vst.msk [vmem:[#allocation2 + $0x50] sm:$0xff] %vm313_vm0, %v4111_v16 }
  0x7f   : > { %325 = vst.msk [vmem:[#allocation2 + $0x58] sm:$0xff] %vm313_vm0, %v4111_v16 }
  0x80   : > { %326 = vst.msk [vmem:[#allocation2 + $0x60] sm:$0xff] %vm313_vm0, %v4111_v16 }
  0x81   : > { %327 = vst.msk [vmem:[#allocation2 + $0x68] sm:$0xff] %vm313_vm0, %v4111_v16 }
  0x82   : > { %711 = vmatmul.bf16.gmra.mxu0 %v3450_v17  ;;  %328 = vst.msk [vmem:[#allocation2 + $0x70] sm:$0xff] %vm313_vm0, %v4111_v16 }
  0x83   : > { %800 = vmatmul.bf16.gmra.mxu1 %v3450_v17  ;;  %329 = vst.msk [vmem:[#allocation2 + $0x78] sm:$0xff] %vm313_vm0, %v4111_v16 }
  0x84   : > { %330 = vst.msk [vmem:[#allocation2 + $0x80] sm:$0xff] %vm313_vm0, %v4111_v16 }
  0x85   : > { %331 = vst.msk [vmem:[#allocation2 + $0x88] sm:$0xff] %vm313_vm0, %v4111_v16 }
  0x86   : > { %332 = vst.msk [vmem:[#allocation2 + $0x90] sm:$0xff] %vm313_vm0, %v4111_v16 }
  0x87   : > { %333 = vst.msk [vmem:[#allocation2 + $0x98] sm:$0xff] %vm313_vm0, %v4111_v16 }
  0x88   : > { %334 = vst.msk [vmem:[#allocation2 + $0xa0] sm:$0xff] %vm313_vm0, %v4111_v16 }
  0x89   : > { %335 = vst.msk [vmem:[#allocation2 + $0xa8] sm:$0xff] %vm313_vm0, %v4111_v16 }
  0x8a   : > { %336 = vst.msk [vmem:[#allocation2 + $0xb0] sm:$0xff] %vm313_vm0, %v4111_v16 }
  0x8b   : > { %337 = vst.msk [vmem:[#allocation2 + $0xb8] sm:$0xff] %vm313_vm0, %v4111_v16 }
  0x8c   : > { %338 = vst.msk [vmem:[#allocation2 + $0xc0] sm:$0xff] %vm313_vm0, %v4111_v16 }
  0x8d   : > { %339 = vst.msk [vmem:[#allocation2 + $0xc8] sm:$0xff] %vm313_vm0, %v4111_v16 }
  0x8e   : > { %340 = vst.msk [vmem:[#allocation2 + $0xd0] sm:$0xff] %vm313_vm0, %v4111_v16 }
  0x8f   : > { %341 = vst.msk [vmem:[#allocation2 + $0xd8] sm:$0xff] %vm313_vm0, %v4111_v16 }
  0x90   : > { %342 = vst.msk [vmem:[#allocation2 + $0xe0] sm:$0xff] %vm313_vm0, %v4111_v16 }
  0x91   : > { %343 = vst.msk [vmem:[#allocation2 + $0xe8] sm:$0xff] %vm313_vm0, %v4111_v16 }
  0x92   : > { %716 = vmatmul.bf16.gmra.mxu0 %v3451_v18  ;;  %344 = vst.msk [vmem:[#allocation2 + $0xf0] sm:$0xff] %vm313_vm0, %v4111_v16 }
  0x93   : > { %805 = vmatmul.bf16.gmra.mxu1 %v3451_v18  ;;  %v3459_v18 = vld [vmem:[%s4248_s16 + $0x50] sm:$0xff]  ;;  %345 = vst.msk [vmem:[#allocation2 + $0xf8] sm:$0xff] %vm313_vm0, %v4111_v16  ;;  %v4478_v16 = vld [vmem:[#allocation2 + $0x18] sm:$0xff] }
  0xa2   : > { %721 = vmatmul.bf16.gmra.mxu0 %v3452_v19 }
  0xa3   : > { %810 = vmatmul.bf16.gmra.mxu1 %v3452_v19 }
  0xb2   : > { %726 = vmatmul.bf16.gmra.mxu0 %v3453_v20 }
  0xb3   : > { %815 = vmatmul.bf16.gmra.mxu1 %v3453_v20 }
  0xc2   : > { %731 = vmatmul.bf16.gmra.mxu0 %v3454_v21 }
  0xc3   : > { %820 = vmatmul.bf16.gmra.mxu1 %v3454_v21 }
  0xd2   : > { %736 = vmatmul.bf16.gmra.mxu0 %v3455_v22 }
  0xd3   : > { %825 = vmatmul.bf16.gmra.mxu1 %v3455_v22 }
  0xe2   : > { %741 = vmatmul.bf16.gmra.mxu0 %v3456_v23 }
  0xe3   : > { %830 = vmatmul.bf16.gmra.mxu1 %v3456_v23 }
  0xef   : > { %v707_v24 = vpop.f32.mrf.mxu0 }
  0xf0   : > { %v796_v25 = vpop.f32.mrf.mxu1  ;;  %v4286_v26 = vmul.f32 0.12751743, %v707_v24 }
  0xf1   : > { %v4288_v27 = vmul.f32 0.12751743, %v796_v25 }
  0xf2   : > { %746 = vmatmul.bf16.gmra.mxu0 %v3457_v33 }
  0xf3   : > { %v972_v28 = vmax.f32 %v4286_v26, %v4288_v27  ;;  %835 = vmatmul.bf16.gmra.mxu1 %v3457_v33  ;;  %v4112_v33 = vmov 0  }
  0xf4   : > { %3674 = vset.pattern.permute.xlu1 %v4112_v33  ;;  %3672 = vset.pattern.permute.xlu2 %v4112_v33 }
  0xf5   : > { %973 = vmax.xlane.f32.xlu0 %v972_v28 }
  0xf6   : > { %3673 = vset.pattern.permute.xlu0 %v4112_v33 }
  0xf7   : > { %v709_v29 = vpop.f32.mrf.mxu0 }
  0xf8   : > { %v798_v30 = vpop.f32.mrf.mxu1  ;;  %v4292_v31 = vmul.f32 0.12751743, %v709_v29 }
  0xf9   : > { %v4294_v32 = vmul.f32 0.12751743, %v798_v30 }
  0xfb   : > { %v975_v34 = vmax.f32 %v4292_v31, %v4294_v32 }
  0xfd   : > { %976 = vmax.xlane.f32.xlu0 %v975_v34 }
  0xff   : > { %v712_v35 = vpop.f32.mrf.mxu0 }
 0x100   : > { %v801_v36 = vpop.f32.mrf.mxu1  ;;  %v4299_v37 = vmul.f32 0.12751743, %v712_v35 }
 0x101   : > { %v4301_v38 = vmul.f32 0.12751743, %v801_v36 }
 0x102   : > { %751 = vmatmul.bf16.gmra.mxu0 %v3458_v45 }
 0x103   : > { %v978_v39 = vmax.f32 %v4299_v37, %v4301_v38  ;;  %840 = vmatmul.bf16.gmra.mxu1 %v3458_v45 }
 0x105   : > { %979 = vmax.xlane.f32.xlu1 %v978_v39 }
 0x107   : > { %v714_v40 = vpop.f32.mrf.mxu0 }
 0x108   : > { %v803_v41 = vpop.f32.mrf.mxu1  ;;  %v4305_v42 = vmul.f32 0.12751743, %v714_v40 }
 0x109   : > { %v4307_v43 = vmul.f32 0.12751743, %v803_v41 }
 0x10b   : > { %v981_v44 = vmax.f32 %v4305_v42, %v4307_v43 }
 0x10d   : > { %982 = vmax.xlane.f32.xlu1 %v981_v44 }
 0x10f   : > { %v717_v46 = vpop.f32.mrf.mxu0 }
 0x110   : > { %v806_v47 = vpop.f32.mrf.mxu1  ;;  %v4312_v48 = vmul.f32 0.12751743, %v717_v46 }
 0x111   : > { %v4314_v49 = vmul.f32 0.12751743, %v806_v47  ;;  %v4113_v47 = vmov 0.0  }
 0x112   : > { %756 = vmatmul.bf16.gmra.mxu0 %v3459_v18  ;;  %346 = vst.msk [vmem:[#allocation3] sm:$0xff] %vm313_vm0, %v4113_v47 }
 0x113   : > { %v984_v50 = vmax.f32 %v4312_v48, %v4314_v49  ;;  %845 = vmatmul.bf16.gmra.mxu1 %v3459_v18  ;;  %347 = vst.msk [vmem:[#allocation3 + $0x8] sm:$0xff] %vm313_vm0, %v4113_v47 }
 0x114   : > { %348 = vst.msk [vmem:[#allocation3 + $0x10] sm:$0xff] %vm313_vm0, %v4113_v47 }
 0x115   : > { %985 = vmax.xlane.f32.xlu2 %v984_v50  ;;  %349 = vst.msk [vmem:[#allocation3 + $0x18] sm:$0xff] %vm313_vm0, %v4113_v47 }
 0x116   : > { %350 = vst.msk [vmem:[#allocation3 + $0x20] sm:$0xff] %vm313_vm0, %v4113_v47 }
 0x117   : > { %v719_v51 = vpop.f32.mrf.mxu0  ;;  %351 = vst.msk [vmem:[#allocation3 + $0x28] sm:$0xff] %vm313_vm0, %v4113_v47 }
 0x118   : > { %v808_v52 = vpop.f32.mrf.mxu1  ;;  %v4318_v53 = vmul.f32 0.12751743, %v719_v51  ;;  %v940_v51 = vld [vmem:[#allocation2] sm:$0xff]  ;;  %352 = vst.msk [vmem:[#allocation3 + $0x30] sm:$0xff] %vm313_vm0, %v4113_v47 }
 0x119   : > { %v4320_v54 = vmul.f32 0.12751743, %v808_v52  ;;  %353 = vst.msk [vmem:[#allocation3 + $0x38] sm:$0xff] %vm313_vm0, %v4113_v47 }
 0x11a   : > { %354 = vst.msk [vmem:[#allocation3 + $0x40] sm:$0xff] %vm313_vm0, %v4113_v47 }
 0x11b   : > { %v987_v55 = vmax.f32 %v4318_v53, %v4320_v54  ;;  %355 = vst.msk [vmem:[#allocation3 + $0x48] sm:$0xff] %vm313_vm0, %v4113_v47 }
 0x11c   : > { %356 = vst.msk [vmem:[#allocation3 + $0x50] sm:$0xff] %vm313_vm0, %v4113_v47 }
 0x11d   : > { %988 = vmax.xlane.f32.xlu2 %v987_v55  ;;  %357 = vst.msk [vmem:[#allocation3 + $0x58] sm:$0xff] %vm313_vm0, %v4113_v47 }
 0x11e   : > { %358 = vst.msk [vmem:[#allocation3 + $0x60] sm:$0xff] %vm313_vm0, %v4113_v47 }
 0x11f   : > { %v722_v56 = vpop.f32.mrf.mxu0  ;;  %359 = vst.msk [vmem:[#allocation3 + $0x68] sm:$0xff] %vm313_vm0, %v4113_v47 }
 0x120   : > { %v811_v57 = vpop.f32.mrf.mxu1  ;;  %v4324_v58 = vmul.f32 0.12751743, %v722_v56  ;;  %360 = vst.msk [vmem:[#allocation3 + $0x70] sm:$0xff] %vm313_vm0, %v4113_v47 }
 0x121   : > { %v4326_v59 = vmul.f32 0.12751743, %v811_v57  ;;  %361 = vst.msk [vmem:[#allocation3 + $0x78] sm:$0xff] %vm313_vm0, %v4113_v47 }
 0x122   : > { %362 = vst.msk [vmem:[#allocation3 + $0x80] sm:$0xff] %vm313_vm0, %v4113_v47 }
 0x123   : > { %v990_v60 = vmax.f32 %v4324_v58, %v4326_v59  ;;  %363 = vst.msk [vmem:[#allocation3 + $0x88] sm:$0xff] %vm313_vm0, %v4113_v47 }
 0x124   : > { %364 = vst.msk [vmem:[#allocation3 + $0x90] sm:$0xff] %vm313_vm0, %v4113_v47 }
 0x125   : > { %991 = vmax.xlane.f32.xlu0 %v990_v60  ;;  %365 = vst.msk [vmem:[#allocation3 + $0x98] sm:$0xff] %vm313_vm0, %v4113_v47 }
 0x126   : > { %366 = vst.msk [vmem:[#allocation3 + $0xa0] sm:$0xff] %vm313_vm0, %v4113_v47 }
 0x127   : > { %v724_v61 = vpop.f32.mrf.mxu0  ;;  %367 = vst.msk [vmem:[#allocation3 + $0xa8] sm:$0xff] %vm313_vm0, %v4113_v47 }
 0x128   : > { %v813_v62 = vpop.f32.mrf.mxu1  ;;  %v4330_v63 = vmul.f32 0.12751743, %v724_v61  ;;  %368 = vst.msk [vmem:[#allocation3 + $0xb0] sm:$0xff] %vm313_vm0, %v4113_v47 }
 0x129   : > { %v4332_v0 = vmul.f32 0.12751743, %v813_v62  ;;  %369 = vst.msk [vmem:[#allocation3 + $0xb8] sm:$0xff] %vm313_vm0, %v4113_v47 }
 0x12a   : > { %370 = vst.msk [vmem:[#allocation3 + $0xc0] sm:$0xff] %vm313_vm0, %v4113_v47 }
 0x12b   : > { %v993_v1 = vmax.f32 %v4330_v63, %v4332_v0  ;;  %371 = vst.msk [vmem:[#allocation3 + $0xc8] sm:$0xff] %vm313_vm0, %v4113_v47 }
 0x12c   : > { %372 = vst.msk [vmem:[#allocation3 + $0xd0] sm:$0xff] %vm313_vm0, %v4113_v47 }
 0x12d   : > { %994 = vmax.xlane.f32.xlu1 %v993_v1  ;;  %373 = vst.msk [vmem:[#allocation3 + $0xd8] sm:$0xff] %vm313_vm0, %v4113_v47 }
 0x12e   : > { %374 = vst.msk [vmem:[#allocation3 + $0xe0] sm:$0xff] %vm313_vm0, %v4113_v47 }
 0x12f   : > { %v727_v2 = vpop.f32.mrf.mxu0  ;;  %375 = vst.msk [vmem:[#allocation3 + $0xe8] sm:$0xff] %vm313_vm0, %v4113_v47 }
 0x130   : > { %v816_v3 = vpop.f32.mrf.mxu1  ;;  %v4336_v4 = vmul.f32 0.12751743, %v727_v2  ;;  %v941_v2 = vld [vmem:[#allocation2 + $0x8] sm:$0xff]  ;;  %376 = vst.msk [vmem:[#allocation3 + $0xf0] sm:$0xff] %vm313_vm0, %v4113_v47 }
 0x131   : > { %v4338_v5 = vmul.f32 0.12751743, %v816_v3  ;;  %377 = vst.msk [vmem:[#allocation3 + $0xf8] sm:$0xff] %vm313_vm0, %v4113_v47 }
 0x133   : > { %v996_v6 = vmax.f32 %v4336_v4, %v4338_v5 }
 0x135   : > { %997 = vmax.xlane.f32.xlu2 %v996_v6 }
 0x137   : > { %v729_v7 = vpop.f32.mrf.mxu0 }
 0x138   : > { %v818_v8 = vpop.f32.mrf.mxu1  ;;  %v4342_v9 = vmul.f32 0.12751743, %v729_v7 }
 0x139   : > { %v4344_v10 = vmul.f32 0.12751743, %v818_v8  ;;  %v942_v8 = vld [vmem:[#allocation2 + $0x10] sm:$0xff] }
 0x13b   : > { %v999_v11 = vmax.f32 %v4342_v9, %v4344_v10 }
 0x13d   : > { %1000 = vmax.xlane.f32.xlu0 %v999_v11 }
 0x13f   : > { %v732_v12 = vpop.f32.mrf.mxu0 }
 0x140   : > { %v821_v13 = vpop.f32.mrf.mxu1  ;;  %v4348_v14 = vmul.f32 0.12751743, %v732_v12 }
 0x141   : > { %v4350_v15 = vmul.f32 0.12751743, %v821_v13 }
 0x143   : > { %v1002_v17 = vmax.f32 %v4348_v14, %v4350_v15 }
 0x145   : > { %1003 = vmax.xlane.f32.xlu1 %v1002_v17 }
 0x147   : > { %v734_v19 = vpop.f32.mrf.mxu0 }
 0x148   : > { %v823_v20 = vpop.f32.mrf.mxu1  ;;  %v4363_v21 = vmul.f32 0.12751743, %v734_v19 }
 0x149   : > { %v4365_v22 = vmul.f32 0.12751743, %v823_v20 }
 0x14b   : > { %v1005_v23 = vmax.f32 %v4363_v21, %v4365_v22 }
 0x14d   : > { %1006 = vmax.xlane.f32.xlu2 %v1005_v23  ;;  %v3460_v23 = vld [vmem:[%s4248_s16 + $0x58] sm:$0xff] }
 0x14e   : > { %761 = vmatmul.bf16.gmra.mxu0 %v3460_v23  ;;  %850 = vmatmul.bf16.gmra.mxu1 %v3460_v23 }
 0x14f   : > { %v737_v24 = vpop.f32.mrf.mxu0 }
 0x150   : > { %v826_v25 = vpop.f32.mrf.mxu1  ;;  %v4377_v28 = vmul.f32 0.12751743, %v737_v24  ;;  %v4502_v24 = vld [vmem:[#allocation2 + $0x20] sm:$0xff] }
 0x151   : > { %v4379_v29 = vmul.f32 0.12751743, %v826_v25 }
 0x153   : > { %v1008_v30 = vmax.f32 %v4377_v28, %v4379_v29 }
 0x155   : > { %1009 = vmax.xlane.f32.xlu0 %v1008_v30 }
 0x157   : > { %v739_v34 = vpop.f32.mrf.mxu0 }
 0x158   : > { %v828_v35 = vpop.f32.mrf.mxu1  ;;  %v4391_v36 = vmul.f32 0.12751743, %v739_v34  ;;  %v4512_v34 = vld [vmem:[#allocation2 + $0x28] sm:$0xff] }
 0x159   : > { %v4393_v39 = vmul.f32 0.12751743, %v828_v35 }
 0x15b   : > { %5788 = vst [vmem:[#allocation20_spill] sm:$0xff] %v4393_v39  ;;  %v1011_v40 = vmax.f32 %v4391_v36, %v4393_v39 }
 0x15d   : > { %1012 = vmax.xlane.f32.xlu1 %v1011_v40 }
 0x15f   : > { %v742_v41 = vpop.f32.mrf.mxu0 }
 0x160   : > { %v831_v44 = vpop.f32.mrf.mxu1  ;;  %v4405_v45 = vmul.f32 0.12751743, %v742_v41  ;;  %v3461_v41 = vld [vmem:[%s4248_s16 + $0x60] sm:$0xff] }
 0x161   : > { %v4407_v46 = vmul.f32 0.12751743, %v831_v44  ;;  %v4520_v44 = vld [vmem:[#allocation2 + $0x30] sm:$0xff]  ;;  %766 = vmatmul.bf16.gmra.mxu0 %v3461_v41  ;;  %855 = vmatmul.bf16.gmra.mxu1 %v3461_v41 }
 0x162   : > { %5789 = vst [vmem:[#allocation21_spill] sm:$0xff] %v4405_v45 }
 0x163   : > { %5790 = vst [vmem:[#allocation22_spill] sm:$0xff] %v4407_v46  ;;  %v1014_v50 = vmax.f32 %v4405_v45, %v4407_v46 }
 0x165   : > { %1015 = vmax.xlane.f32.xlu2 %v1014_v50 }
 0x167   : > { %v744_v60 = vpop.f32.mrf.mxu0 }
 0x168   : > { %v833_v52 = vpop.f32.mrf.mxu1  ;;  %v974_v55 = vpop.xlane.xlu0 %973  ;;  %v4431_v61 = vmul.f32 0.12751743, %v744_v60 }
 0x169   : > { %v4427_v56 = vmul.f32 0.12751743, %v833_v52  ;;  %v1068_v57 = vmax.f32 %v940_v51, %v974_v55 }
 0x16a   : > { %5792 = vst [vmem:[#allocation24_spill] sm:$0xff] %v4431_v61 }
 0x16b   : > { %5791 = vst [vmem:[#allocation23_spill] sm:$0xff] %v4427_v56  ;;  %v1100_v62 = vsub.f32 %v940_v51, %v1068_v57  ;;  %v1017_v1 = vmax.f32 %v4431_v61, %v4427_v56  ;;  %v4634_v56 = vld [vmem:[#allocation2 + $0x78] sm:$0xff] }
 0x16c   : > { %2271 = vst.msk [vmem:[#allocation2] sm:$0xff] %vm313_vm0, %v1068_v57 }
 0x16d   : > { %1018 = vmax.xlane.f32.xlu0 %v1017_v1  ;;  %3675 = vpow2.f32 %v1100_v62  ;;  %v4533_v62 = vld [vmem:[#allocation2 + $0x38] sm:$0xff] }
 0x16f   : > { %v747_v47 = vpop.f32.mrf.mxu0 }
 0x170   : > { %v977_v3 = vpop.xlane.xlu0 %976  ;;  %v836_v50 = vpop.f32.mrf.mxu1  ;;  %v4522_v52 = vmul.f32 0.12751743, %v747_v47 }
 0x171   : > { %v1069_v6 = vmax.f32 %v941_v2, %v977_v3  ;;  %v4524_v55 = vmul.f32 0.12751743, %v836_v50  ;;  %v4557_v50 = vld [vmem:[#allocation2 + $0x48] sm:$0xff] }
 0x172   : > { %5796 = vst [vmem:[#allocation28_spill] sm:$0xff] %v4522_v52 }
 0x173   : > { %2272 = vst.msk [vmem:[#allocation2 + $0x8] sm:$0xff] %vm313_vm0, %v1069_v6  ;;  %v4455_v7 = vpop.eup %3675  ;;  %v1101_v13 = vsub.f32 %v941_v2, %v1069_v6  ;;  %v1020_v60 = vmax.f32 %v4522_v52, %v4524_v55  ;;  %v3481_v52 = vld [vmem:[%s4579_s18] sm:$0xff] }
 0x174   : > { %5793 = vst [vmem:[#allocation25_spill] sm:$0xff] %v4455_v7 }
 0x175   : > { %3677 = vpow2.f32 %v1101_v13  ;;  %5797 = vst [vmem:[#allocation29_spill] sm:$0xff] %v4524_v55  ;;  %v3482_v55 = vld [vmem:[%s4579_s18 + $0x8] sm:$0xff] }
 0x176   : > { %2017 = vperm.xlu1 %3674, %v4455_v7  }
 0x177   : > { %v749_v3 = vpop.f32.mrf.mxu0 }
 0x178   : > { %v980_v11 = vpop.xlane.xlu1 %979 }
 0x179   : > { %v4466_v12 = vmax.f32 %v942_v8, %v980_v11  ;;  %v4542_v11 = vmul.f32 0.12751743, %v749_v3 }
 0x17b   : > { %2273 = vst.msk [vmem:[#allocation2 + $0x10] sm:$0xff] %vm313_vm0, %v4466_v12  ;;  %v1102_v17 = vsub.f32 %v942_v8, %v4466_v12  ;;  %v4496_v20 = vpop.eup %3677  ;;  %v4540_v8 = vld [vmem:[#allocation2 + $0x40] sm:$0xff] }
 0x17c   : > { %5794 = vst [vmem:[#allocation26_spill] sm:$0xff] %v4496_v20 }
 0x17d   : > { %1166 = vperm.xlu2 %3672, %v1068_v57   ;;  %3679 = vpow2.f32 %v1102_v17  ;;  %5798 = vst [vmem:[#allocation30_spill] sm:$0xff] %v4542_v11 }
 0x17f   : > { %v752_v23 = vpop.f32.mrf.mxu0 }
 0x180   : > { %v983_v18 = vpop.xlane.xlu1 %982 }
 0x181   : > { %v4488_v19 = vmax.f32 %v4478_v16, %v983_v18  ;;  %1171 = vperm.xlu0 %3673, %v1069_v6   ;;  %v838_v6 = vpop.f32.mrf.mxu1 }
 0x182   : > { %v4544_v13 = vmul.f32 0.12751743, %v838_v6  ;;  %v4568_v6 = vld [vmem:[#allocation2 + $0x50] sm:$0xff] }
 0x183   : > { %2274 = vst.msk [vmem:[#allocation2 + $0x18] sm:$0xff] %vm313_vm0, %v4488_v19  ;;  %v4504_v30 = vpop.eup %3679  ;;  %v1103_v3 = vsub.f32 %v4478_v16, %v4488_v19  ;;  %v3488_v16 = vld [vmem:[%s4579_s18 + $0x38] sm:$0xff] }
 0x184   : > { %5795 = vst [vmem:[#allocation27_spill] sm:$0xff] %v4504_v30  ;;  %v1023_v47 = vmax.f32 %v4542_v11, %v4544_v13  ;;  %1805 = vmatpush.bf16.msra.mxu2 %v3488_v16  ;;  %v4596_v16 = vld [vmem:[#allocation2 + $0x60] sm:$0xff] }
 0x185   : > { %2022 = vperm.xlu2 %3672, %v4496_v20   ;;  %5799 = vst [vmem:[#allocation31_spill] sm:$0xff] %v4544_v13  ;;  %3681 = vpow2.f32 %v1103_v3  ;;  %v3487_v3 = vld [vmem:[%s4579_s18 + $0x30] sm:$0xff]  ;;  %v3489_v13 = vld [vmem:[%s4579_s18 + $0x40] sm:$0xff] }
 0x186   : > { %v3491_v20 = vld [vmem:[%s4579_s18 + $0x50] sm:$0xff] }
 0x188   : > { %v986_v25 = vpop.xlane.xlu2 %985  ;;  %1806 = vmatpush.bf16.msra.mxu2 %v3487_v3  ;;  %v3493_v3 = vld [vmem:[%s4579_s18 + $0x60] sm:$0xff] }
 0x189   : > { %v4507_v33 = vmax.f32 %v4502_v24, %v986_v25  ;;  %2027 = vperm.xlu0 %3673, %v4504_v30   ;;  %v841_v25 = vpop.f32.mrf.mxu1 }
 0x18a   : > { %v4553_v41 = vmul.f32 0.12751743, %v841_v25 }
 0x18b   : > { %2275 = vst.msk [vmem:[#allocation2 + $0x20] sm:$0xff] %vm313_vm0, %v4507_v33  ;;  %v1104_v25 = vsub.f32 %v4502_v24, %v4507_v33 }
 0x18c   : > { %5801 = vst [vmem:[#allocation33_spill] sm:$0xff] %v4553_v41 }
 0x18d   : > { %3683 = vpow2.f32 %v1104_v25  ;;  %v3486_v25 = vld [vmem:[%s4579_s18 + $0x28] sm:$0xff] }
 0x18e   : > { %1807 = vmatpush.bf16.msra.mxu2 %v3486_v25 }
 0x190   : > { %v989_v35 = vpop.xlane.xlu2 %988 }
 0x191   : > { %v4515_v40 = vmax.f32 %v4512_v34, %v989_v35  ;;  %v4551_v35 = vmul.f32 0.12751743, %v752_v23 }
 0x193   : > { %2276 = vst.msk [vmem:[#allocation2 + $0x28] sm:$0xff] %vm313_vm0, %v4515_v40 }
 0x194   : > { %5800 = vst [vmem:[#allocation32_spill] sm:$0xff] %v4551_v35 }
 0x198   : > { %v992_v51 = vpop.xlane.xlu0 %991 }
 0x199   : > { %v4527_v57 = vmax.f32 %v4520_v44, %v992_v51 }
 0x19b   : > { %2277 = vst.msk [vmem:[#allocation2 + $0x30] sm:$0xff] %vm313_vm0, %v4527_v57 }
 0x1a0   : > { %v995_v1 = vpop.xlane.xlu1 %994  ;;  %1021 = vmax.xlane.f32.xlu1 %v1020_v60  ;;  %v1026_v60 = vmax.f32 %v4551_v35, %v4553_v41  ;;  %v3492_v41 = vld [vmem:[%s4579_s18 + $0x58] sm:$0xff]  ;;  %v4613_v35 = vld [vmem:[#allocation2 + $0x68] sm:$0xff] }
 0x1a1   : > { %v4536_v2 = vmax.f32 %v4533_v62, %v995_v1 }
 0x1a3   : > { %2278 = vst.msk [vmem:[#allocation2 + $0x38] sm:$0xff] %vm313_vm0, %v4536_v2 }
 0x1a8   : > { %v998_v17 = vpop.xlane.xlu2 %997 }
 0x1a9   : > { %v4547_v18 = vmax.f32 %v4540_v8, %v998_v17 }
 0x1ab   : > { %2279 = vst.msk [vmem:[#allocation2 + $0x40] sm:$0xff] %vm313_vm0, %v4547_v18 }
 0x1ae   : > { %1024 = vmax.xlane.f32.xlu2 %v1023_v47  ;;  %v3496_v47 = vld [vmem:[%s4579_s18 + $0x78] sm:$0xff] }
 0x1af   : > { %1894 = vmatpush.bf16.msra.mxu3 %v3496_v47  ;;  %v3494_v47 = vld [vmem:[%s4579_s18 + $0x68] sm:$0xff] }
 0x1b0   : > { %v1001_v51 = vpop.xlane.xlu0 %1000 }
 0x1b1   : > { %v4562_v1 = vmax.f32 %v4557_v50, %v1001_v51  ;;  %v4583_v51 = vld [vmem:[#allocation2 + $0x58] sm:$0xff] }
 0x1b3   : > { %2280 = vst.msk [vmem:[#allocation2 + $0x48] sm:$0xff] %vm313_vm0, %v4562_v1  ;;  %1027 = vmax.xlane.f32.xlu0 %v1026_v60 }
 0x1b8   : > { %v1004_v17 = vpop.xlane.xlu1 %1003 }
 0x1b9   : > { %v4571_v23 = vmax.f32 %v4568_v6, %v1004_v17  ;;  %1176 = vperm.xlu1 %3674, %v4466_v12   ;;  %v4585_v12 = vpop.eup %3681  ;;  %v3495_v17 = vld [vmem:[%s4579_s18 + $0x70] sm:$0xff] }
 0x1ba   : > { %5802 = vst [vmem:[#allocation34_spill] sm:$0xff] %v4585_v12  ;;  %1895 = vmatpush.bf16.msra.mxu3 %v3495_v17  ;;  %v3484_v17 = vld [vmem:[%s4579_s18 + $0x18] sm:$0xff] }
 0x1bb   : > { %2281 = vst.msk [vmem:[#allocation2 + $0x50] sm:$0xff] %vm313_vm0, %v4571_v23 }
 0x1be   : > { %1896 = vmatpush.bf16.msra.mxu3 %v3494_v47  ;;  %v3462_v47 = vld [vmem:[%s4248_s16 + $0x68] sm:$0xff] }
 0x1bf   : > { %771 = vmatmul.bf16.gmra.mxu0 %v3462_v47  ;;  %860 = vmatmul.bf16.gmra.mxu1 %v3462_v47 }
 0x1c0   : > { %v1007_v60 = vpop.xlane.xlu2 %1006 }
 0x1c1   : > { %v4588_v24 = vmax.f32 %v4583_v51, %v1007_v60  ;;  %2032 = vperm.xlu1 %3674, %v4585_v12   ;;  %v4600_v60 = vpop.eup %3683 }
 0x1c2   : > { %5803 = vst [vmem:[#allocation35_spill] sm:$0xff] %v4600_v60  ;;  %1897 = vmatpush.bf16.msra.mxu3 %v3493_v3  ;;  %v843_v3 = vpop.f32.mrf.mxu1 }
 0x1c3   : > { %2282 = vst.msk [vmem:[#allocation2 + $0x58] sm:$0xff] %vm313_vm0, %v4588_v24 }
 0x1c6   : > { %1181 = vperm.xlu2 %3672, %v4488_v19   ;;  %v3485_v19 = vld [vmem:[%s4579_s18 + $0x20] sm:$0xff]  ;;  %1898 = vmatpush.bf16.msra.mxu3 %v3492_v41 }
 0x1c7   : > { %2037 = vperm.xlu0 %3673, %v4600_v60   ;;  %1808 = vmatpush.bf16.msra.mxu2 %v3485_v19  ;;  %v754_v19 = vpop.f32.mrf.mxu0  ;;  %v4623_v60 = vld [vmem:[#allocation2 + $0x70] sm:$0xff] }
 0x1c8   : > { %v1010_v12 = vpop.xlane.xlu0 %1009 }
 0x1c9   : > { %v4604_v30 = vmax.f32 %v4596_v16, %v1010_v12 }
 0x1ca   : > { %1899 = vmatpush.bf16.msra.mxu3 %v3491_v20  ;;  %v846_v11 = vpop.f32.mrf.mxu1 }
 0x1cb   : > { %2283 = vst.msk [vmem:[#allocation2 + $0x60] sm:$0xff] %vm313_vm0, %v4604_v30  ;;  %1809 = vmatpush.bf16.msra.mxu2 %v3484_v17  ;;  %v3490_v17 = vld [vmem:[%s4579_s18 + $0x48] sm:$0xff] }
 0x1ce   : > { %1186 = vperm.xlu2 %3672, %v4507_v33   ;;  %v3483_v33 = vld [vmem:[%s4579_s18 + $0x10] sm:$0xff]  ;;  %1900 = vmatpush.bf16.msra.mxu3 %v3490_v17  ;;  %v4643_v17 = vmul.f32 0.12751743, %v754_v19 }
 0x1cf   : > { %1810 = vmatpush.bf16.msra.mxu2 %v3483_v33  ;;  %v757_v47 = vpop.f32.mrf.mxu0 }
 0x1d0   : > { %v1013_v12 = vpop.xlane.xlu1 %1012  ;;  %5804 = vst [vmem:[#allocation36_spill] sm:$0xff] %v4643_v17 }
 0x1d1   : > { %v4616_v25 = vmax.f32 %v4613_v35, %v1013_v12 }
 0x1d2   : > { %1901 = vmatpush.bf16.msra.mxu3 %v3489_v13  ;;  %v848_v46 = vpop.f32.mrf.mxu1 }
 0x1d3   : > { %2284 = vst.msk [vmem:[#allocation2 + $0x68] sm:$0xff] %vm313_vm0, %v4616_v25  ;;  %1811 = vmatpush.bf16.msra.mxu2 %v3482_v55 }
 0x1d7   : > { %1812 = vmatpush.bf16.msra.mxu2 %v3481_v52  ;;  %v4645_v52 = vmul.f32 0.12751743, %v843_v3  ;;  %v759_v13 = vpop.f32.mrf.mxu0  ;;  %v4659_v3 = vmul.f32 0.12751743, %v846_v11  ;;  %v1107_v11 = vsub.f32 %v4533_v62, %v4536_v2  ;;  %v4683_v62 = vld [vmem:[#allocation2 + $0x80] sm:$0xff] }
 0x1d8   : > { %v1016_v12 = vpop.xlane.xlu2 %1015 }
 0x1d9   : > { %v4628_v41 = vmax.f32 %v4623_v60, %v1016_v12  ;;  %5805 = vst [vmem:[#allocation37_spill] sm:$0xff] %v4645_v52 }
 0x1da   : > { %5809 = vst [vmem:[#allocation41_spill] sm:$0xff] %v4659_v3 }
 0x1db   : > { %2285 = vst.msk [vmem:[#allocation2 + $0x70] sm:$0xff] %vm313_vm0, %v4628_v41 }
 0x1e0   : > { %v1167_v20 = vpop.permute.xlu2 %1166  ;;  %v1019_v33 = vpop.xlane.xlu0 %1018 }
 0x1e1   : > { %v1324_v61 = vsub.f32 %v4286_v26, %v1167_v20  ;;  %v1325_v12 = vsub.f32 %v4288_v27, %v1167_v20  ;;  %v4639_v55 = vmax.f32 %v4634_v56, %v1019_v33  ;;  %v1029_v26 = vmax.f32 %v4643_v17, %v4645_v52 }
 0x1e2   : > { %v4649_v27 = vmul.f32 0.12751743, %v759_v13  ;;  %v4651_v20 = vmul.f32 0.12751743, %v848_v46  ;;  %v4657_v33 = vmul.f32 0.12751743, %v757_v47 }
 0x1e3   : > { %3685 = vpow2.f32 %v1324_v61  ;;  %2286 = vst.msk [vmem:[#allocation2 + $0x78] sm:$0xff] %vm313_vm0, %v4639_v55 }
 0x1e4   : > { %3687 = vpow2.f32 %v1325_v12  ;;  %5806 = vst [vmem:[#allocation38_spill] sm:$0xff] %v4649_v27  ;;  %v1035_v19 = vmax.f32 %v4649_v27, %v4651_v20  ;;  %v1032_v12 = vmax.f32 %v4657_v33, %v4659_v3 }
 0x1e5   : > { %5807 = vst [vmem:[#allocation39_spill] sm:$0xff] %v4651_v20 }
 0x1e6   : > { %5808 = vst [vmem:[#allocation40_spill] sm:$0xff] %v4657_v33 }
 0x1e9   : > { %v3686_v45 = vpop.eup %3685 }
 0x1ea   : > { %v3688_v7 = vpop.eup %3687 }
 0x1eb   : > { %1030 = vmax.xlane.f32.xlu1 %v1029_v26  ;;  %v4653_v61 = vadd.f32 %v3688_v7, %v3686_v45 }
 0x1f1   : > { %1036 = vmax.xlane.f32.xlu0 %v1035_v19  ;;  %v4700_v19 = vld [vmem:[#allocation2 + $0x88] sm:$0xff] }
 0x1f3   : > { %v1172_v52 = vpop.permute.xlu0 %1171 }
 0x1f4   : > { %v1326_v13 = vsub.f32 %v4292_v31, %v1172_v52  ;;  %v1327_v46 = vsub.f32 %v4294_v32, %v1172_v52  ;;  %v1106_v31 = vsub.f32 %v4520_v44, %v4527_v57  ;;  %v4673_v32 = vpop.permute.xlu1 %2017  ;;  %v851_v52 = vpop.f32.mrf.mxu1 }
 0x1f6   : > { %3689 = vpow2.f32 %v1326_v13 }
 0x1f7   : > { %1033 = vmax.xlane.f32.xlu2 %v1032_v12  ;;  %3691 = vpow2.f32 %v1327_v46  ;;  %v3464_v12 = vld [vmem:[%s4248_s16 + $0x78] sm:$0xff] }
 0x1f8   : > { %3693 = vpow2.f32 %v1107_v11 }
 0x1f9   : > { %3695 = vpow2.f32 %v1106_v31  ;;  %v4708_v31 = vld [vmem:[#allocation2 + $0x90] sm:$0xff] }
 0x1fa   : > { %5814 = vst [vmem:[#allocation46_spill] sm:$0xff] %v4708_v31 }
 0x1fc   : > { %v3690_v26 = vpop.eup %3689  ;;  %v853_v11 = vpop.f32.mrf.mxu1 }
 0x1fd   : > { %v3692_v17 = vpop.eup %3691  ;;  %v1677_v39 = vpack.c.bf16 %v3690_v26, %v3686_v45  ;;  %v1105_v45 = vsub.f32 %v4512_v34, %v4515_v40 }
 0x1fe   : > { %v1678_v20 = vpack.c.bf16 %v3692_v17, %v3688_v7  ;;  %v4665_v47 = vadd.f32 %v3692_v17, %v3690_v26  ;;  %v3463_v7 = vld [vmem:[%s4248_s16 + $0x70] sm:$0xff] }
 0x1ff   : > { %1813 = vmatmul.bf16.vlgmr.msra.gmra.mxu2 %v1677_v39  ;;  %v4678_v39 = vpop.eup %3693  ;;  %3697 = vpow2.f32 %v1105_v45  ;;  %776 = vmatmul.bf16.gmra.mxu0 %v3463_v7 }
 0x200   : > { %1902 = vmatmul.bf16.vlgmr.msra.gmra.mxu3 %v1678_v20  ;;  %5810 = vst [vmem:[#allocation42_spill] sm:$0xff] %v4678_v39  ;;  %865 = vmatmul.bf16.gmra.mxu1 %v3463_v7  ;;  %v4685_v44 = vpop.eup %3695  ;;  %v4698_v20 = vpop.permute.xlu0 %2027 }
 0x201   : > { %5811 = vst [vmem:[#allocation43_spill] sm:$0xff] %v4685_v44 }
 0x204   : > { %1191 = vperm.xlu1 %3674, %v4515_v40   ;;  %v856_v3 = vpop.f32.mrf.mxu1 }
 0x205   : > { %1206 = vperm.xlu0 %3673, %v4547_v18   ;;  %v4691_v40 = vpop.eup %3697  ;;  %v4721_v33 = vmul.f32 0.12751743, %v856_v3 }
 0x206   : > { %5812 = vst [vmem:[#allocation44_spill] sm:$0xff] %v4691_v40 }
 0x207   : > { %5816 = vst [vmem:[#allocation48_spill] sm:$0xff] %v4721_v33 }
 0x20c   : > { %1201 = vperm.xlu1 %3674, %v4536_v2   ;;  %v762_v2 = vpop.f32.mrf.mxu0 }
 0x20d   : > { %2052 = vperm.xlu0 %3673, %v4678_v39  }
 0x20f   : > { %1196 = vperm.xlu2 %3672, %v4527_v57   ;;  %v4696_v57 = vpop.permute.xlu2 %2022  ;;  %781 = vmatmul.bf16.gmra.mxu0 %v3464_v12 }
 0x210   : > { %5813 = vst [vmem:[#allocation45_spill] sm:$0xff] %v4696_v57  ;;  %870 = vmatmul.bf16.gmra.mxu1 %v3464_v12 }
 0x213   : > { %v1022_v17 = vpop.xlane.xlu1 %1021 }
 0x214   : > { %2047 = vperm.xlu1 %3674, %v4685_v44   ;;  %v4689_v34 = vmax.f32 %v4683_v62, %v1022_v17  ;;  %v764_v26 = vpop.f32.mrf.mxu0 }
 0x215   : > { %v4733_v3 = vmul.f32 0.12751743, %v764_v26  ;;  %v1108_v26 = vsub.f32 %v4540_v8, %v4547_v18  ;;  %v858_v18 = vpop.f32.mrf.mxu1 }
 0x216   : > { %2287 = vst.msk [vmem:[#allocation2 + $0x80] sm:$0xff] %vm313_vm0, %v4689_v34 }
 0x217   : > { %2042 = vperm.xlu2 %3672, %v4691_v40  }
 0x21c   : > { %v767_v27 = vpop.f32.mrf.mxu0 }
 0x221   : > { %v1025_v13 = vpop.xlane.xlu2 %1024 }
 0x222   : > { %v4704_v46 = vmax.f32 %v4700_v19, %v1025_v13 }
 0x224   : > { %2288 = vst.msk [vmem:[#allocation2 + $0x88] sm:$0xff] %vm313_vm0, %v4704_v46  ;;  %v769_v8 = vpop.f32.mrf.mxu0 }
 0x226   : > { %v1028_v45 = vpop.xlane.xlu0 %1027 }
 0x227   : > { %v4711_v7 = vmax.f32 %v4708_v31, %v1028_v45  ;;  %v4719_v45 = vmul.f32 0.12751743, %v767_v27  ;;  %v4731_v27 = vmul.f32 0.12751743, %v851_v52  ;;  %v1109_v52 = vsub.f32 %v4557_v50, %v4562_v1 }
 0x229   : > { %v1182_v17 = vpop.permute.xlu2 %1181  ;;  %2289 = vst.msk [vmem:[#allocation2 + $0x90] sm:$0xff] %vm313_vm0, %v4711_v7  ;;  %v1044_v39 = vmax.f32 %v4719_v45, %v4721_v33 }
 0x22a   : > { %v1330_v57 = vsub.f32 %v4305_v42, %v1182_v17  ;;  %v1331_v44 = vsub.f32 %v4307_v43, %v1182_v17  ;;  %5815 = vst [vmem:[#allocation47_spill] sm:$0xff] %v4719_v45 }
 0x22b   : > { %v1177_v12 = vpop.permute.xlu1 %1176  ;;  %5818 = vst [vmem:[#allocation50_spill] sm:$0xff] %v4731_v27 }
 0x22c   : > { %3699 = vpow2.f32 %v1330_v57  ;;  %v1328_v13 = vsub.f32 %v4299_v37, %v1177_v12  ;;  %v1329_v40 = vsub.f32 %v4301_v38, %v1177_v12  ;;  %v4729_v12 = vmul.f32 0.12751743, %v762_v2 }
 0x22d   : > { %3701 = vpow2.f32 %v1331_v44  ;;  %v1110_v2 = vsub.f32 %v4568_v6, %v4571_v23  ;;  %v4755_v6 = vld [vmem:[#allocation2 + $0x98] sm:$0xff] }
 0x22e   : > { %3703 = vpow2.f32 %v1328_v13  ;;  %5817 = vst [vmem:[#allocation49_spill] sm:$0xff] %v4729_v12  ;;  %v1038_v13 = vmax.f32 %v4729_v12, %v4731_v27 }
 0x22f   : > { %3705 = vpow2.f32 %v1329_v40  ;;  %v4735_v40 = vmul.f32 0.12751743, %v853_v11 }
 0x230   : > { %3707 = vpow2.f32 %v1110_v2 }
 0x231   : > { %5819 = vst [vmem:[#allocation51_spill] sm:$0xff] %v4735_v40  ;;  %3709 = vpow2.f32 %v1109_v52 }
 0x232   : > { %v3700_v42 = vpop.eup %3699  ;;  %3711 = vpow2.f32 %v1108_v26 }
 0x233   : > { %v3702_v43 = vpop.eup %3701  ;;  %v4751_v11 = vpop.permute.xlu1 %2032 }
 0x234   : > { %v3704_v17 = vpop.eup %3703  ;;  %v4725_v57 = vadd.f32 %v3702_v43, %v3700_v42  ;;  %5821 = vst [vmem:[#allocation53_spill] sm:$0xff] %v4751_v11 }
 0x235   : > { %v3706_v37 = vpop.eup %3705  ;;  %v1679_v31 = vpack.c.bf16 %v3700_v42, %v3704_v17  ;;  %v1041_v42 = vmax.f32 %v4733_v3, %v4735_v40 }
 0x236   : > { %v1680_v38 = vpack.c.bf16 %v3702_v43, %v3706_v37  ;;  %v4727_v44 = vadd.f32 %v3706_v37, %v3704_v17 }
 0x237   : > { %1818 = vmatmul.bf16.gmra.mxu2 %v1679_v31  ;;  %1045 = vmax.xlane.f32.xlu0 %v1044_v39  ;;  %v4744_v39 = vpop.eup %3707 }
 0x238   : > { %1907 = vmatmul.bf16.gmra.mxu3 %v1680_v38  ;;  %5820 = vst [vmem:[#allocation52_spill] sm:$0xff] %v4744_v39  ;;  %v4759_v43 = vpop.eup %3709 }
 0x239   : > { %v4757_v31 = vpop.permute.xlu0 %2037  ;;  %5822 = vst [vmem:[#allocation54_spill] sm:$0xff] %v4759_v43  ;;  %v4761_v17 = vpop.eup %3711 }
 0x23a   : > { %5823 = vst [vmem:[#allocation55_spill] sm:$0xff] %v4761_v17 }
 0x23c   : > { %v772_v2 = vpop.f32.mrf.mxu0  ;;  %v861_v52 = vpop.f32.mrf.mxu1 }
 0x23e   : > { %1039 = vmax.xlane.f32.xlu1 %v1038_v13 }
 0x240   : > { %1042 = vmax.xlane.f32.xlu2 %v1041_v42  ;;  %v4777_v42 = vld [vmem:[#allocation2 + $0xa0] sm:$0xff] }
 0x244   : > { %v774_v33 = vpop.f32.mrf.mxu0  ;;  %v863_v45 = vpop.f32.mrf.mxu1 }
 0x245   : > { %v4788_v12 = vmul.f32 0.12751743, %v774_v33 }
 0x247   : > { %5824 = vst [vmem:[#allocation56_spill] sm:$0xff] %v4788_v12 }
 0x24b   : > { %1221 = vperm.xlu0 %3673, %v4588_v24  }
 0x253   : > { %2067 = vperm.xlu0 %3673, %v4744_v39  }
 0x257   : > { %1216 = vperm.xlu1 %3674, %v4571_v23   ;;  %v4770_v23 = vld [vmem:[#allocation2 + $0xa8] sm:$0xff] }
 0x258   : > { %1211 = vperm.xlu2 %3672, %v4562_v1   ;;  %v1187_v1 = vpop.permute.xlu2 %1186 }
 0x259   : > { %v1333_v39 = vsub.f32 %v4314_v49, %v1187_v1 }
 0x25e   : > { %v1031_v50 = vpop.xlane.xlu1 %1030 }
 0x25f   : > { %v4764_v37 = vmax.f32 %v4755_v6, %v1031_v50  ;;  %2062 = vperm.xlu1 %3674, %v4759_v43   ;;  %v1332_v43 = vsub.f32 %v4312_v48, %v1187_v1  ;;  %v4807_v1 = vmul.f32 0.12751743, %v861_v52 }
 0x260   : > { %2057 = vperm.xlu2 %3672, %v4761_v17  }
 0x261   : > { %2290 = vst.msk [vmem:[#allocation2 + $0x98] sm:$0xff] %vm313_vm0, %v4764_v37 }
 0x262   : > { %5827 = vst [vmem:[#allocation59_spill] sm:$0xff] %v4807_v1 }
 0x264   : > { %v1037_v38 = vpop.xlane.xlu0 %1036 }
 0x265   : > { %v4773_v13 = vmax.f32 %v4770_v23, %v1037_v38 }
 0x267   : > { %2292 = vst.msk [vmem:[#allocation2 + $0xa8] sm:$0xff] %vm313_vm0, %v4773_v13 }
 0x26a   : > { %v1034_v26 = vpop.xlane.xlu2 %1033 }
 0x26b   : > { %v4780_v50 = vmax.f32 %v4777_v42, %v1034_v26  ;;  %v4790_v26 = vmul.f32 0.12751743, %v863_v45 }
 0x26d   : > { %2291 = vst.msk [vmem:[#allocation2 + $0xa0] sm:$0xff] %vm313_vm0, %v4780_v50 }
 0x26e   : > { %5825 = vst [vmem:[#allocation57_spill] sm:$0xff] %v4790_v26 }
 0x272   : > { %v1197_v11 = vpop.permute.xlu2 %1196 }
 0x273   : > { %v1336_v38 = vsub.f32 %v4324_v58, %v1197_v11  ;;  %v1337_v17 = vsub.f32 %v4326_v59, %v1197_v11  ;;  %v1053_v58 = vmax.f32 %v4788_v12, %v4790_v26  ;;  %v4814_v26 = vmul.f32 0.12751743, %v858_v18 }
 0x274   : > { %v1113_v18 = vsub.f32 %v4613_v35, %v4616_v25 }
 0x275   : > { %3713 = vpow2.f32 %v1336_v38  ;;  %5828 = vst [vmem:[#allocation60_spill] sm:$0xff] %v4814_v26 }
 0x276   : > { %3715 = vpow2.f32 %v1337_v17  ;;  %v1192_v27 = vpop.permute.xlu1 %1191 }
 0x277   : > { %3717 = vpow2.f32 %v1332_v43  ;;  %v1334_v40 = vsub.f32 %v4318_v53, %v1192_v27  ;;  %v1335_v48 = vsub.f32 %v4320_v54, %v1192_v27 }
 0x278   : > { %3719 = vpow2.f32 %v1333_v39 }
 0x279   : > { %3721 = vpow2.f32 %v1334_v40  ;;  %v4804_v40 = vmul.f32 0.12751743, %v772_v2  ;;  %v2175_v2 = vmul.f32 0.0, %v4673_v32 }
 0x27a   : > { %3723 = vpow2.f32 %v1335_v48 }
 0x27b   : > { %v3714_v59 = vpop.eup %3713  ;;  %5826 = vst [vmem:[#allocation58_spill] sm:$0xff] %v4804_v40  ;;  %v1050_v52 = vmax.f32 %v4804_v40, %v4807_v1 }
 0x27c   : > { %v3716_v49 = vpop.eup %3715 }
 0x27d   : > { %v4796_v11 = vpop.eup %3717  ;;  %v4798_v17 = vadd.f32 %v3716_v49, %v3714_v59  ;;  %1054 = vmax.xlane.f32.xlu0 %v1053_v58  ;;  %v4812_v58 = vmul.f32 0.12751743, %v769_v8 }
 0x27e   : > { %v4800_v33 = vpop.eup %3719  ;;  %v1202_v45 = vpop.permute.xlu1 %1201 }
 0x27f   : > { %v3722_v43 = vpop.eup %3721  ;;  %v1338_v53 = vsub.f32 %v4330_v63, %v1202_v45  ;;  %v1339_v54 = vsub.f32 %v4332_v0, %v1202_v45 }
 0x280   : > { %v3724_v27 = vpop.eup %3723  ;;  %v1681_v39 = vpack.c.bf16 %v3722_v43, %v4796_v11 }
 0x281   : > { %3725 = vpow2.f32 %v1338_v53  ;;  %v1682_v38 = vpack.c.bf16 %v3724_v27, %v4800_v33  ;;  %v4810_v48 = vadd.f32 %v3724_v27, %v3722_v43  ;;  %v1047_v43 = vmax.f32 %v4812_v58, %v4814_v26 }
 0x282   : > { %3727 = vpow2.f32 %v1339_v54  ;;  %1823 = vmatmul.bf16.gmra.mxu2 %v1681_v39  ;;  %v1814_v63 = vpop.f32.mrf.mxu2 }
 0x283   : > { %1912 = vmatmul.bf16.gmra.mxu3 %v1682_v38  ;;  %v1903_v0 = vpop.f32.mrf.mxu3  ;;  %3729 = vpow2.f32 %v1113_v18 }
 0x284   : > { %v1904_v45 = vadd.f32 %v1903_v0, %v1814_v63  ;;  %v1207_v63 = vpop.permute.xlu0 %1206  ;;  %v1111_v0 = vsub.f32 %v4583_v51, %v4588_v24  ;;  %v4850_v24 = vld [vmem:[#allocation2 + $0xc0] sm:$0xff] }
 0x286   : > { %v4821_v27 = vadd.f32 %v2175_v2, %v1904_v45  ;;  %v1112_v2 = vsub.f32 %v4596_v16, %v4604_v30  ;;  %3731 = vpow2.f32 %v1111_v0  ;;  %v4847_v51 = vpop.permute.xlu1 %2047 }
 0x287   : > { %v3726_v53 = vpop.eup %3725 }
 0x288   : > { %5829 = vst [vmem:[#allocation61_spill] sm:$0xff] %v4821_v27  ;;  %v3728_v54 = vpop.eup %3727  ;;  %v1683_v39 = vpack.c.bf16 %v3726_v53, %v3714_v59  ;;  %3733 = vpow2.f32 %v1112_v2  ;;  %v4839_v59 = vpop.f32.mrf.mxu0 }
 0x289   : > { %1051 = vmax.xlane.f32.xlu2 %v1050_v52  ;;  %1048 = vmax.xlane.f32.xlu1 %v1047_v43  ;;  %v4823_v8 = vadd.f32 %v3728_v54, %v3726_v53  ;;  %v1684_v32 = vpack.c.bf16 %v3728_v54, %v3716_v49  ;;  %v4828_v38 = vpop.eup %3729  ;;  %v4841_v49 = vpop.f32.mrf.mxu1  ;;  %v4860_v43 = vld [vmem:[#allocation2 + $0xb0] sm:$0xff] }
 0x28a   : > { %5830 = vst [vmem:[#allocation62_spill] sm:$0xff] %v4828_v38 }
 0x28b   : > { %v4869_v2 = vpop.f32.mrf.mxu3 }
 0x28c   : > { %v4837_v35 = vpop.permute.xlu0 %2052  ;;  %v4843_v45 = vpop.eup %3731  ;;  %5836 = vst [vmem:[#allocation68_spill] sm:$0xff] %v4869_v2 }
 0x28d   : > { %5831 = vst [vmem:[#allocation63_spill] sm:$0xff] %v4837_v35 }
 0x28e   : > { %5832 = vst [vmem:[#allocation64_spill] sm:$0xff] %v4843_v45  ;;  %v4845_v52 = vpop.eup %3733 }
 0x28f   : > { %5833 = vst [vmem:[#allocation65_spill] sm:$0xff] %v4845_v52 }
 0x290   : > { %v779_v53 = vpop.f32.mrf.mxu0 }
 0x291   : > { %1236 = vperm.xlu0 %3673, %v4628_v41   ;;  %v868_v54 = vpop.f32.mrf.mxu1 }
 0x292   : > { %1828 = vmatmul.bf16.gmra.mxu2 %v1683_v39  ;;  %v4862_v39 = vld [vmem:[#allocation2 + $0xb8] sm:$0xff] }
 0x293   : > { %1917 = vmatmul.bf16.gmra.mxu3 %v1684_v32  ;;  %v4864_v32 = vpop.f32.mrf.mxu2 }
 0x294   : > { %5835 = vst [vmem:[#allocation67_spill] sm:$0xff] %v4864_v32  ;;  %v1341_v32 = vsub.f32 %v4338_v5, %v1207_v63 }
 0x298   : > { %v782_v27 = vpop.f32.mrf.mxu0 }
 0x299   : > { %2082 = vperm.xlu0 %3673, %v4828_v38   ;;  %v4881_v1 = vmul.f32 0.12751743, %v782_v27 }
 0x2a1   : > { %1226 = vperm.xlu2 %3672, %v4604_v30   ;;  %v4853_v30 = vpop.permute.xlu2 %2042 }
 0x2a2   : > { %1231 = vperm.xlu1 %3674, %v4616_v25   ;;  %5834 = vst [vmem:[#allocation66_spill] sm:$0xff] %v4853_v30  ;;  %v1340_v30 = vsub.f32 %v4336_v4, %v1207_v63 }
 0x2a4   : > { %3735 = vpow2.f32 %v1340_v30 }
 0x2a5   : > { %3737 = vpow2.f32 %v1341_v32 }
 0x2a9   : > { %2072 = vperm.xlu2 %3672, %v4843_v45   ;;  %v2177_v45 = vmul.f32 0.0, %v4698_v20 }
 0x2aa   : > { %2077 = vperm.xlu1 %3674, %v4845_v52   ;;  %v1046_v16 = vpop.xlane.xlu0 %1045  ;;  %v871_v52 = vpop.f32.mrf.mxu1 }
 0x2ab   : > { %v4856_v25 = vmax.f32 %v4850_v24, %v1046_v16  ;;  %v4885_v26 = vmul.f32 0.12751743, %v871_v52  ;;  %v4893_v30 = vpop.eup %3735 }
 0x2ad   : > { %2295 = vst.msk [vmem:[#allocation2 + $0xc0] sm:$0xff] %vm313_vm0, %v4856_v25  ;;  %v1062_v27 = vmax.f32 %v4881_v1, %v4885_v26 }
 0x2b1   : > { %v1040_v18 = vpop.xlane.xlu1 %1039 }
 0x2b2   : > { %v4867_v0 = vmax.f32 %v4860_v43, %v1040_v18 }
 0x2b3   : > { %v1043_v35 = vpop.xlane.xlu2 %1042 }
 0x2b4   : > { %2293 = vst.msk [vmem:[#allocation2 + $0xb0] sm:$0xff] %vm313_vm0, %v4867_v0  ;;  %v4874_v16 = vmax.f32 %v4862_v39, %v1043_v35 }
 0x2b6   : > { %2294 = vst.msk [vmem:[#allocation2 + $0xb8] sm:$0xff] %vm313_vm0, %v4874_v16 }
 0x2ba   : > { %v1819_v18 = vpop.f32.mrf.mxu2 }
 0x2bb   : > { %v1908_v2 = vpop.f32.mrf.mxu3  ;;  %v1212_v12 = vpop.permute.xlu2 %1211 }
 0x2bc   : > { %v1909_v40 = vadd.f32 %v1908_v2, %v1819_v18  ;;  %v1342_v35 = vsub.f32 %v4342_v9, %v1212_v12  ;;  %v1343_v38 = vsub.f32 %v4344_v10, %v1212_v12  ;;  %v4895_v9 = vpop.eup %3737 }
 0x2bd   : > { %v1222_v4 = vpop.permute.xlu0 %1221 }
 0x2be   : > { %3739 = vpow2.f32 %v1342_v35  ;;  %v4887_v5 = vadd.f32 %v2177_v45, %v1909_v40  ;;  %v1346_v20 = vsub.f32 %v4363_v21, %v1222_v4  ;;  %v1347_v63 = vsub.f32 %v4365_v22, %v1222_v4 }
 0x2bf   : > { %3741 = vpow2.f32 %v1343_v38  ;;  %v4905_v35 = vmul.f32 0.12751743, %v779_v53  ;;  %v4907_v4 = vmul.f32 0.12751743, %v868_v54 }
 0x2c0   : > { %5837 = vst [vmem:[#allocation69_spill] sm:$0xff] %v4887_v5  ;;  %3743 = vpow2.f32 %v1346_v20  ;;  %v4911_v20 = vmul.f32 0.12751743, %v4839_v59  ;;  %v1116_v59 = vsub.f32 %v4683_v62, %v4689_v34  ;;  %v4936_v62 = vld [vmem:[#allocation2 + $0xd8] sm:$0xff] }
 0x2c1   : > { %3745 = vpow2.f32 %v1347_v63  ;;  %v4914_v63 = vmul.f32 0.12751743, %v4841_v49 }
 0x2c3   : > { %1063 = vmax.xlane.f32.xlu0 %v1062_v27  ;;  %v1059_v27 = vmax.f32 %v4905_v35, %v4907_v4 }
 0x2c4   : > { %v3740_v10 = vpop.eup %3739 }
 0x2c5   : > { %v3742_v12 = vpop.eup %3741  ;;  %v1685_v40 = vpack.c.bf16 %v3740_v10, %v4893_v30 }
 0x2c6   : > { %v1686_v38 = vpack.c.bf16 %v3742_v12, %v4895_v9  ;;  %v4899_v45 = vadd.f32 %v3742_v12, %v3740_v10  ;;  %v3744_v21 = vpop.eup %3743  ;;  %v1114_v12 = vsub.f32 %v4623_v60, %v4628_v41 }
 0x2c7   : > { %1833 = vmatmul.bf16.gmra.mxu2 %v1685_v40  ;;  %v3746_v22 = vpop.eup %3745  ;;  %v4930_v40 = vpop.permute.xlu0 %2067 }
 0x2c8   : > { %1922 = vmatmul.bf16.gmra.mxu3 %v1686_v38  ;;  %v4901_v32 = vadd.f32 %v3746_v22, %v3744_v21  ;;  %5838 = vst [vmem:[#allocation70_spill] sm:$0xff] %v4930_v40  ;;  %v1115_v38 = vsub.f32 %v4634_v56, %v4639_v55 }
 0x2c9   : > { %v1217_v52 = vpop.permute.xlu1 %1216 }
 0x2ca   : > { %v1344_v2 = vsub.f32 %v4348_v14, %v1217_v52  ;;  %v1345_v18 = vsub.f32 %v4350_v15, %v1217_v52  ;;  %v1056_v15 = vmax.f32 %v4911_v20, %v4914_v63  ;;  %v4946_v52 = vpop.permute.xlu2 %2057 }
 0x2cb   : > { %1517 = vadd.xlane.f32.xlu0 %v4653_v61  ;;  %5839 = vst [vmem:[#allocation71_spill] sm:$0xff] %v4946_v52 }
 0x2cc   : > { %3747 = vpow2.f32 %v1344_v2 }
 0x2cd   : > { %3749 = vpow2.f32 %v1345_v18 }
 0x2ce   : > { %3751 = vpow2.f32 %v1116_v59 }
 0x2cf   : > { %3753 = vpow2.f32 %v1114_v12 }
 0x2d0   : > { %3755 = vpow2.f32 %v1115_v38 }
 0x2d1   : > { %v4948_v56 = vpop.permute.xlu1 %2062 }
 0x2d2   : > { %v3748_v14 = vpop.eup %3747  ;;  %1060 = vmax.xlane.f32.xlu2 %v1059_v27  ;;  %5840 = vst [vmem:[#allocation72_spill] sm:$0xff] %v4948_v56  ;;  %v4957_v27 = vpop.f32.mrf.mxu2 }
 0x2d3   : > { %v3750_v53 = vpop.eup %3749  ;;  %v1687_v61 = vpack.c.bf16 %v3744_v21, %v3748_v14  ;;  %5841 = vst [vmem:[#allocation73_spill] sm:$0xff] %v4957_v27  ;;  %v5859_v27 = vld [vmem:[#allocation31_spill] sm:$0xff] }
 0x2d4   : > { %1057 = vmax.xlane.f32.xlu1 %v1056_v15  ;;  %v4920_v54 = vadd.f32 %v3750_v53, %v3748_v14  ;;  %v1688_v10 = vpack.c.bf16 %v3746_v22, %v3750_v53  ;;  %v4925_v49 = vpop.eup %3751  ;;  %v4965_v53 = vpop.f32.mrf.mxu3 }
 0x2d5   : > { %v4938_v21 = vpop.eup %3753  ;;  %5842 = vst [vmem:[#allocation74_spill] sm:$0xff] %v4965_v53 }
 0x2d6   : > { %v4944_v41 = vpop.eup %3755 }
 0x2d7   : > { %1838 = vmatmul.bf16.gmra.mxu2 %v1687_v61 }
 0x2d8   : > { %1927 = vmatmul.bf16.gmra.mxu3 %v1688_v10 }
 0x2df   : > { %1251 = vperm.xlu0 %3673, %v4704_v46  }
 0x2e7   : > { %2097 = vperm.xlu0 %3673, %v4925_v49  }
 0x2ea   : > { %1241 = vperm.xlu2 %3672, %v4639_v55   ;;  %v4953_v55 = vld [vmem:[#allocation2 + $0xd0] sm:$0xff] }
 0x2ed   : > { %1246 = vperm.xlu1 %3674, %v4689_v34   ;;  %v4955_v34 = vld [vmem:[#allocation2 + $0xc8] sm:$0xff] }
 0x2f0   : > { %v1055_v22 = vpop.xlane.xlu0 %1054 }
 0x2f1   : > { %v4942_v60 = vmax.f32 %v4936_v62, %v1055_v22  ;;  %v2179_v22 = vmul.f32 0.0, %v4757_v31 }
 0x2f2   : > { %2087 = vperm.xlu2 %3672, %v4938_v21  }
 0x2f3   : > { %2298 = vst.msk [vmem:[#allocation2 + $0xd8] sm:$0xff] %vm313_vm0, %v4942_v60 }
 0x2f5   : > { %2092 = vperm.xlu1 %3674, %v4944_v41  }
 0x2fc   : > { %v1052_v2 = vpop.xlane.xlu2 %1051  ;;  %v1049_v18 = vpop.xlane.xlu1 %1048 }
 0x2fd   : > { %v4960_v14 = vmax.f32 %v4953_v55, %v1052_v2  ;;  %v4963_v15 = vmax.f32 %v4955_v34, %v1049_v18 }
 0x2ff   : > { %2297 = vst.msk [vmem:[#allocation2 + $0xd0] sm:$0xff] %vm313_vm0, %v4960_v14 }
 0x300   : > { %2296 = vst.msk [vmem:[#allocation2 + $0xc8] sm:$0xff] %vm313_vm0, %v4963_v15 }
 0x304   : > { %v1227_v61 = vpop.permute.xlu2 %1226 }
 0x305   : > { %v1348_v10 = vsub.f32 %v4377_v28, %v1227_v61  ;;  %v1824_v59 = vpop.f32.mrf.mxu2  ;;  %v1349_v12 = vsub.f32 %v4379_v29, %v1227_v61  ;;  %v1528_v28 = vadd.f32 %v4800_v33, %v4796_v11  ;;  %v784_v61 = vpop.f32.mrf.mxu0 }
 0x306   : > { %v1913_v38 = vpop.f32.mrf.mxu3 }
 0x307   : > { %v1914_v2 = vadd.f32 %v1913_v38, %v1824_v59  ;;  %3757 = vpow2.f32 %v1348_v10  ;;  %v5846_v10 = vld [vmem:[#allocation20_spill] sm:$0xff] }
 0x308   : > { %3759 = vpow2.f32 %v1349_v12  ;;  %v873_v12 = vpop.f32.mrf.mxu1 }
 0x309   : > { %v4974_v18 = vadd.f32 %v2179_v22, %v1914_v2  ;;  %v2181_v2 = vmul.f32 0.0, %v4847_v51  ;;  %v4989_v11 = vmul.f32 0.12751743, %v873_v12  ;;  %v5852_v12 = vld [vmem:[#allocation25_spill] sm:$0xff] }
 0x30b   : > { %5843 = vst [vmem:[#allocation75_spill] sm:$0xff] %v4974_v18 }
 0x30d   : > { %v4976_v40 = vpop.f32.mrf.mxu2  ;;  %v3758_v52 = vpop.eup %3757 }
 0x30e   : > { %5844 = vst [vmem:[#allocation76_spill] sm:$0xff] %v4976_v40  ;;  %v4978_v56 = vpop.f32.mrf.mxu3  ;;  %v3760_v5 = vpop.eup %3759 }
 0x30f   : > { %5845 = vst [vmem:[#allocation77_spill] sm:$0xff] %v4978_v56  ;;  %v4982_v53 = vadd.f32 %v3760_v5, %v3758_v52  ;;  %v4987_v56 = vmul.f32 0.12751743, %v784_v61  ;;  %v1119_v61 = vsub.f32 %v4755_v6, %v4764_v37 }
 0x311   : > { %1529 = vadd.xlane.f32.xlu0 %v1528_v28 }
 0x314   : > { %v1232_v29 = vpop.permute.xlu1 %1231 }
 0x315   : > { %v1350_v31 = vsub.f32 %v4391_v36, %v1232_v29  ;;  %v1351_v59 = vsub.f32 %v5846_v10, %v1232_v29  ;;  %v1829_v38 = vpop.f32.mrf.mxu2  ;;  %v1065_v36 = vmax.f32 %v4987_v56, %v4989_v11 }
 0x316   : > { %v1918_v22 = vpop.f32.mrf.mxu3 }
 0x317   : > { %3761 = vpow2.f32 %v1350_v31  ;;  %v1919_v18 = vadd.f32 %v1918_v22, %v1829_v38  ;;  %v1237_v31 = vpop.permute.xlu0 %1236  ;;  %v5850_v38 = vld [vmem:[#allocation46_spill] sm:$0xff] }
 0x318   : > { %3763 = vpow2.f32 %v1351_v59 }
 0x319   : > { %v4991_v33 = vadd.f32 %v2181_v2, %v1919_v18  ;;  %3765 = vpow2.f32 %v1119_v61  ;;  %v5031_v61 = vld [vmem:[#allocation2 + $0xe0] sm:$0xff] }
 0x31b   : > { %5847 = vst [vmem:[#allocation20_spill] sm:$0xff] %v4991_v33  ;;  %1520 = vadd.xlane.f32.xlu2 %v4665_v47 }
 0x31c   : > { %v5025_v2 = vpop.permute.xlu1 %2077 }
 0x31d   : > { %v3762_v28 = vpop.eup %3761 }
 0x31e   : > { %v3764_v29 = vpop.eup %3763  ;;  %v1689_v10 = vpack.c.bf16 %v3762_v28, %v3758_v52 }
 0x31f   : > { %1066 = vmax.xlane.f32.xlu1 %v1065_v36  ;;  %v1690_v40 = vpack.c.bf16 %v3764_v29, %v3760_v5  ;;  %v4996_v51 = vadd.f32 %v3764_v29, %v3762_v28  ;;  %v5002_v47 = vpop.eup %3765  ;;  %v5005_v52 = vpop.permute.xlu0 %2082  ;;  %v1117_v5 = vsub.f32 %v4700_v19, %v4704_v46  ;;  %v1118_v19 = vsub.f32 %v5850_v38, %v4711_v7  ;;  %v5029_v29 = vld [vmem:[#allocation2 + $0xe8] sm:$0xff] }
 0x320   : > { %1843 = vmatmul.bf16.gmra.mxu2 %v1689_v10  ;;  %5848 = vst [vmem:[#allocation78_spill] sm:$0xff] %v5005_v52  ;;  %v5022_v46 = vpop.permute.xlu2 %2072 }
 0x321   : > { %1932 = vmatmul.bf16.gmra.mxu3 %v1690_v40  ;;  %3767 = vpow2.f32 %v1117_v5  ;;  %v5010_v40 = vld [vmem:[#allocation2 + $0xf0] sm:$0xff]  ;;  %5851 = vst [vmem:[#allocation46_spill] sm:$0xff] %v5022_v46 }
 0x322   : > { %3769 = vpow2.f32 %v1118_v19  ;;  %v5855_v19 = vld [vmem:[#allocation22_spill] sm:$0xff] }
 0x323   : > { %v5858_v46 = vld [vmem:[#allocation30_spill] sm:$0xff] }
 0x325   : > { %1266 = vperm.xlu0 %3673, %v4780_v50  }
 0x327   : > { %1523 = vadd.xlane.f32.xlu1 %v4727_v44  ;;  %v5015_v59 = vpop.eup %3767  ;;  %v1452_v44 = vld [vmem:[#allocation3] sm:$0xff] }
 0x328   : > { %5849 = vst [vmem:[#allocation79_spill] sm:$0xff] %v5015_v59  ;;  %v1484_v22 = vmul.f32 %v5852_v12, %v1452_v44  ;;  %v5036_v5 = vpop.eup %3769  ;;  %v1353_v12 = vsub.f32 %v5855_v19, %v1237_v31 }
 0x329   : > { %5853 = vst [vmem:[#allocation25_spill] sm:$0xff] %v5036_v5 }
 0x32d   : > { %2112 = vperm.xlu0 %3673, %v5002_v47  }
 0x333   : > { %1256 = vperm.xlu2 %3672, %v4711_v7  }
 0x336   : > { %v1064_v6 = vpop.xlane.xlu0 %1063 }
 0x337   : > { %v5013_v18 = vmax.f32 %v5010_v40, %v1064_v6 }
 0x339   : > { %2301 = vst.msk [vmem:[#allocation2 + $0xf0] sm:$0xff] %vm313_vm0, %v5013_v18 }
 0x33b   : > { %2102 = vperm.xlu2 %3672, %v5015_v59  }
 0x33e   : > { %v1518_v28 = vpop.xlane.xlu0 %1517 }
 0x33f   : > { %v1612_v36 = vadd.f32 %v1518_v28, %v1484_v22  ;;  %v5856_v28 = vld [vmem:[#allocation24_spill] sm:$0xff] }
 0x340   : > { %1261 = vperm.xlu1 %3674, %v4764_v37   ;;  %v5854_v37 = vld [vmem:[#allocation21_spill] sm:$0xff] }
 0x341   : > { %1645 = vst.msk [vmem:[#allocation3] sm:$0xff] %vm313_vm0, %v1612_v36  ;;  %v1352_v38 = vsub.f32 %v5854_v37, %v1237_v31 }
 0x343   : > { %3771 = vpow2.f32 %v1352_v38 }
 0x344   : > { %3773 = vpow2.f32 %v1353_v12 }
 0x345   : > { %v1061_v10 = vpop.xlane.xlu2 %1060 }
 0x346   : > { %v5034_v7 = vmax.f32 %v5029_v29, %v1061_v10  ;;  %v5857_v10 = vld [vmem:[#allocation23_spill] sm:$0xff] }
 0x347   : > { %v1058_v6 = vpop.xlane.xlu1 %1057 }
 0x348   : > { %2300 = vst.msk [vmem:[#allocation2 + $0xe8] sm:$0xff] %vm313_vm0, %v5034_v7  ;;  %v5041_v44 = vmax.f32 %v5031_v61, %v1058_v6  ;;  %2107 = vperm.xlu1 %3674, %v5036_v5  }
 0x349   : > { %v5052_v37 = vpop.eup %3771 }
 0x34a   : > { %2299 = vst.msk [vmem:[#allocation2 + $0xe0] sm:$0xff] %vm313_vm0, %v5041_v44  ;;  %v5054_v59 = vpop.eup %3773 }
 0x34d   : > { %v1242_v22 = vpop.permute.xlu2 %1241 }
 0x34e   : > { %v1354_v36 = vsub.f32 %v5856_v28, %v1242_v22  ;;  %v1355_v52 = vsub.f32 %v5857_v10, %v1242_v22  ;;  %v5861_v10 = vld [vmem:[#allocation29_spill] sm:$0xff] }
 0x350   : > { %3775 = vpow2.f32 %v1354_v36  ;;  %v5860_v36 = vld [vmem:[#allocation28_spill] sm:$0xff] }
 0x351   : > { %3777 = vpow2.f32 %v1355_v52  ;;  %v1252_v6 = vpop.permute.xlu0 %1251 }
 0x352   : > { %v1358_v33 = vsub.f32 %v5858_v46, %v1252_v6  ;;  %v1359_v5 = vsub.f32 %v5859_v27, %v1252_v6 }
 0x354   : > { %3779 = vpow2.f32 %v1358_v33 }
 0x355   : > { %3781 = vpow2.f32 %v1359_v5 }
 0x356   : > { %v3776_v31 = vpop.eup %3775 }
 0x357   : > { %v3778_v38 = vpop.eup %3777  ;;  %v1691_v19 = vpack.c.bf16 %v3776_v31, %v5052_v37  ;;  %1538 = vadd.xlane.f32.xlu0 %v4823_v8 }
 0x358   : > { %v1692_v12 = vpack.c.bf16 %v3778_v38, %v5054_v59  ;;  %v5059_v52 = vadd.f32 %v3778_v38, %v3776_v31  ;;  %v1122_v31 = vsub.f32 %v4860_v43, %v4867_v0  ;;  %v1120_v43 = vsub.f32 %v4777_v42, %v4780_v50 }
 0x359   : > { %1848 = vmatmul.bf16.gmra.mxu2 %v1691_v19 }
 0x35a   : > { %1937 = vmatmul.bf16.gmra.mxu3 %v1692_v12  ;;  %v3780_v46 = vpop.eup %3779 }
 0x35b   : > { %v3782_v27 = vpop.eup %3781 }
 0x35c   : > { %v5061_v22 = vadd.f32 %v3782_v27, %v3780_v46 }
 0x35f   : > { %v1247_v28 = vpop.permute.xlu1 %1246 }
 0x360   : > { %v1356_v33 = vsub.f32 %v5860_v36, %v1247_v28  ;;  %v1357_v5 = vsub.f32 %v5861_v10, %v1247_v28  ;;  %v5077_v36 = vpop.f32.mrf.mxu3 }
 0x361   : > { %5863 = vst [vmem:[#allocation22_spill] sm:$0xff] %v5077_v36 }
 0x362   : > { %3783 = vpow2.f32 %v1356_v33 }
 0x363   : > { %3785 = vpow2.f32 %v1357_v5  ;;  %v5867_v5 = vld [vmem:[#allocation35_spill] sm:$0xff] }
 0x364   : > { %1526 = vadd.xlane.f32.xlu2 %v4725_v57  ;;  %3787 = vpow2.f32 %v1122_v31  ;;  %v5075_v57 = vpop.f32.mrf.mxu2  ;;  %v5092_v31 = vpop.permute.xlu2 %2087 }
 0x365   : > { %5862 = vst [vmem:[#allocation21_spill] sm:$0xff] %v5075_v57  ;;  %3789 = vpow2.f32 %v1120_v43 }
 0x367   : > { %v5101_v43 = vpop.permute.xlu1 %2092 }
 0x368   : > { %v3784_v8 = vpop.eup %3783  ;;  %v5086_v33 = vpop.f32.mrf.mxu3  ;;  %5870 = vst [vmem:[#allocation29_spill] sm:$0xff] %v5101_v43 }
 0x369   : > { %v3786_v6 = vpop.eup %3785  ;;  %v1693_v38 = vpack.c.bf16 %v3780_v46, %v3784_v8  ;;  %5866 = vst [vmem:[#allocation30_spill] sm:$0xff] %v5086_v33 }
 0x36a   : > { %v1694_v19 = vpack.c.bf16 %v3782_v27, %v3786_v6  ;;  %v5068_v12 = vadd.f32 %v3786_v6, %v3784_v8  ;;  %v5072_v28 = vpop.eup %3787  ;;  %v5084_v27 = vpop.permute.xlu0 %2097 }
 0x36b   : > { %1853 = vmatmul.bf16.gmra.mxu2 %v1693_v38  ;;  %1281 = vperm.xlu0 %3673, %v4874_v16   ;;  %5865 = vst [vmem:[#allocation23_spill] sm:$0xff] %v5084_v27  ;;  %v5088_v10 = vpop.eup %3789  ;;  %v1121_v38 = vsub.f32 %v4770_v23, %v4773_v13  ;;  %v1453_v27 = vld [vmem:[#allocation3 + $0x8] sm:$0xff] }
 0x36c   : > { %1942 = vmatmul.bf16.gmra.mxu3 %v1694_v19  ;;  %v5082_v46 = vpop.f32.mrf.mxu2 }
 0x36d   : > { %5864 = vst [vmem:[#allocation24_spill] sm:$0xff] %v5082_v46  ;;  %3791 = vpow2.f32 %v1121_v38 }
 0x370   : > { %v5098_v19 = vpop.f32.mrf.mxu3 }
 0x371   : > { %5869 = vst [vmem:[#allocation28_spill] sm:$0xff] %v5098_v19 }
 0x372   : > { %1532 = vadd.xlane.f32.xlu1 %v4810_v48  ;;  %v1456_v48 = vld [vmem:[#allocation3 + $0x20] sm:$0xff] }
 0x373   : > { %2127 = vperm.xlu0 %3673, %v5072_v28   ;;  %v1488_v8 = vmul.f32 %v5867_v5, %v1456_v48  ;;  %v5871_v48 = vld [vmem:[#allocation26_spill] sm:$0xff]  ;;  %v5110_v23 = vpop.eup %3791 }
 0x374   : > { %v5094_v50 = vpop.f32.mrf.mxu2  ;;  %v1485_v5 = vmul.f32 %v5871_v48, %v1453_v27  ;;  %5873 = vst [vmem:[#allocation26_spill] sm:$0xff] %v5110_v23  ;;  %v1454_v27 = vld [vmem:[#allocation3 + $0x10] sm:$0xff]  ;;  %v5876_v48 = vld [vmem:[#allocation33_spill] sm:$0xff] }
 0x375   : > { %5868 = vst [vmem:[#allocation31_spill] sm:$0xff] %v5094_v50 }
 0x37c   : > { %1271 = vperm.xlu2 %3672, %v4773_v13   ;;  %v5112_v13 = vpop.f32.mrf.mxu3 }
 0x37d   : > { %5874 = vst [vmem:[#allocation80_spill] sm:$0xff] %v5112_v13 }
 0x384   : > { %2117 = vperm.xlu2 %3672, %v5088_v10   ;;  %v1530_v6 = vpop.xlane.xlu0 %1529  ;;  %v5125_v50 = vpop.f32.mrf.mxu3 }
 0x385   : > { %v1616_v42 = vadd.f32 %v1530_v6, %v1488_v8  ;;  %v5105_v8 = vld [vmem:[#allocation2 + $0xf8] sm:$0xff]  ;;  %v5107_v6 = vpop.f32.mrf.mxu2 }
 0x386   : > { %5872 = vst [vmem:[#allocation35_spill] sm:$0xff] %v5107_v6 }
 0x387   : > { %1649 = vst.msk [vmem:[#allocation3 + $0x20] sm:$0xff] %vm313_vm0, %v1616_v42 }
 0x38b   : > { %1276 = vperm.xlu1 %3674, %v4867_v0  }
 0x38d   : > { %v5123_v19 = vpop.f32.mrf.mxu2 }
 0x38e   : > { %v1521_v33 = vpop.xlane.xlu2 %1520 }
 0x38f   : > { %v1613_v46 = vadd.f32 %v1521_v33, %v1485_v5  ;;  %v5875_v33 = vld [vmem:[#allocation32_spill] sm:$0xff] }
 0x390   : > { %5878 = vst [vmem:[#allocation32_spill] sm:$0xff] %v5125_v50 }
 0x391   : > { %1646 = vst.msk [vmem:[#allocation3 + $0x8] sm:$0xff] %vm313_vm0, %v1613_v46  ;;  %v5877_v46 = vld [vmem:[#allocation27_spill] sm:$0xff] }
 0x392   : > { %v1067_v42 = vpop.xlane.xlu1 %1066  ;;  %v1486_v6 = vmul.f32 %v5877_v46, %v1454_v27  ;;  %v5880_v46 = vld [vmem:[#allocation37_spill] sm:$0xff] }
 0x393   : > { %v5115_v43 = vmax.f32 %v5105_v8, %v1067_v42  ;;  %2122 = vperm.xlu1 %3674, %v5110_v23  }
 0x395   : > { %2302 = vst.msk [vmem:[#allocation2 + $0xf8] sm:$0xff] %vm313_vm0, %v5115_v43 }
 0x396   : > { %v1257_v0 = vpop.permute.xlu2 %1256 }
 0x397   : > { %v1360_v38 = vsub.f32 %v5875_v33, %v1257_v0  ;;  %v1361_v5 = vsub.f32 %v5876_v48, %v1257_v0 }
 0x399   : > { %3793 = vpow2.f32 %v1360_v38  ;;  %v2187_v38 = vmul.f32 0.0, %v5025_v2  ;;  %v1267_v2 = vpop.permute.xlu0 %1266 }
 0x39a   : > { %3795 = vpow2.f32 %v1361_v5  ;;  %v1524_v13 = vpop.xlane.xlu1 %1523 }
 0x39b   : > { %v1614_v42 = vadd.f32 %v1524_v13, %v1486_v6  ;;  %v1125_v6 = vsub.f32 %v4955_v34, %v4963_v15 }
 0x39d   : > { %1647 = vst.msk [vmem:[#allocation3 + $0x10] sm:$0xff] %vm313_vm0, %v1614_v42  ;;  %1547 = vadd.xlane.f32.xlu0 %v4920_v54  ;;  %3797 = vpow2.f32 %v1125_v6  ;;  %v5879_v54 = vld [vmem:[#allocation36_spill] sm:$0xff]  ;;  %v1123_v6 = vsub.f32 %v4862_v39, %v4874_v16  ;;  %v1124_v39 = vsub.f32 %v4850_v24, %v4856_v25  ;;  %v1455_v16 = vld [vmem:[#allocation3 + $0x18] sm:$0xff] }
 0x39f   : > { %v3794_v36 = vpop.eup %3793 }
 0x3a0   : > { %v3796_v57 = vpop.eup %3795 }
 0x3a1   : > { %v5129_v23 = vadd.f32 %v3796_v57, %v3794_v36 }
 0x3a3   : > { %v1844_v33 = vpop.f32.mrf.mxu2  ;;  %v5140_v50 = vpop.eup %3797 }
 0x3a4   : > { %v1933_v0 = vpop.f32.mrf.mxu3 }
 0x3a5   : > { %v1934_v27 = vadd.f32 %v1933_v0, %v1844_v33 }
 0x3a7   : > { %v5132_v48 = vadd.f32 %v2187_v38, %v1934_v27 }
 0x3ad   : > { %1535 = vadd.xlane.f32.xlu2 %v4798_v17  ;;  %v1540_v17 = vadd.f32 %v4895_v9, %v4893_v30 }
 0x3b1   : > { %1296 = vperm.xlu0 %3673, %v4960_v14  }
 0x3b2   : > { %v1262_v13 = vpop.permute.xlu1 %1261 }
 0x3b3   : > { %v1362_v5 = vsub.f32 %v5879_v54, %v1262_v13  ;;  %v1363_v42 = vsub.f32 %v5880_v46, %v1262_v13  ;;  %v5149_v13 = vpop.permute.xlu0 %2112  ;;  %v1459_v54 = vld [vmem:[#allocation3 + $0x38] sm:$0xff] }
 0x3b4   : > { %5881 = vst [vmem:[#allocation33_spill] sm:$0xff] %v5149_v13  ;;  %v2189_v13 = vmul.f32 0.0, %v5092_v31  ;;  %v5891_v31 = vld [vmem:[#allocation44_spill] sm:$0xff] }
 0x3b5   : > { %3799 = vpow2.f32 %v1362_v5  ;;  %v5882_v5 = vld [vmem:[#allocation42_spill] sm:$0xff] }
 0x3b6   : > { %3801 = vpow2.f32 %v1363_v42  ;;  %v1491_v46 = vmul.f32 %v5882_v5, %v1459_v54  ;;  %v5161_v42 = vpop.f32.mrf.mxu2  ;;  %v5886_v5 = vld [vmem:[#allocation41_spill] sm:$0xff] }
 0x3b7   : > { %3803 = vpow2.f32 %v1123_v6  ;;  %v5885_v6 = vld [vmem:[#allocation40_spill] sm:$0xff] }
 0x3b8   : > { %3805 = vpow2.f32 %v1124_v39  ;;  %v1364_v54 = vsub.f32 %v5885_v6, %v1267_v2 }
 0x3b9   : > { %2142 = vperm.xlu0 %3673, %v5140_v50  }
 0x3ba   : > { %3807 = vpow2.f32 %v1364_v54 }
 0x3bb   : > { %v3800_v33 = vpop.eup %3799 }
 0x3bc   : > { %v3802_v34 = vpop.eup %3801  ;;  %v1695_v0 = vpack.c.bf16 %v3800_v33, %v3794_v36 }
 0x3bd   : > { %1541 = vadd.xlane.f32.xlu1 %v1540_v17  ;;  %v1696_v38 = vpack.c.bf16 %v3802_v34, %v3796_v57  ;;  %v5145_v27 = vadd.f32 %v3802_v34, %v3800_v33  ;;  %v5153_v9 = vpop.eup %3803  ;;  %v5157_v57 = vpop.permute.xlu2 %2102  ;;  %v5884_v17 = vld [vmem:[#allocation34_spill] sm:$0xff] }
 0x3be   : > { %1858 = vmatmul.bf16.gmra.mxu2 %v1695_v0  ;;  %5883 = vst [vmem:[#allocation27_spill] sm:$0xff] %v5157_v57  ;;  %v5163_v33 = vpop.f32.mrf.mxu3  ;;  %v1487_v34 = vmul.f32 %v5884_v17, %v1455_v16  ;;  %v5170_v24 = vpop.eup %3805  ;;  %v5888_v16 = vld [vmem:[#allocation51_spill] sm:$0xff] }
 0x3bf   : > { %1947 = vmatmul.bf16.gmra.mxu3 %v1696_v38 }
 0x3c5   : > { %1286 = vperm.xlu2 %3672, %v4856_v25   ;;  %v5172_v25 = vpop.permute.xlu1 %2107 }
 0x3c6   : > { %5887 = vst [vmem:[#allocation36_spill] sm:$0xff] %v5172_v25  ;;  %v1457_v25 = vld [vmem:[#allocation3 + $0x28] sm:$0xff] }
 0x3c7   : > { %v1489_v54 = vmul.f32 %v5891_v31, %v1457_v25  ;;  %v1128_v25 = vsub.f32 %v5031_v61, %v5041_v44 }
 0x3ca   : > { %v1539_v30 = vpop.xlane.xlu0 %1538 }
 0x3cb   : > { %v1619_v36 = vadd.f32 %v1539_v30, %v1491_v46  ;;  %v1365_v46 = vsub.f32 %v5886_v5, %v1267_v2  ;;  %v5889_v2 = vld [vmem:[#allocation38_spill] sm:$0xff] }
 0x3cd   : > { %2132 = vperm.xlu2 %3672, %v5153_v9   ;;  %1652 = vst.msk [vmem:[#allocation3 + $0x38] sm:$0xff] %vm313_vm0, %v1619_v36  ;;  %3809 = vpow2.f32 %v1365_v46 }
 0x3d6   : > { %1291 = vperm.xlu1 %3674, %v4963_v15  }
 0x3d7   : > { %v1527_v0 = vpop.xlane.xlu2 %1526 }
 0x3d8   : > { %v1615_v38 = vadd.f32 %v1527_v0, %v1487_v34 }
 0x3da   : > { %1648 = vst.msk [vmem:[#allocation3 + $0x18] sm:$0xff] %vm313_vm0, %v1615_v38  ;;  %v5890_v38 = vld [vmem:[#allocation39_spill] sm:$0xff] }
 0x3dc   : > { %v1849_v30 = vpop.f32.mrf.mxu2 }
 0x3dd   : > { %v1938_v36 = vpop.f32.mrf.mxu3  ;;  %v1282_v57 = vpop.permute.xlu0 %1281 }
 0x3de   : > { %v1939_v15 = vadd.f32 %v1938_v36, %v1849_v30  ;;  %2137 = vperm.xlu1 %3674, %v5170_v24   ;;  %v1370_v39 = vsub.f32 %v4733_v3, %v1282_v57  ;;  %v1371_v17 = vsub.f32 %v5888_v16, %v1282_v57  ;;  %v5184_v3 = vpop.eup %3807 }
 0x3df   : > { %v1272_v34 = vpop.permute.xlu2 %1271  ;;  %v5186_v30 = vpop.eup %3809 }
 0x3e0   : > { %v1366_v0 = vsub.f32 %v5889_v2, %v1272_v34  ;;  %v1367_v6 = vsub.f32 %v5890_v38, %v1272_v34  ;;  %v5180_v5 = vadd.f32 %v2189_v13, %v1939_v15  ;;  %3811 = vpow2.f32 %v1370_v39 }
 0x3e1   : > { %3813 = vpow2.f32 %v1371_v17 }
 0x3e2   : > { %3815 = vpow2.f32 %v1366_v0  ;;  %v5892_v0 = vld [vmem:[#allocation49_spill] sm:$0xff] }
 0x3e3   : > { %3817 = vpow2.f32 %v1367_v6  ;;  %1556 = vadd.xlane.f32.xlu0 %v4996_v51  ;;  %v5893_v6 = vld [vmem:[#allocation50_spill] sm:$0xff] }
 0x3e4   : > { %3819 = vpow2.f32 %v1128_v25  ;;  %v5894_v25 = vld [vmem:[#allocation52_spill] sm:$0xff] }
 0x3e5   : > { %v1533_v57 = vpop.xlane.xlu1 %1532 }
 0x3e6   : > { %v1617_v46 = vadd.f32 %v1533_v57, %v1489_v54  ;;  %v3812_v36 = vpop.eup %3811 }
 0x3e7   : > { %v3814_v16 = vpop.eup %3813 }
 0x3e8   : > { %1650 = vst.msk [vmem:[#allocation3 + $0x28] sm:$0xff] %vm313_vm0, %v1617_v46  ;;  %v3816_v13 = vpop.eup %3815  ;;  %v5189_v15 = vadd.f32 %v3814_v16, %v3812_v36 }
 0x3e9   : > { %v3818_v39 = vpop.eup %3817  ;;  %v1697_v17 = vpack.c.bf16 %v3816_v13, %v5184_v3 }
 0x3ea   : > { %v1698_v51 = vpack.c.bf16 %v3818_v39, %v5186_v30  ;;  %v5193_v34 = vadd.f32 %v3818_v39, %v3816_v13  ;;  %v5201_v54 = vpop.eup %3819  ;;  %v5207_v39 = vpop.permute.xlu0 %2127 }
 0x3eb   : > { %1863 = vmatmul.bf16.gmra.mxu2 %v1697_v17  ;;  %v1126_v17 = vsub.f32 %v4953_v55, %v4960_v14  ;;  %v1127_v55 = vsub.f32 %v4936_v62, %v4942_v60  ;;  %v5895_v14 = vld [vmem:[#allocation43_spill] sm:$0xff]  ;;  %v1460_v62 = vld [vmem:[#allocation3 + $0x40] sm:$0xff] }
 0x3ec   : > { %1952 = vmatmul.bf16.gmra.mxu3 %v1698_v51  ;;  %v1462_v51 = vld [vmem:[#allocation3 + $0x50] sm:$0xff] }
 0x3f6   : > { %1544 = vadd.xlane.f32.xlu2 %v4899_v45 }
 0x3f7   : > { %1311 = vperm.xlu0 %3673, %v5034_v7  }
 0x3fd   : > { %v1277_v2 = vpop.permute.xlu1 %1276 }
 0x3fe   : > { %v1368_v38 = vsub.f32 %v5892_v0, %v1277_v2  ;;  %v1369_v31 = vsub.f32 %v5893_v6, %v1277_v2  ;;  %v1494_v2 = vmul.f32 %v5894_v25, %v1462_v51  ;;  %v5897_v25 = vld [vmem:[#allocation48_spill] sm:$0xff] }
 0x3ff   : > { %2157 = vperm.xlu0 %3673, %v5201_v54  }
 0x400   : > { %3821 = vpow2.f32 %v1368_v38  ;;  %v1458_v38 = vld [vmem:[#allocation3 + $0x30] sm:$0xff] }
 0x401   : > { %3823 = vpow2.f32 %v1369_v31  ;;  %v1490_v6 = vmul.f32 %v5895_v14, %v1458_v38  ;;  %v1131_v14 = vsub.f32 %v5105_v8, %v5115_v43 }
 0x402   : > { %3825 = vpow2.f32 %v1126_v17  ;;  %v5896_v17 = vld [vmem:[#allocation47_spill] sm:$0xff] }
 0x403   : > { %3827 = vpow2.f32 %v1127_v55 }
 0x406   : > { %v3822_v57 = vpop.eup %3821 }
 0x407   : > { %v3824_v46 = vpop.eup %3823  ;;  %v1699_v13 = vpack.c.bf16 %v3812_v36, %v3822_v57 }
 0x408   : > { %1550 = vadd.xlane.f32.xlu1 %v4901_v32  ;;  %v1700_v45 = vpack.c.bf16 %v3814_v16, %v3824_v46  ;;  %v5205_v61 = vadd.f32 %v3824_v46, %v3822_v57  ;;  %v5214_v32 = vpop.eup %3825  ;;  %v5217_v16 = vpop.permute.xlu2 %2117 }
 0x409   : > { %1868 = vmatmul.bf16.gmra.mxu2 %v1699_v13  ;;  %v5224_v46 = vpop.eup %3827  ;;  %v5226_v13 = vpop.permute.xlu1 %2122 }
 0x40a   : > { %1957 = vmatmul.bf16.gmra.mxu3 %v1700_v45 }
 0x40e   : > { %1301 = vperm.xlu2 %3672, %v4942_v60   ;;  %v5898_v60 = vld [vmem:[#allocation55_spill] sm:$0xff] }
 0x410   : > { %v1548_v0 = vpop.xlane.xlu0 %1547 }
 0x411   : > { %v1622_v36 = vadd.f32 %v1548_v0, %v1494_v2 }
 0x413   : > { %1655 = vst.msk [vmem:[#allocation3 + $0x50] sm:$0xff] %vm313_vm0, %v1622_v36 }
 0x416   : > { %2147 = vperm.xlu2 %3672, %v5214_v32  }
 0x420   : > { %v1536_v31 = vpop.xlane.xlu2 %1535 }
 0x421   : > { %v1618_v57 = vadd.f32 %v1536_v31, %v1490_v6  ;;  %1306 = vperm.xlu1 %3674, %v5041_v44   ;;  %v1492_v44 = vmul.f32 %v5898_v60, %v1460_v62 }
 0x423   : > { %1651 = vst.msk [vmem:[#allocation3 + $0x30] sm:$0xff] %vm313_vm0, %v1618_v57 }
 0x428   : > { %v1287_v45 = vpop.permute.xlu2 %1286 }
 0x429   : > { %v1372_v51 = vsub.f32 %v5896_v17, %v1287_v45  ;;  %v1373_v2 = vsub.f32 %v5897_v25, %v1287_v45  ;;  %2152 = vperm.xlu1 %3674, %v5224_v46   ;;  %1565 = vadd.xlane.f32.xlu0 %v5068_v12  ;;  %v1297_v12 = vpop.permute.xlu0 %1296  ;;  %v5899_v17 = vld [vmem:[#allocation60_spill] sm:$0xff] }
 0x42b   : > { %3829 = vpow2.f32 %v1372_v51 }
 0x42c   : > { %3831 = vpow2.f32 %v1373_v2  ;;  %v1558_v2 = vadd.f32 %v5054_v59, %v5052_v37  ;;  %v2308_v59 = vld [vmem:[#allocation3 + $0x10] sm:$0xff] }
 0x42d   : > { %3833 = vpow2.f32 %v1131_v14  ;;  %vm2371_vm2 = vweird.f32 %v2308_v59 }
 0x430   : > { %v1542_v0 = vpop.xlane.xlu1 %1541 }
 0x431   : > { %v3830_v36 = vpop.eup %3829  ;;  %v1620_v38 = vadd.f32 %v1542_v0, %v1492_v44  ;;  %v5244_v8 = vpop.permute.xlu0 %2142  ;;  %v1465_v0 = vld [vmem:[#allocation3 + $0x68] sm:$0xff] }
 0x432   : > { %v3832_v55 = vpop.eup %3831 }
 0x433   : > { %1653 = vst.msk [vmem:[#allocation3 + $0x40] sm:$0xff] %vm313_vm0, %v1620_v38  ;;  %v5236_v6 = vadd.f32 %v3832_v55, %v3830_v36  ;;  %v5238_v31 = vpop.eup %3833  ;;  %v5900_v38 = vld [vmem:[#allocation62_spill] sm:$0xff] }
 0x434   : > { %v1497_v14 = vmul.f32 %v5900_v38, %v1465_v0 }
 0x43d   : > { %2172 = vperm.xlu0 %3673, %v5238_v31  }
 0x43f   : > { %1553 = vadd.xlane.f32.xlu2 %v4982_v53 }
 0x448   : > { %v1292_v57 = vpop.permute.xlu1 %1291 }
 0x449   : > { %v1374_v45 = vsub.f32 %v4812_v58, %v1292_v57  ;;  %v1375_v51 = vsub.f32 %v5899_v17, %v1292_v57  ;;  %v1129_v58 = vsub.f32 %v5029_v29, %v5034_v7  ;;  %v1461_v7 = vld [vmem:[#allocation3 + $0x48] sm:$0xff]  ;;  %v5901_v17 = vld [vmem:[#allocation54_spill] sm:$0xff] }
 0x44b   : > { %3835 = vpow2.f32 %v1374_v45 }
 0x44c   : > { %3837 = vpow2.f32 %v1375_v51  ;;  %v1493_v51 = vmul.f32 %v5901_v17, %v1461_v7 }
 0x44d   : > { %3839 = vpow2.f32 %v1129_v58 }
 0x44e   : > { %3841 = vrcp.f32 %v2308_v59 }
 0x451   : > { %v3836_v25 = vpop.eup %3835 }
 0x452   : > { %v3838_v62 = vpop.eup %3837  ;;  %v1701_v60 = vpack.c.bf16 %v3836_v25, %v3830_v36  ;;  %v5258_v36 = vpop.permute.xlu2 %2132 }
 0x453   : > { %1559 = vadd.xlane.f32.xlu1 %v1558_v2  ;;  %v1702_v44 = vpack.c.bf16 %v3838_v62, %v3832_v55  ;;  %v5248_v53 = vadd.f32 %v3838_v62, %v3836_v25  ;;  %v5255_v37 = vpop.eup %3839  ;;  %v1130_v55 = vsub.f32 %v5010_v40, %v5013_v18  ;;  %v5902_v40 = vld [vmem:[#allocation58_spill] sm:$0xff] }
 0x454   : > { %1873 = vmatmul.bf16.gmra.mxu2 %v1701_v60  ;;  %v3842_v29 = vpop.eup %3841 }
 0x455   : > { %1962 = vmatmul.bf16.gmra.mxu3 %v1702_v44  ;;  %v2367_v25 = vmul.f32 %v3842_v29, %v2308_v59  ;;  %3843 = vpow2.f32 %v1130_v55  ;;  %vm2372_vm1 = vweird.f32 %v3842_v29 }
 0x456   : > { %v1557_v57 = vpop.xlane.xlu0 %1556  ;;  %vm2373_vm3 = vmor %vm2371_vm2, %vm2372_vm1 }
 0x457   : > { %1316 = vperm.xlu2 %3672, %v5013_v18   ;;  %v1625_v45 = vadd.f32 %v1557_v57, %v1497_v14  ;;  %v2368_v58 = vsub.f32 1.0, %v2367_v25  ;;  %v1376_v18 = vsub.f32 %v5902_v40, %v1297_v12  ;;  %v2377_v25 = vand.u32 2147483648, %v2308_v59 }
 0x459   : > { %1658 = vst.msk [vmem:[#allocation3 + $0x68] sm:$0xff] %vm313_vm0, %v1625_v45  ;;  %v2369_v14 = vmul.f32 %v3842_v29, %v2368_v58  ;;  %v2378_v40 = vor.u32 1.1754944e-38, %v2377_v25 }
 0x45b   : > { %v5270_v45 = vpop.eup %3843 }
 0x45f   : > { %2162 = vperm.xlu2 %3672, %v5255_v37  }
 0x467   : > { %1574 = vadd.xlane.f32.xlu0 %v5145_v27  ;;  %v5903_v27 = vld [vmem:[#allocation59_spill] sm:$0xff] }
 0x468   : > { %v1377_v38 = vsub.f32 %v5903_v27, %v1297_v12  ;;  %v2370_v12 = vadd.f32 %v3842_v29, %v2369_v14  ;;  %v5906_v27 = vld [vmem:[#allocation64_spill] sm:$0xff] }
 0x469   : > { %v1545_v2 = vpop.xlane.xlu2 %1544  ;;  %v1312_v60 = vpop.permute.xlu0 %1311 }
 0x46a   : > { %v1621_v62 = vadd.f32 %v1545_v2, %v1493_v51  ;;  %v1382_v44 = vsub.f32 %v4905_v35, %v1312_v60  ;;  %v1383_v0 = vsub.f32 %v4907_v4, %v1312_v60  ;;  %v5904_v35 = vld [vmem:[#allocation56_spill] sm:$0xff]  ;;  %v5905_v4 = vld [vmem:[#allocation57_spill] sm:$0xff]  ;;  %v1463_v60 = vld [vmem:[#allocation3 + $0x58] sm:$0xff] }
 0x46c   : > { %1654 = vst.msk [vmem:[#allocation3 + $0x48] sm:$0xff] %vm313_vm0, %v1621_v62  ;;  %1321 = vperm.xlu1 %3674, %v5115_v43   ;;  %3845 = vpow2.f32 %v1382_v44  ;;  %v5276_v43 = vpop.permute.xlu1 %2137  ;;  %v2375_v62 = vand.u32 2147483647, %v2308_v59 }
 0x46d   : > { %3847 = vpow2.f32 %v1383_v0  ;;  %v2374_v0 = vsel %vm2373_vm3, %v3842_v29, %v2370_v12  ;;  %v2306_v29 = vld [vmem:[#allocation3] sm:$0xff] }
 0x46e   : > { %3849 = vpow2.f32 %v1376_v18  ;;  %vm2376_vm4 = vcmp.eq.f32.partialorder %v2375_v62, 8.507059e+37  ;;  %vm2343_vm6 = vweird.f32 %v2306_v29 }
 0x46f   : > { %3851 = vpow2.f32 %v1377_v38  ;;  %v1495_v38 = vmul.f32 %v5906_v27, %v1463_v60 }
 0x471   : > { %v1302_v57 = vpop.permute.xlu2 %1301 }
 0x472   : > { %v1378_v7 = vsub.f32 %v5904_v35, %v1302_v57  ;;  %v1379_v55 = vsub.f32 %v5905_v4, %v1302_v57  ;;  %v5274_v17 = vpop.eup %3845  ;;  %v2379_v57 = vsel %vm2376_vm4, %v2378_v40, %v2374_v0 }
 0x473   : > { %v5278_v51 = vpop.eup %3847 }
 0x474   : > { %3853 = vpow2.f32 %v1378_v7  ;;  %2167 = vperm.xlu1 %3674, %v5270_v45   ;;  %v5283_v2 = vadd.f32 %v5278_v51, %v5274_v17  ;;  %v5285_v44 = vpop.eup %3849 }
 0x475   : > { %3855 = vpow2.f32 %v1379_v55  ;;  %v5287_v58 = vpop.eup %3851 }
 0x476   : > { %3857 = vrcp.f32 %v2306_v29 }
 0x47a   : > { %v3854_v18 = vpop.eup %3853 }
 0x47b   : > { %v3856_v14 = vpop.eup %3855  ;;  %v1551_v35 = vpop.xlane.xlu1 %1550  ;;  %v1703_v7 = vpack.c.bf16 %v3854_v18, %v5285_v44  ;;  %2830 = vperm.xlu0 %3673, %v2379_v57   ;;  %v1468_v57 = vld [vmem:[#allocation3 + $0x80] sm:$0xff] }
 0x47c   : > { %v1623_v4 = vadd.f32 %v1551_v35, %v1495_v38  ;;  %v1704_v59 = vpack.c.bf16 %v3856_v14, %v5287_v58  ;;  %v5292_v55 = vadd.f32 %v3856_v14, %v3854_v18  ;;  %v3858_v12 = vpop.eup %3857  ;;  %v5298_v38 = vpop.permute.xlu0 %2157  ;;  %v2307_v18 = vld [vmem:[#allocation3 + $0x8] sm:$0xff]  ;;  %v2349_v35 = vand.u32 2147483648, %v2306_v29 }
 0x47d   : > { %1878 = vmatmul.bf16.gmra.mxu2 %v1703_v7  ;;  %v2339_v25 = vmul.f32 %v3858_v12, %v2306_v29  ;;  %5907 = vst [vmem:[#allocation37_spill] sm:$0xff] %v5298_v38  ;;  %vm2344_vm5 = vweird.f32 %v3858_v12  ;;  %v2311_v7 = vld [vmem:[#allocation3 + $0x28] sm:$0xff]  ;;  %vm2357_vm10 = vweird.f32 %v2307_v18 }
 0x47e   : > { %1656 = vst.msk [vmem:[#allocation3 + $0x58] sm:$0xff] %vm313_vm0, %v1623_v4  ;;  %1967 = vmatmul.bf16.gmra.mxu3 %v1704_v59  ;;  %vm5300_vm7 = vmor %vm2343_vm6, %vm2344_vm5  ;;  %vm2413_vm13 = vweird.f32 %v2311_v7 }
 0x47f   : > { %v2340_v62 = vsub.f32 1.0, %v2339_v25 }
 0x481   : > { %v2341_v27 = vmul.f32 %v3858_v12, %v2340_v62 }
 0x483   : > { %v2342_v14 = vadd.f32 %v3858_v12, %v2341_v27 }
 0x485   : > { %v2346_v59 = vsel %vm5300_vm7, %v3858_v12, %v2342_v14 }
 0x488   : > { %1562 = vadd.xlane.f32.xlu2 %v5059_v52  ;;  %v2347_v52 = vand.u32 2147483647, %v2306_v29 }
 0x48a   : > { %vm2348_vm8 = vcmp.eq.f32.partialorder %v2347_v52, 8.507059e+37  ;;  %v1464_v52 = vld [vmem:[#allocation3 + $0x60] sm:$0xff] }
 0x493   : > { %v1307_v60 = vpop.permute.xlu1 %1306 }
 0x494   : > { %v1380_v0 = vsub.f32 %v4911_v20, %v1307_v60  ;;  %v1381_v40 = vsub.f32 %v4914_v63, %v1307_v60  ;;  %v1500_v63 = vmul.f32 %v4925_v49, %v1468_v57 }
 0x496   : > { %3859 = vpow2.f32 %v1380_v0  ;;  %v2350_v0 = vor.u32 1.1754944e-38, %v2349_v35  ;;  %v5314_v35 = vpop.permute.xlu2 %2147 }
 0x497   : > { %3861 = vpow2.f32 %v1381_v40 }
 0x498   : > { %3863 = vrcp.f32 %v2307_v18  ;;  %v2351_v38 = vsel %vm2348_vm8, %v2350_v0, %v2346_v59  ;;  %v5910_v59 = vld [vmem:[#allocation65_spill] sm:$0xff] }
 0x499   : > { %3865 = vrcp.f32 %v2311_v7 }
 0x49c   : > { %v3860_v20 = vpop.eup %3859  ;;  %v1566_v62 = vpop.xlane.xlu0 %1565 }
 0x49d   : > { %v3862_v25 = vpop.eup %3861  ;;  %v1705_v60 = vpack.c.bf16 %v5274_v17, %v3860_v20  ;;  %v1628_v40 = vadd.f32 %v1566_v62, %v1500_v63  ;;  %v2363_v63 = vand.u32 2147483648, %v2307_v18  ;;  %v2361_v62 = vand.u32 2147483647, %v2307_v18 }
 0x49e   : > { %1568 = vadd.xlane.f32.xlu1 %v5061_v22  ;;  %v1706_v29 = vpack.c.bf16 %v5278_v51, %v3862_v25  ;;  %v5310_v27 = vadd.f32 %v3862_v25, %v3860_v20  ;;  %v3864_v49 = vpop.eup %3863  ;;  %v1496_v25 = vmul.f32 %v5910_v59, %v1464_v52 }
 0x49f   : > { %1883 = vmatmul.bf16.gmra.mxu2 %v1705_v60  ;;  %1661 = vst.msk [vmem:[#allocation3 + $0x80] sm:$0xff] %vm313_vm0, %v1628_v40  ;;  %v3866_v12 = vpop.eup %3865  ;;  %v2353_v14 = vmul.f32 %v3864_v49, %v2307_v18  ;;  %vm2358_vm9 = vweird.f32 %v3864_v49  ;;  %v2419_v40 = vand.u32 2147483648, %v2311_v7  ;;  %vm2362_vm14 = vcmp.eq.f32.partialorder %v2361_v62, 8.507059e+37 }
 0x4a0   : > { %1972 = vmatmul.bf16.gmra.mxu3 %v1706_v29  ;;  %2820 = vperm.xlu2 %3672, %v2351_v38   ;;  %v2409_v17 = vmul.f32 %v3866_v12, %v2311_v7  ;;  %vm2359_vm11 = vmor %vm2357_vm10, %vm2358_vm9  ;;  %vm2414_vm12 = vweird.f32 %v3866_v12  ;;  %v2364_v29 = vor.u32 1.1754944e-38, %v2363_v63 }
 0x4a1   : > { %v2354_v57 = vsub.f32 1.0, %v2353_v14  ;;  %v2417_v14 = vand.u32 2147483647, %v2311_v7  ;;  %vm2415_vm15 = vmor %vm2413_vm13, %vm2414_vm12  ;;  %v2309_v7 = vld [vmem:[#allocation3 + $0x18] sm:$0xff] }
 0x4a2   : > { %v2410_v22 = vsub.f32 1.0, %v2409_v17  ;;  %vm2385_vm3 = vweird.f32 %v2309_v7 }
 0x4a3   : > { %v2355_v51 = vmul.f32 %v3864_v49, %v2354_v57  ;;  %vm2418_vm1 = vcmp.eq.f32.partialorder %v2417_v14, 8.507059e+37 }
 0x4a4   : > { %v2411_v4 = vmul.f32 %v3866_v12, %v2410_v22  ;;  %v2420_v22 = vor.u32 1.1754944e-38, %v2419_v40  ;;  %v1471_v40 = vld [vmem:[#allocation3 + $0x98] sm:$0xff] }
 0x4a5   : > { %1583 = vadd.xlane.f32.xlu0 %v5205_v61  ;;  %v2356_v20 = vadd.f32 %v3864_v49, %v2355_v51 }
 0x4a6   : > { %v2412_v60 = vadd.f32 %v3866_v12, %v2411_v4  ;;  %v5320_v4 = vpop.permute.xlu1 %2152 }
 0x4a7   : > { %v2360_v0 = vsel %vm2359_vm11, %v3864_v49, %v2356_v20  ;;  %v1466_v20 = vld [vmem:[#allocation3 + $0x70] sm:$0xff] }
 0x4a8   : > { %v2365_v17 = vsel %vm2362_vm14, %v2364_v29, %v2360_v0  ;;  %v2416_v57 = vsel %vm2415_vm15, %v3866_v12, %v2412_v60  ;;  %v1498_v12 = vmul.f32 %v4938_v21, %v1466_v20  ;;  %v2314_v29 = vld [vmem:[#allocation3 + $0x40] sm:$0xff]  ;;  %v1503_v21 = vmul.f32 %v5002_v47, %v1471_v40 }
 0x4a9   : > { %v2421_v18 = vsel %vm2418_vm1, %v2420_v22, %v2416_v57  ;;  %v2310_v57 = vld [vmem:[#allocation3 + $0x20] sm:$0xff]  ;;  %v1576_v47 = vadd.f32 %v5186_v30, %v5184_v3  ;;  %vm2455_vm7 = vweird.f32 %v2314_v29 }
 0x4aa   : > { %vm2399_vm10 = vweird.f32 %v2310_v57 }
 0x4b2   : > { %v1554_v38 = vpop.xlane.xlu2 %1553 }
 0x4b3   : > { %v1624_v61 = vadd.f32 %v1554_v38, %v1496_v25 }
 0x4b5   : > { %1657 = vst.msk [vmem:[#allocation3 + $0x60] sm:$0xff] %vm313_vm0, %v1624_v61  ;;  %v5327_v61 = vpop.permute.xlu0 %2172 }
 0x4b7   : > { %2825 = vperm.xlu1 %3674, %v2365_v17   ;;  %v2391_v17 = vand.u32 2147483648, %v2309_v7 }
 0x4b9   : > { %2845 = vperm.xlu0 %3673, %v2421_v18   ;;  %v2389_v18 = vand.u32 2147483647, %v2309_v7 }
 0x4ba   : > { %v1317_v51 = vpop.permute.xlu2 %1316 }
 0x4bb   : > { %v1384_v52 = vsub.f32 %v4881_v1, %v1317_v51  ;;  %v1385_v49 = vsub.f32 %v4885_v26, %v1317_v51  ;;  %vm2390_vm5 = vcmp.eq.f32.partialorder %v2389_v18, 8.507059e+37  ;;  %v2459_v18 = vand.u32 2147483647, %v2314_v29 }
 0x4bd   : > { %3867 = vpow2.f32 %v1384_v52  ;;  %vm2460_vm12 = vcmp.eq.f32.partialorder %v2459_v18, 8.507059e+37 }
 0x4be   : > { %3869 = vpow2.f32 %v1385_v49  ;;  %v2392_v49 = vor.u32 1.1754944e-38, %v2391_v17 }
 0x4bf   : > { %3871 = vrcp.f32 %v2309_v7 }
 0x4c0   : > { %3873 = vrcp.f32 %v2314_v29 }
 0x4c1   : > { %3875 = vrcp.f32 %v2310_v57 }
 0x4c3   : > { %v3868_v63 = vpop.eup %3867 }
 0x4c4   : > { %v3870_v59 = vpop.eup %3869 }
 0x4c5   : > { %v5323_v25 = vadd.f32 %v3870_v59, %v3868_v63  ;;  %v3872_v26 = vpop.eup %3871 }
 0x4c6   : > { %v1560_v62 = vpop.xlane.xlu1 %1559  ;;  %v2381_v1 = vmul.f32 %v3872_v26, %v2309_v7  ;;  %vm2386_vm2 = vweird.f32 %v3872_v26 }
 0x4c7   : > { %v1626_v38 = vadd.f32 %v1560_v62, %v1498_v12  ;;  %vm2387_vm4 = vmor %vm2385_vm3, %vm2386_vm2 }
 0x4c8   : > { %v2382_v60 = vsub.f32 1.0, %v2381_v1 }
 0x4c9   : > { %1659 = vst.msk [vmem:[#allocation3 + $0x70] sm:$0xff] %vm313_vm0, %v1626_v38  ;;  %1571 = vadd.xlane.f32.xlu2 %v5129_v23  ;;  %v3874_v38 = vpop.eup %3873 }
 0x4ca   : > { %v2383_v0 = vmul.f32 %v3872_v26, %v2382_v60  ;;  %v3876_v7 = vpop.eup %3875  ;;  %vm2456_vm6 = vweird.f32 %v3874_v38 }
 0x4cb   : > { %v2395_v1 = vmul.f32 %v3876_v7, %v2310_v57  ;;  %vm2400_vm8 = vweird.f32 %v3876_v7  ;;  %vm2457_vm9 = vmor %vm2455_vm7, %vm2456_vm6 }
 0x4cc   : > { %v2384_v14 = vadd.f32 %v3872_v26, %v2383_v0  ;;  %vm2401_vm11 = vmor %vm2399_vm10, %vm2400_vm8 }
 0x4cd   : > { %v2396_v3 = vsub.f32 1.0, %v2395_v1 }
 0x4ce   : > { %v2388_v23 = vsel %vm2387_vm4, %v3872_v26, %v2384_v14  ;;  %v2451_v26 = vmul.f32 %v3874_v38, %v2314_v29 }
 0x4cf   : > { %v2393_v62 = vsel %vm2390_vm5, %v2392_v49, %v2388_v23 }
 0x4d0   : > { %v2452_v40 = vsub.f32 1.0, %v2451_v26 }
 0x4d2   : > { %v2453_v30 = vmul.f32 %v3874_v38, %v2452_v40 }
 0x4d4   : > { %v2454_v17 = vadd.f32 %v3874_v38, %v2453_v30 }
 0x4d6   : > { %v2458_v23 = vsel %vm2457_vm9, %v3874_v38, %v2454_v17  ;;  %v2312_v38 = vld [vmem:[#allocation3 + $0x30] sm:$0xff] }
 0x4d7   : > { %vm2427_vm15 = vweird.f32 %v2312_v38 }
 0x4da   : > { %v1575_v22 = vpop.xlane.xlu0 %1574 }
 0x4db   : > { %v1631_v51 = vadd.f32 %v1575_v22, %v1503_v21  ;;  %v2397_v21 = vmul.f32 %v3876_v7, %v2396_v3  ;;  %v2461_v22 = vand.u32 2147483648, %v2314_v29 }
 0x4dd   : > { %1664 = vst.msk [vmem:[#allocation3 + $0x98] sm:$0xff] %vm313_vm0, %v1631_v51  ;;  %v5338_v51 = vpop.permute.xlu2 %2162 }
 0x4de   : > { %v1322_v52 = vpop.permute.xlu1 %1321 }
 0x4df   : > { %v1386_v20 = vsub.f32 %v4987_v56, %v1322_v52  ;;  %v1387_v12 = vsub.f32 %v4989_v11, %v1322_v52  ;;  %v2462_v52 = vor.u32 1.1754944e-38, %v2461_v22  ;;  %v2317_v22 = vld [vmem:[#allocation3 + $0x58] sm:$0xff] }
 0x4e0   : > { %vm2497_vm4 = vweird.f32 %v2317_v22 }
 0x4e1   : > { %3877 = vpow2.f32 %v1386_v20  ;;  %1577 = vadd.xlane.f32.xlu1 %v1576_v47  ;;  %2835 = vperm.xlu2 %3672, %v2393_v62   ;;  %v2463_v20 = vsel %vm2460_vm12, %v2462_v52, %v2458_v23  ;;  %v1467_v47 = vld [vmem:[#allocation3 + $0x78] sm:$0xff]  ;;  %v2433_v23 = vand.u32 2147483648, %v2312_v38 }
 0x4e2   : > { %3879 = vpow2.f32 %v1387_v12  ;;  %v1499_v29 = vmul.f32 %v4944_v41, %v1467_v47  ;;  %v2313_v52 = vld [vmem:[#allocation3 + $0x38] sm:$0xff] }
 0x4e3   : > { %1592 = vadd.xlane.f32.xlu0 %v5248_v53  ;;  %v2398_v53 = vadd.f32 %v3876_v7, %v2397_v21  ;;  %3881 = vrcp.f32 %v2312_v38  ;;  %v1474_v21 = vld [vmem:[#allocation3 + $0xb0] sm:$0xff]  ;;  %vm2441_vm8 = vweird.f32 %v2313_v52 }
 0x4e4   : > { %v1506_v18 = vmul.f32 %v5072_v28, %v1474_v21  ;;  %3883 = vrcp.f32 %v2317_v22 }
 0x4e5   : > { %v2402_v49 = vsel %vm2401_vm11, %v3876_v7, %v2398_v53  ;;  %3885 = vrcp.f32 %v2313_v52 }
 0x4e7   : > { %v3878_v60 = vpop.eup %3877 }
 0x4e8   : > { %v3880_v0 = vpop.eup %3879  ;;  %v1707_v56 = vpack.c.bf16 %v3878_v60, %v3868_v63  ;;  %v2405_v63 = vand.u32 2147483648, %v2310_v57 }
 0x4e9   : > { %v1708_v11 = vpack.c.bf16 %v3880_v0, %v3870_v59  ;;  %v5336_v14 = vadd.f32 %v3880_v0, %v3878_v60  ;;  %v2403_v59 = vand.u32 2147483647, %v2310_v57  ;;  %v5342_v57 = vpop.permute.xlu1 %2167  ;;  %v3882_v7 = vpop.eup %3881  ;;  %v1469_v60 = vld [vmem:[#allocation3 + $0x88] sm:$0xff] }
 0x4ea   : > { %1888 = vmatmul.bf16.gmra.mxu2 %v1707_v56  ;;  %v2406_v12 = vor.u32 1.1754944e-38, %v2405_v63  ;;  %v2423_v0 = vmul.f32 %v3882_v7, %v2312_v38  ;;  %v5911_v56 = vld [vmem:[#allocation79_spill] sm:$0xff]  ;;  %vm2428_vm14 = vweird.f32 %v3882_v7 }
 0x4eb   : > { %1977 = vmatmul.bf16.gmra.mxu3 %v1708_v11  ;;  %vm2404_vm13 = vcmp.eq.f32.partialorder %v2403_v59, 8.507059e+37  ;;  %v1501_v40 = vmul.f32 %v5911_v56, %v1469_v60  ;;  %v2431_v59 = vand.u32 2147483647, %v2312_v38  ;;  %vm2429_vm1 = vmor %vm2427_vm15, %vm2428_vm14  ;;  %v5914_v38 = vld [vmem:[#allocation45_spill] sm:$0xff] }
 0x4ec   : > { %v2407_v62 = vsel %vm2404_vm13, %v2406_v12, %v2402_v49  ;;  %v2424_v41 = vsub.f32 1.0, %v2423_v0  ;;  %v2434_v12 = vor.u32 1.1754944e-38, %v2433_v23  ;;  %v2176_v60 = vmul.f32 0.0, %v5914_v38  ;;  %v5916_v38 = vld [vmem:[#allocation25_spill] sm:$0xff] }
 0x4ed   : > { %v5346_v11 = vpop.permute.xlu0 %2830  ;;  %vm2432_vm2 = vcmp.eq.f32.partialorder %v2431_v59, 8.507059e+37 }
 0x4ee   : > { %v2425_v17 = vmul.f32 %v3882_v7, %v2424_v41 }
 0x4f0   : > { %v2426_v63 = vadd.f32 %v3882_v7, %v2425_v17 }
 0x4f2   : > { %v2430_v49 = vsel %vm2429_vm1, %v3882_v7, %v2426_v63 }
 0x4f3   : > { %v2435_v47 = vsel %vm2432_vm2, %v2434_v12, %v2430_v49 }
 0x4f7   : > { %2860 = vperm.xlu0 %3673, %v2463_v20   ;;  %v3884_v20 = vpop.eup %3883 }
 0x4f8   : > { %v2493_v28 = vmul.f32 %v3884_v20, %v2317_v22  ;;  %vm2498_vm3 = vweird.f32 %v3884_v20 }
 0x4f9   : > { %vm2499_vm5 = vmor %vm2497_vm4, %vm2498_vm3 }
 0x4fa   : > { %2840 = vperm.xlu1 %3674, %v2407_v62   ;;  %v5912_v62 = vld [vmem:[#allocation67_spill] sm:$0xff]  ;;  %v2494_v0 = vsub.f32 1.0, %v2493_v28  ;;  %v2445_v28 = vand.u32 2147483647, %v2313_v52 }
 0x4fb   : > { %v1563_v26 = vpop.xlane.xlu2 %1562 }
 0x4fc   : > { %v1627_v1 = vadd.f32 %v1563_v26, %v1499_v29  ;;  %v5913_v29 = vld [vmem:[#allocation68_spill] sm:$0xff]  ;;  %vm2446_vm10 = vcmp.eq.f32.partialorder %v2445_v28, 8.507059e+37 }
 0x4fd   : > { %v1906_v26 = vadd.f32 %v5913_v29, %v5912_v62  ;;  %v1470_v62 = vld [vmem:[#allocation3 + $0x90] sm:$0xff] }
 0x4fe   : > { %1660 = vst.msk [vmem:[#allocation3 + $0x78] sm:$0xff] %vm313_vm0, %v1627_v1  ;;  %v3886_v1 = vpop.eup %3885 }
 0x4ff   : > { %v2208_v56 = vadd.f32 %v2176_v60, %v1906_v26  ;;  %vm2442_vm7 = vweird.f32 %v3886_v1  ;;  %v1502_v60 = vmul.f32 %v5916_v38, %v1470_v62 }
 0x500   : > { %vm2443_vm9 = vmor %vm2441_vm8, %vm2442_vm7 }
 0x503   : > { %v2821_v7 = vpop.permute.xlu2 %2820 }
 0x50a   : > { %1580 = vadd.xlane.f32.xlu2 %v5193_v34 }
 0x511   : > { %v1569_v3 = vpop.xlane.xlu1 %1568 }
 0x512   : > { %v1629_v30 = vadd.f32 %v1569_v3, %v1501_v40  ;;  %v2437_v3 = vmul.f32 %v3886_v1, %v2313_v52 }
 0x514   : > { %1662 = vst.msk [vmem:[#allocation3 + $0x88] sm:$0xff] %vm313_vm0, %v1629_v30  ;;  %v5915_v30 = vld [vmem:[#allocation61_spill] sm:$0xff] }
 0x515   : > { %v2978_v41 = vmul.f32 %v2821_v7, %v5915_v30  ;;  %v5917_v7 = vld [vmem:[#allocation73_spill] sm:$0xff] }
 0x518   : > { %v1584_v53 = vpop.xlane.xlu0 %1583 }
 0x519   : > { %v1634_v34 = vadd.f32 %v1584_v53, %v1506_v18  ;;  %v2438_v18 = vsub.f32 1.0, %v2437_v3  ;;  %v5919_v3 = vld [vmem:[#allocation53_spill] sm:$0xff] }
 0x51a   : > { %v2178_v30 = vmul.f32 0.0, %v5919_v3 }
 0x51b   : > { %1667 = vst.msk [vmem:[#allocation3 + $0xb0] sm:$0xff] %vm313_vm0, %v1634_v34  ;;  %v2501_v34 = vand.u32 2147483647, %v2317_v22  ;;  %v2439_v63 = vmul.f32 %v3886_v1, %v2438_v18 }
 0x51d   : > { %vm2502_vm6 = vcmp.eq.f32.partialorder %v2501_v34, 8.507059e+37  ;;  %v2440_v12 = vadd.f32 %v3886_v1, %v2439_v63  ;;  %v1472_v63 = vld [vmem:[#allocation3 + $0xa0] sm:$0xff] }
 0x51f   : > { %v2444_v29 = vsel %vm2443_vm9, %v3886_v1, %v2440_v12  ;;  %v5920_v1 = vld [vmem:[#allocation69_spill] sm:$0xff] }
 0x521   : > { %1601 = vadd.xlane.f32.xlu0 %v5310_v27  ;;  %v2495_v27 = vmul.f32 %v3884_v20, %v2494_v0 }
 0x522   : > { %2850 = vperm.xlu2 %3672, %v2435_v47   ;;  %v2447_v47 = vand.u32 2147483648, %v2313_v52 }
 0x523   : > { %v2496_v53 = vadd.f32 %v3884_v20, %v2495_v27  ;;  %v2980_v27 = vmul.f32 %v5346_v11, %v5920_v1 }
 0x524   : > { %1586 = vadd.xlane.f32.xlu1 %v5189_v15  ;;  %v2503_v15 = vand.u32 2147483648, %v2317_v22  ;;  %v2448_v26 = vor.u32 1.1754944e-38, %v2447_v47  ;;  %v2320_v47 = vld [vmem:[#allocation3 + $0x70] sm:$0xff] }
 0x525   : > { %v2500_v23 = vsel %vm2499_vm5, %v3884_v20, %v2496_v53  ;;  %vm2539_vm1 = vweird.f32 %v2320_v47 }
 0x526   : > { %v2504_v59 = vor.u32 1.1754944e-38, %v2503_v15  ;;  %v2449_v0 = vsel %vm2446_vm10, %v2448_v26, %v2444_v29 }
 0x528   : > { %v2505_v49 = vsel %vm2502_vm6, %v2504_v59, %v2500_v23  ;;  %v1504_v23 = vmul.f32 %v5088_v10, %v1472_v63  ;;  %v1477_v59 = vld [vmem:[#allocation3 + $0xc8] sm:$0xff] }
 0x529   : > { %v2826_v40 = vpop.permute.xlu1 %2825  ;;  %v1509_v62 = vmul.f32 %v5140_v50, %v1477_v59 }
 0x52a   : > { %v2979_v21 = vmul.f32 %v2826_v40, %v2208_v56  ;;  %v5918_v56 = vld [vmem:[#allocation74_spill] sm:$0xff] }
 0x52b   : > { %v1911_v40 = vadd.f32 %v5918_v56, %v5917_v7  ;;  %v2846_v15 = vpop.permute.xlu0 %2845  ;;  %v5378_v7 = vld [vmem:[#allocation3 + $0x50] sm:$0xff] }
 0x52c   : > { %v3501_v17 = vpack.c.bf16 %v2979_v21, %v2978_v41  ;;  %v2315_v41 = vld [vmem:[#allocation3 + $0x48] sm:$0xff]  ;;  %vm2483_vm9 = vweird.f32 %v5378_v7 }
 0x52d   : > { %v2210_v52 = vadd.f32 %v2178_v30, %v1911_v40  ;;  %3887 = vrcp.f32 %v2315_v41  ;;  %v2475_v38 = vand.u32 2147483648, %v2315_v41  ;;  %vm2469_vm12 = vweird.f32 %v2315_v41 }
 0x52e   : > { %3502 = vst [vmem:[%s5358_s24] sm:$0xff] %v3501_v17   ;;  %3889 = vrcp.f32 %v2320_v47 }
 0x52f   : > { %v2476_v50 = vor.u32 1.1754944e-38, %v2475_v38 }
 0x533   : > { %v3888_v53 = vpop.eup %3887 }
 0x534   : > { %v2465_v34 = vmul.f32 %v3888_v53, %v2315_v41  ;;  %vm2470_vm11 = vweird.f32 %v3888_v53  ;;  %v3890_v10 = vpop.eup %3889 }
 0x535   : > { %2875 = vperm.xlu0 %3673, %v2505_v49   ;;  %vm2471_vm13 = vmor %vm2469_vm12, %vm2470_vm11  ;;  %vm2540_vm15 = vweird.f32 %v3890_v10 }
 0x536   : > { %v2466_v49 = vsub.f32 1.0, %v2465_v34  ;;  %vm2541_vm2 = vmor %vm2539_vm1, %vm2540_vm15 }
 0x538   : > { %v2467_v29 = vmul.f32 %v3888_v53, %v2466_v49 }
 0x53c   : > { %v1572_v22 = vpop.xlane.xlu2 %1571 }
 0x53d   : > { %v1630_v20 = vadd.f32 %v1572_v22, %v1502_v60  ;;  %2855 = vperm.xlu1 %3674, %v2449_v0   ;;  %v5374_v60 = vld [vmem:[#allocation3 + $0x88] sm:$0xff]  ;;  %v2473_v22 = vand.u32 2147483647, %v2315_v41  ;;  %v5921_v41 = vld [vmem:[#allocation76_spill] sm:$0xff] }
 0x53e   : > { %3891 = vrcp.f32 %v5374_v60  ;;  %vm2581_vm5 = vweird.f32 %v5374_v60 }
 0x53f   : > { %1663 = vst.msk [vmem:[#allocation3 + $0x90] sm:$0xff] %vm313_vm0, %v1630_v20  ;;  %v2535_v20 = vmul.f32 %v3890_v10, %v2320_v47  ;;  %vm2474_vm14 = vcmp.eq.f32.partialorder %v2473_v22, 8.507059e+37  ;;  %3893 = vrcp.f32 %v5378_v7 }
 0x541   : > { %v2536_v40 = vsub.f32 1.0, %v2535_v20 }
 0x544   : > { %v2836_v21 = vpop.permute.xlu2 %2835  ;;  %v3892_v30 = vpop.eup %3891 }
 0x545   : > { %v2981_v17 = vmul.f32 %v2836_v21, %v2210_v52  ;;  %v1594_v52 = vadd.f32 %v5287_v58, %v5285_v44  ;;  %v5922_v21 = vld [vmem:[#allocation77_spill] sm:$0xff]  ;;  %vm2582_vm4 = vweird.f32 %v3892_v30 }
 0x546   : > { %v1916_v1 = vadd.f32 %v5922_v21, %v5921_v41  ;;  %vm2583_vm6 = vmor %vm2581_vm5, %vm2582_vm4 }
 0x547   : > { %v3506_v18 = vpack.c.bf16 %v2981_v17, %v2980_v27  ;;  %v2577_v27 = vmul.f32 %v3892_v30, %v5374_v60  ;;  %v3894_v17 = vpop.eup %3893 }
 0x548   : > { %v2479_v44 = vmul.f32 %v3894_v17, %v5378_v7  ;;  %vm2484_vm7 = vweird.f32 %v3894_v17 }
 0x549   : > { %3578 = vst [vmem:[%s5358_s24 + $0x8] sm:$0xff] %v3506_v18   ;;  %v5923_v18 = vld [vmem:[#allocation66_spill] sm:$0xff]  ;;  %v2578_v59 = vsub.f32 1.0, %v2577_v27  ;;  %v2487_v27 = vand.u32 2147483647, %v5378_v7  ;;  %vm2485_vm10 = vmor %vm2483_vm9, %vm2484_vm7 }
 0x54a   : > { %v2480_v38 = vsub.f32 1.0, %v2479_v44 }
 0x54b   : > { %1589 = vadd.xlane.f32.xlu2 %v5236_v6  ;;  %v2468_v6 = vadd.f32 %v3888_v53, %v2467_v29  ;;  %vm2488_vm12 = vcmp.eq.f32.partialorder %v2487_v27, 8.507059e+37  ;;  %v5927_v27 = vld [vmem:[#allocation22_spill] sm:$0xff] }
 0x54d   : > { %v2472_v0 = vsel %vm2471_vm13, %v3888_v53, %v2468_v6  ;;  %v2180_v53 = vmul.f32 0.0, %v5923_v18  ;;  %v2579_v6 = vmul.f32 %v3892_v30, %v2578_v59 }
 0x54e   : > { %v2477_v56 = vsel %vm2474_vm14, %v2476_v50, %v2472_v0 }
 0x54f   : > { %v2212_v34 = vadd.f32 %v2180_v53, %v1916_v1  ;;  %v2580_v20 = vadd.f32 %v3892_v30, %v2579_v6  ;;  %v1473_v1 = vld [vmem:[#allocation3 + $0xa8] sm:$0xff]  ;;  %v5925_v53 = vld [vmem:[#allocation26_spill] sm:$0xff]  ;;  %v1480_v6 = vld [vmem:[#allocation3 + $0xe0] sm:$0xff] }
 0x551   : > { %v2983_v49 = vmul.f32 %v2846_v15, %v2212_v34  ;;  %v2481_v15 = vmul.f32 %v3894_v17, %v2480_v38  ;;  %v1505_v34 = vmul.f32 %v5925_v53, %v1473_v1  ;;  %v1512_v38 = vmul.f32 %v5201_v54, %v1480_v6  ;;  %v5415_v53 = vld [vmem:[#allocation3 + $0x80] sm:$0xff] }
 0x554   : > { %v1578_v12 = vpop.xlane.xlu1 %1577 }
 0x555   : > { %v1632_v28 = vadd.f32 %v1578_v12, %v1504_v23  ;;  %v5924_v12 = vld [vmem:[#allocation75_spill] sm:$0xff] }
 0x556   : > { %v1593_v11 = vpop.xlane.xlu0 %1592 }
 0x557   : > { %1665 = vst.msk [vmem:[#allocation3 + $0xa0] sm:$0xff] %vm313_vm0, %v1632_v28  ;;  %v1637_v26 = vadd.f32 %v1593_v11, %v1509_v62  ;;  %v2545_v62 = vand.u32 2147483648, %v2320_v47  ;;  %v2543_v11 = vand.u32 2147483647, %v2320_v47  ;;  %v2585_v47 = vand.u32 2147483647, %v5374_v60 }
 0x559   : > { %1670 = vst.msk [vmem:[#allocation3 + $0xc8] sm:$0xff] %vm313_vm0, %v1637_v26  ;;  %v2546_v0 = vor.u32 1.1754944e-38, %v2545_v62  ;;  %vm2544_vm3 = vcmp.eq.f32.partialorder %v2543_v11, 8.507059e+37  ;;  %vm2586_vm8 = vcmp.eq.f32.partialorder %v2585_v47, 8.507059e+37  ;;  %v2318_v62 = vld [vmem:[#allocation3 + $0x60] sm:$0xff] }
 0x55a   : > { %v2515_v47 = vand.u32 2147483647, %v2318_v62 }
 0x55c   : > { %vm2516_vm4 = vcmp.eq.f32.partialorder %v2515_v47, 8.507059e+37 }
 0x55e   : > { %v5381_v3 = vld [vmem:[#allocation3 + $0xa0] sm:$0xff] }
 0x55f   : > { %1610 = vadd.xlane.f32.xlu0 %v5336_v14  ;;  %3895 = vrcp.f32 %v5381_v3  ;;  %v2537_v14 = vmul.f32 %v3890_v10, %v2536_v40  ;;  %v2587_v40 = vand.u32 2147483648, %v5374_v60  ;;  %v2629_v59 = vand.u32 2147483648, %v5381_v3 }
 0x560   : > { %vm2623_vm13 = vweird.f32 %v5381_v3  ;;  %3897 = vrcp.f32 %v2318_v62 }
 0x561   : > { %v2538_v23 = vadd.f32 %v3890_v10, %v2537_v14  ;;  %v2588_v21 = vor.u32 1.1754944e-38, %v2587_v40  ;;  %v2489_v14 = vand.u32 2147483648, %v5378_v7  ;;  %v2517_v40 = vand.u32 2147483648, %v2318_v62 }
 0x563   : > { %2865 = vperm.xlu2 %3672, %v2477_v56   ;;  %v2542_v26 = vsel %vm2541_vm2, %v3890_v10, %v2538_v23  ;;  %v2584_v10 = vsel %vm2583_vm6, %v3892_v30, %v2580_v20  ;;  %v2490_v23 = vor.u32 1.1754944e-38, %v2489_v14  ;;  %vm2511_vm2 = vweird.f32 %v2318_v62  ;;  %v5926_v14 = vld [vmem:[#allocation21_spill] sm:$0xff] }
 0x564   : > { %v2547_v50 = vsel %vm2544_vm3, %v2546_v0, %v2542_v26  ;;  %v2589_v18 = vsel %vm2586_vm8, %v2588_v21, %v2584_v10  ;;  %v2518_v54 = vor.u32 1.1754944e-38, %v2517_v40  ;;  %v5425_v40 = vld [vmem:[#allocation3 + $0xb0] sm:$0xff] }
 0x565   : > { %v3896_v58 = vpop.eup %3895 }
 0x566   : > { %v2619_v22 = vmul.f32 %v3896_v58, %v5381_v3  ;;  %vm2624_vm11 = vweird.f32 %v3896_v58  ;;  %v3898_v11 = vpop.eup %3897 }
 0x567   : > { %1595 = vadd.xlane.f32.xlu1 %v1594_v52  ;;  %v2482_v52 = vadd.f32 %v3894_v17, %v2481_v15  ;;  %vm2625_vm14 = vmor %vm2623_vm13, %vm2624_vm11  ;;  %v2507_v26 = vmul.f32 %v3898_v11, %v2318_v62  ;;  %vm2512_vm1 = vweird.f32 %v3898_v11 }
 0x568   : > { %v2620_v56 = vsub.f32 1.0, %v2619_v22  ;;  %vm2513_vm3 = vmor %vm2511_vm2, %vm2512_vm1 }
 0x569   : > { %v2486_v60 = vsel %vm2485_vm10, %v3894_v17, %v2482_v52  ;;  %v2508_v22 = vsub.f32 1.0, %v2507_v26 }
 0x56a   : > { %v2621_v41 = vmul.f32 %v3896_v58, %v2620_v56 }
 0x56b   : > { %v2509_v56 = vmul.f32 %v3898_v11, %v2508_v22 }
 0x56c   : > { %v2841_v63 = vpop.permute.xlu1 %2840 }
 0x56d   : > { %v2982_v28 = vmul.f32 %v2841_v63, %v5924_v12  ;;  %v2622_v63 = vadd.f32 %v3896_v58, %v2621_v41  ;;  %v2491_v12 = vsel %vm2488_vm12, %v2490_v23, %v2486_v60 }
 0x56f   : > { %v3511_v29 = vpack.c.bf16 %v2983_v49, %v2982_v28  ;;  %v2627_v49 = vand.u32 2147483647, %v5381_v3  ;;  %v2626_v7 = vsel %vm2625_vm14, %v3896_v58, %v2622_v63  ;;  %v2630_v28 = vor.u32 1.1754944e-38, %v2629_v59  ;;  %v1475_v3 = vld [vmem:[#allocation3 + $0xb8] sm:$0xff] }
 0x570   : > { %v1507_v58 = vmul.f32 %v5153_v9, %v1475_v3  ;;  %v2319_v9 = vld [vmem:[#allocation3 + $0x68] sm:$0xff]  ;;  %v5928_v63 = vld [vmem:[#allocation63_spill] sm:$0xff]  ;;  %vm2567_vm14 = vweird.f32 %v5415_v53 }
 0x571   : > { %3579 = vst [vmem:[%s5358_s24 + $0x10] sm:$0xff] %v3511_v29   ;;  %vm2628_vm15 = vcmp.eq.f32.partialorder %v2627_v49, 8.507059e+37  ;;  %v5406_v29 = vpop.permute.xlu0 %2860  ;;  %vm2525_vm10 = vweird.f32 %v2319_v9 }
 0x572   : > { %v2631_v17 = vsel %vm2628_vm15, %v2630_v28, %v2626_v7 }
 0x573   : > { %2890 = vperm.xlu0 %3673, %v2547_v50  }
 0x57b   : > { %2905 = vperm.xlu0 %3673, %v2589_v18   ;;  %v1921_v18 = vadd.f32 %v5927_v27, %v5926_v14 }
 0x57d   : > { %v1581_v30 = vpop.xlane.xlu2 %1580 }
 0x57e   : > { %v1633_v44 = vadd.f32 %v1581_v30, %v1505_v34  ;;  %v2182_v30 = vmul.f32 0.0, %v5928_v63  ;;  %v5931_v63 = vld [vmem:[#allocation30_spill] sm:$0xff] }
 0x580   : > { %1666 = vst.msk [vmem:[#allocation3 + $0xa8] sm:$0xff] %vm313_vm0, %v1633_v44  ;;  %2870 = vperm.xlu1 %3674, %v2491_v12   ;;  %v2214_v12 = vadd.f32 %v2182_v30, %v1921_v18 }
 0x583   : > { %2920 = vperm.xlu0 %3673, %v2631_v17  }
 0x585   : > { %v2851_v59 = vpop.permute.xlu2 %2850 }
 0x58c   : > { %1598 = vadd.xlane.f32.xlu2 %v5292_v55  ;;  %v2510_v55 = vadd.f32 %v3898_v11, %v2509_v56 }
 0x58e   : > { %v2514_v10 = vsel %vm2513_vm3, %v3898_v11, %v2510_v55 }
 0x58f   : > { %v2519_v41 = vsel %vm2516_vm4, %v2518_v54, %v2514_v10  ;;  %v2531_v10 = vand.u32 2147483648, %v2319_v9 }
 0x591   : > { %v2532_v18 = vor.u32 1.1754944e-38, %v2531_v10 }
 0x594   : > { %v1602_v0 = vpop.xlane.xlu0 %1601 }
 0x595   : > { %v1640_v50 = vadd.f32 %v1602_v0, %v1512_v38 }
 0x597   : > { %v1587_v20 = vpop.xlane.xlu1 %1586  ;;  %1673 = vst.msk [vmem:[#allocation3 + $0xe0] sm:$0xff] %vm313_vm0, %v1640_v50  ;;  %v5420_v50 = vld [vmem:[#allocation3 + $0x98] sm:$0xff] }
 0x598   : > { %v1635_v15 = vadd.f32 %v1587_v20, %v1507_v58  ;;  %vm2609_vm3 = vweird.f32 %v5420_v50 }
 0x59a   : > { %1668 = vst.msk [vmem:[#allocation3 + $0xb8] sm:$0xff] %vm313_vm0, %v1635_v15  ;;  %v1476_v15 = vld [vmem:[#allocation3 + $0xc0] sm:$0xff] }
 0x59b   : > { %v1508_v54 = vmul.f32 %v5170_v24, %v1476_v15 }
 0x5a1   : > { %v2329_v52 = vld [vmem:[#allocation3 + $0xb8] sm:$0xff] }
 0x5a2   : > { %3899 = vrcp.f32 %v2329_v52  ;;  %v2671_v23 = vand.u32 2147483648, %v2329_v52  ;;  %v2669_v49 = vand.u32 2147483647, %v2329_v52  ;;  %vm2665_vm6 = vweird.f32 %v2329_v52 }
 0x5a3   : > { %3901 = vrcp.f32 %v2319_v9 }
 0x5a4   : > { %2880 = vperm.xlu2 %3672, %v2519_v41   ;;  %3903 = vrcp.f32 %v5415_v53  ;;  %v2672_v26 = vor.u32 1.1754944e-38, %v2671_v23  ;;  %vm2670_vm8 = vcmp.eq.f32.partialorder %v2669_v49, 8.507059e+37  ;;  %v5932_v23 = vld [vmem:[#allocation31_spill] sm:$0xff] }
 0x5a5   : > { %3905 = vrcp.f32 %v5420_v50  ;;  %v5438_v49 = vld [vmem:[#allocation3 + $0x78] sm:$0xff] }
 0x5a6   : > { %3907 = vrcp.f32 %v5425_v40 }
 0x5a7   : > { %3909 = vrcp.f32 %v5438_v49 }
 0x5a8   : > { %v3900_v21 = vpop.eup %3899 }
 0x5a9   : > { %v2661_v1 = vmul.f32 %v3900_v21, %v2329_v52  ;;  %v3902_v60 = vpop.eup %3901  ;;  %vm2666_vm5 = vweird.f32 %v3900_v21  ;;  %v2529_v52 = vand.u32 2147483647, %v2319_v9 }
 0x5aa   : > { %1604 = vadd.xlane.f32.xlu1 %v5283_v2  ;;  %v2521_v17 = vmul.f32 %v3902_v60, %v2319_v9  ;;  %v5929_v2 = vld [vmem:[#allocation20_spill] sm:$0xff]  ;;  %vm2667_vm7 = vmor %vm2665_vm6, %vm2666_vm5  ;;  %v3904_v22 = vpop.eup %3903  ;;  %vm2526_vm9 = vweird.f32 %v3902_v60 }
 0x5ab   : > { %v2662_v34 = vsub.f32 1.0, %v2661_v1  ;;  %v2984_v62 = vmul.f32 %v2851_v59, %v5929_v2  ;;  %v2563_v58 = vmul.f32 %v3904_v22, %v5415_v53  ;;  %v5427_v47 = vpop.eup %3905  ;;  %vm2527_vm11 = vmor %vm2525_vm10, %vm2526_vm9  ;;  %v5933_v59 = vld [vmem:[#allocation28_spill] sm:$0xff]  ;;  %vm2530_vm12 = vcmp.eq.f32.partialorder %v2529_v52, 8.507059e+37  ;;  %v5442_v2 = vld [vmem:[#allocation3 + $0xc8] sm:$0xff] }
 0x5ac   : > { %v2522_v0 = vsub.f32 1.0, %v2521_v17  ;;  %v2605_v27 = vmul.f32 %v5427_v47, %v5420_v50  ;;  %vm2568_vm13 = vweird.f32 %v3904_v22  ;;  %3911 = vrcp.f32 %v5442_v2 }
 0x5ad   : > { %v2663_v44 = vmul.f32 %v3900_v21, %v2662_v34  ;;  %v2564_v56 = vsub.f32 1.0, %v2563_v58  ;;  %v5930_v34 = vld [vmem:[#allocation24_spill] sm:$0xff]  ;;  %vm2569_vm15 = vmor %vm2567_vm14, %vm2568_vm13  ;;  %vm2610_vm2 = vweird.f32 %v5427_v47  ;;  %vm2693_vm13 = vweird.f32 %v5442_v2 }
 0x5ae   : > { %v2523_v20 = vmul.f32 %v3902_v60, %v2522_v0  ;;  %v1924_v30 = vadd.f32 %v5931_v63, %v5930_v34  ;;  %v2606_v17 = vsub.f32 1.0, %v2605_v27  ;;  %v2613_v27 = vand.u32 2147483647, %v5420_v50  ;;  %vm2611_vm4 = vmor %vm2609_vm3, %vm2610_vm2  ;;  %v1483_v34 = vld [vmem:[#allocation3 + $0xf8] sm:$0xff] }
 0x5af   : > { %v2856_v7 = vpop.permute.xlu1 %2855  ;;  %v2664_v28 = vadd.f32 %v3900_v21, %v2663_v44  ;;  %v1926_v44 = vadd.f32 %v5933_v59, %v5932_v23 }
 0x5b0   : > { %v2985_v11 = vmul.f32 %v2856_v7, %v2214_v12  ;;  %v2524_v55 = vadd.f32 %v3902_v60, %v2523_v20  ;;  %v5934_v12 = vld [vmem:[#allocation71_spill] sm:$0xff]  ;;  %v5935_v7 = vld [vmem:[#allocation72_spill] sm:$0xff]  ;;  %v2607_v15 = vmul.f32 %v5427_v47, %v2606_v17  ;;  %vm2614_vm5 = vcmp.eq.f32.partialorder %v2613_v27, 8.507059e+37 }
 0x5b1   : > { %v2668_v6 = vsel %vm2667_vm7, %v3900_v21, %v2664_v28  ;;  %v2565_v21 = vmul.f32 %v3904_v22, %v2564_v56  ;;  %v2184_v28 = vmul.f32 0.0, %v5935_v7  ;;  %v2657_v7 = vand.u32 2147483648, %v5425_v40 }
 0x5b2   : > { %v3516_v3 = vpack.c.bf16 %v2985_v11, %v2984_v62  ;;  %v2673_v38 = vsel %vm2670_vm8, %v2672_v26, %v2668_v6  ;;  %v2528_v14 = vsel %vm2527_vm11, %v3902_v60, %v2524_v55  ;;  %v2183_v60 = vmul.f32 0.0, %v5934_v12  ;;  %v5444_v62 = vpop.eup %3907 }
 0x5b3   : > { %2935 = vperm.xlu0 %3673, %v2673_v38   ;;  %v2533_v24 = vsel %vm2530_vm12, %v2532_v18, %v2528_v14  ;;  %v2566_v9 = vadd.f32 %v3904_v22, %v2565_v21  ;;  %v2573_v11 = vand.u32 2147483648, %v5415_v53  ;;  %v2216_v6 = vadd.f32 %v2184_v28, %v1926_v44  ;;  %v5455_v52 = vpop.eup %3909  ;;  %v5467_v14 = vld [vmem:[#allocation3 + $0x90] sm:$0xff]  ;;  %v5486_v28 = vld [vmem:[#allocation3 + $0xa8] sm:$0xff] }
 0x5b4   : > { %3580 = vst [vmem:[%s5358_s24 + $0x18] sm:$0xff] %v3516_v3   ;;  %v2215_v26 = vadd.f32 %v2183_v60, %v1924_v30  ;;  %v2571_v3 = vand.u32 2147483647, %v5415_v53  ;;  %v2647_v56 = vmul.f32 %v5444_v62, %v5425_v40  ;;  %v5457_v53 = vpop.permute.xlu0 %2875  ;;  %v5464_v21 = vpop.eup %3911  ;;  %v2549_v18 = vmul.f32 %v5455_v52, %v5438_v49 }
 0x5b5   : > { %v2570_v0 = vsel %vm2569_vm15, %v3904_v22, %v2566_v9  ;;  %v2574_v55 = vor.u32 1.1754944e-38, %v2573_v11  ;;  %v2608_v22 = vadd.f32 %v5427_v47, %v2607_v15  ;;  %v2689_v23 = vmul.f32 %v5464_v21, %v5442_v2  ;;  %v1478_v11 = vld [vmem:[#allocation3 + $0xd0] sm:$0xff] }
 0x5b6   : > { %v2986_v58 = vmul.f32 %v5406_v29, %v2215_v26  ;;  %vm2572_vm1 = vcmp.eq.f32.partialorder %v2571_v3, 8.507059e+37  ;;  %v2648_v29 = vsub.f32 1.0, %v2647_v56  ;;  %v2550_v44 = vsub.f32 1.0, %v2549_v18 }
 0x5b7   : > { %v2612_v63 = vsel %vm2611_vm4, %v5427_v47, %v2608_v22  ;;  %vm2652_vm6 = vweird.f32 %v5444_v62  ;;  %v2690_v47 = vsub.f32 1.0, %v2689_v23  ;;  %vm2651_vm7 = vweird.f32 %v5425_v40 }
 0x5b8   : > { %v2649_v30 = vmul.f32 %v5444_v62, %v2648_v29  ;;  %vm2653_vm8 = vmor %vm2651_vm7, %vm2652_vm6  ;;  %v2551_v26 = vmul.f32 %v5455_v52, %v2550_v44  ;;  %vm2554_vm10 = vweird.f32 %v5455_v52  ;;  %vm2694_vm11 = vweird.f32 %v5464_v21 }
 0x5b9   : > { %v2691_v3 = vmul.f32 %v5464_v21, %v2690_v47  ;;  %vm2553_vm12 = vweird.f32 %v5438_v49  ;;  %v2697_v29 = vand.u32 2147483647, %v5442_v2  ;;  %v2559_v27 = vand.u32 2147483648, %v5438_v49  ;;  %vm2695_vm15 = vmor %vm2693_vm13, %vm2694_vm11 }
 0x5ba   : > { %v2650_v9 = vadd.f32 %v5444_v62, %v2649_v30  ;;  %v2552_v56 = vadd.f32 %v5455_v52, %v2551_v26  ;;  %vm5513_vm14 = vmor %vm2553_vm12, %vm2554_vm10  ;;  %vm2595_vm7 = vweird.f32 %v5467_v14 }
 0x5be   : > { %v1590_v41 = vpop.xlane.xlu2 %1589 }
 0x5bf   : > { %v1636_v1 = vadd.f32 %v1590_v41, %v1508_v54  ;;  %v2575_v54 = vsel %vm2572_vm1, %v2574_v55, %v2570_v0  ;;  %v5462_v41 = vld [vmem:[#allocation3 + $0xe0] sm:$0xff]  ;;  %v2658_v0 = vor.u32 1.1754944e-38, %v2657_v7  ;;  %v2692_v55 = vadd.f32 %v5464_v21, %v2691_v3 }
 0x5c0   : > { %3913 = vrcp.f32 %v5462_v41  ;;  %vm2698_vm1 = vcmp.eq.f32.partialorder %v2697_v29, 8.507059e+37  ;;  %v2601_v3 = vand.u32 2147483648, %v5467_v14 }
 0x5c1   : > { %1669 = vst.msk [vmem:[#allocation3 + $0xc0] sm:$0xff] %vm313_vm0, %v1636_v1  ;;  %v2615_v1 = vand.u32 2147483648, %v5420_v50  ;;  %3915 = vrcp.f32 %v5467_v14  ;;  %v1515_v50 = vmul.f32 %v5238_v31, %v1483_v34  ;;  %v2655_v31 = vand.u32 2147483647, %v5425_v40 }
 0x5c2   : > { %3917 = vrcp.f32 %v5486_v28  ;;  %v1510_v40 = vmul.f32 %v5214_v32, %v1478_v11  ;;  %v2696_v30 = vsel %vm2695_vm15, %v5464_v21, %v2692_v55  ;;  %v2602_v29 = vor.u32 1.1754944e-38, %v2601_v3 }
 0x5c3   : > { %2885 = vperm.xlu1 %3674, %v2533_v24   ;;  %vm2656_vm9 = vcmp.eq.f32.partialorder %v2655_v31, 8.507059e+37  ;;  %v2739_v31 = vand.u32 2147483647, %v5462_v41  ;;  %vm2637_vm15 = vweird.f32 %v5486_v28 }
 0x5c6   : > { %v2866_v38 = vpop.permute.xlu2 %2865  ;;  %v5483_v12 = vpop.eup %3913 }
 0x5c7   : > { %v2987_v20 = vmul.f32 %v2866_v38, %v2216_v6  ;;  %v5488_v17 = vpop.eup %3915  ;;  %v2654_v6 = vsel %vm2653_vm8, %v5444_v62, %v2650_v9  ;;  %v2731_v38 = vmul.f32 %v5483_v12, %v5462_v41  ;;  %vm2736_vm3 = vweird.f32 %v5483_v12 }
 0x5c8   : > { %v2659_v15 = vsel %vm2656_vm9, %v2658_v0, %v2654_v6  ;;  %v5508_v32 = vpop.eup %3917  ;;  %v5520_v34 = vld [vmem:[#allocation3 + $0xc0] sm:$0xff]  ;;  %v2741_v9 = vand.u32 2147483648, %v5462_v41  ;;  %vm2596_vm4 = vweird.f32 %v5488_v17  ;;  %v2599_v0 = vand.u32 2147483647, %v5467_v14 }
 0x5c9   : > { %v3521_v10 = vpack.c.bf16 %v2987_v20, %v2986_v58  ;;  %v2591_v58 = vmul.f32 %v5488_v17, %v5467_v14  ;;  %vm5558_vm8 = vmor %vm2595_vm7, %vm2596_vm4  ;;  %vm2740_vm9 = vcmp.eq.f32.partialorder %v2739_v31, 8.507059e+37  ;;  %vm2638_vm12 = vweird.f32 %v5508_v32 }
 0x5ca   : > { %vm2600_vm10 = vcmp.eq.f32.partialorder %v2599_v0, 8.507059e+37 }
 0x5cb   : > { %3581 = vst [vmem:[%s5358_s24 + $0x20] sm:$0xff] %v3521_v10   ;;  %2900 = vperm.xlu1 %3674, %v2575_v54   ;;  %v2732_v10 = vsub.f32 1.0, %v2731_v38  ;;  %v2699_v54 = vand.u32 2147483648, %v5442_v2  ;;  %v2592_v22 = vsub.f32 1.0, %v2591_v58  ;;  %v2556_v2 = vsel %vm5513_vm14, %v5455_v52, %v2552_v56 }
 0x5cd   : > { %1607 = vadd.xlane.f32.xlu2 %v5323_v25  ;;  %v2616_v25 = vor.u32 1.1754944e-38, %v2615_v1  ;;  %v2733_v23 = vmul.f32 %v5483_v12, %v2732_v10  ;;  %v5943_v10 = vld [vmem:[#allocation35_spill] sm:$0xff] }
 0x5cf   : > { %v2617_v59 = vsel %vm2614_vm5, %v2616_v25, %v2612_v63  ;;  %v2557_v63 = vand.u32 2147483647, %v5438_v49  ;;  %v2700_v25 = vor.u32 1.1754944e-38, %v2699_v54  ;;  %v2560_v49 = vor.u32 1.1754944e-38, %v2559_v27  ;;  %v5944_v54 = vld [vmem:[#allocation80_spill] sm:$0xff] }
 0x5d0   : > { %vm2735_vm5 = vweird.f32 %v5462_v41  ;;  %v5945_v27 = vld [vmem:[#allocation32_spill] sm:$0xff] }
 0x5d1   : > { %v2701_v44 = vsel %vm2698_vm1, %v2700_v25, %v2696_v30  ;;  %vm2558_vm2 = vcmp.eq.f32.partialorder %v2557_v63, 8.507059e+37  ;;  %vm5549_vm6 = vmor %vm2735_vm5, %vm2736_vm3  ;;  %v1931_v63 = vadd.f32 %v5945_v27, %v5123_v19  ;;  %v5618_v27 = vpop.f32.mrf.mxu3 }
 0x5d2   : > { %v1611_v24 = vpop.xlane.xlu0 %1610  ;;  %v2561_v21 = vsel %vm2558_vm2, %v2560_v49, %v2556_v2  ;;  %vm5597_vm1 = vmor %vm2637_vm15, %vm2638_vm12 }
 0x5d3   : > { %2915 = vperm.xlu1 %3674, %v2617_v59   ;;  %v1643_v60 = vadd.f32 %v1611_v24, %v1515_v50  ;;  %v2593_v50 = vmul.f32 %v5488_v17, %v2592_v22  ;;  %v2633_v59 = vmul.f32 %v5508_v32, %v5486_v28  ;;  %v2734_v24 = vadd.f32 %v5483_v12, %v2733_v23 }
 0x5d4   : > { %v1929_v22 = vadd.f32 %v5944_v54, %v5943_v10 }
 0x5d5   : > { %1676 = vst.msk [vmem:[#allocation3 + $0xf8] sm:$0xff] %vm313_vm0, %v1643_v60  ;;  %v2594_v47 = vadd.f32 %v5488_v17, %v2593_v50  ;;  %v2634_v60 = vsub.f32 1.0, %v2633_v59  ;;  %v2738_v38 = vsel %vm5549_vm6, %v5483_v12, %v2734_v24  ;;  %v5946_v59 = vld [vmem:[#allocation46_spill] sm:$0xff]  ;;  %v2643_v24 = vand.u32 2147483648, %v5486_v28 }
 0x5d6   : > { %v2186_v49 = vmul.f32 0.0, %v5946_v59 }
 0x5d7   : > { %v2635_v56 = vmul.f32 %v5508_v32, %v2634_v60 }
 0x5d9   : > { %v2636_v19 = vadd.f32 %v5508_v32, %v2635_v56 }
 0x5da   : > { %v1596_v20 = vpop.xlane.xlu1 %1595 }
 0x5db   : > { %v1638_v62 = vadd.f32 %v1596_v20, %v1510_v40  ;;  %2930 = vperm.xlu1 %3674, %v2659_v15   ;;  %v2742_v40 = vor.u32 1.1754944e-38, %v2741_v9  ;;  %v2598_v20 = vsel %vm5558_vm8, %v5488_v17, %v2594_v47 }
 0x5dc   : > { %v5518_v18 = vld [vmem:[#allocation3 + $0xf8] sm:$0xff]  ;;  %v2603_v30 = vsel %vm2600_vm10, %v2602_v29, %v2598_v20  ;;  %v5616_v29 = vpop.f32.mrf.mxu2 }
 0x5dd   : > { %1671 = vst.msk [vmem:[#allocation3 + $0xd0] sm:$0xff] %vm313_vm0, %v1638_v62  ;;  %3919 = vrcp.f32 %v5518_v18  ;;  %v5942_v62 = vld [vmem:[#allocation70_spill] sm:$0xff]  ;;  %v2743_v14 = vsel %vm2740_vm9, %v2742_v40, %v2738_v38  ;;  %v2783_v2 = vand.u32 2147483648, %v5518_v18  ;;  %vm2777_vm13 = vweird.f32 %v5518_v18 }
 0x5de   : > { %3921 = vrcp.f32 %v5520_v34  ;;  %v2185_v55 = vmul.f32 0.0, %v5942_v62  ;;  %v2781_v25 = vand.u32 2147483647, %v5518_v18  ;;  %v2218_v38 = vadd.f32 %v2186_v49, %v1931_v63 }
 0x5df   : > { %v2784_v31 = vor.u32 1.1754944e-38, %v2783_v2  ;;  %vm2679_vm9 = vweird.f32 %v5520_v34 }
 0x5e0   : > { %vm2782_vm3 = vcmp.eq.f32.partialorder %v2781_v25, 8.507059e+37  ;;  %v2989_v20 = vmul.f32 %v5457_v53, %v2218_v38  ;;  %v2685_v53 = vand.u32 2147483648, %v5520_v34 }
 0x5e3   : > { %2945 = vperm.xlu1 %3674, %v2701_v44   ;;  %v5535_v52 = vpop.eup %3919  ;;  %v2217_v44 = vadd.f32 %v2185_v55, %v1929_v22  ;;  %v2686_v22 = vor.u32 1.1754944e-38, %v2685_v53 }
 0x5e4   : > { %v5540_v7 = vld [vmem:[#allocation3 + $0xd0] sm:$0xff]  ;;  %v2773_v11 = vmul.f32 %v5535_v52, %v5518_v18  ;;  %v5547_v26 = vpop.eup %3921  ;;  %vm2778_vm11 = vweird.f32 %v5535_v52  ;;  %v2641_v18 = vand.u32 2147483647, %v5486_v28  ;;  %v1854_v2 = vpop.f32.mrf.mxu2 }
 0x5e5   : > { %2895 = vperm.xlu2 %3672, %v2561_v21   ;;  %3923 = vrcp.f32 %v5540_v7  ;;  %v2675_v12 = vmul.f32 %v5547_v26, %v5520_v34  ;;  %vm5584_vm14 = vmor %vm2777_vm13, %vm2778_vm11  ;;  %v2713_v60 = vand.u32 2147483648, %v5540_v7  ;;  %v2711_v3 = vand.u32 2147483647, %v5540_v7 }
 0x5e6   : > { %v2774_v58 = vsub.f32 1.0, %v2773_v11  ;;  %vm2707_vm4 = vweird.f32 %v5540_v7  ;;  %vm2642_vm5 = vcmp.eq.f32.partialorder %v2641_v18, 8.507059e+37  ;;  %vm2680_vm8 = vweird.f32 %v5547_v26 }
 0x5e7   : > { %v2676_v50 = vsub.f32 1.0, %v2675_v12  ;;  %v2714_v56 = vor.u32 1.1754944e-38, %v2713_v60  ;;  %vm2712_vm7 = vcmp.eq.f32.partialorder %v2711_v3, 8.507059e+37  ;;  %vm2681_vm10 = vmor %vm2679_vm9, %vm2680_vm8  ;;  %v1481_v60 = vld [vmem:[#allocation3 + $0xe8] sm:$0xff] }
 0x5e8   : > { %v2775_v15 = vmul.f32 %v5535_v52, %v2774_v58  ;;  %v2644_v58 = vor.u32 1.1754944e-38, %v2643_v24  ;;  %v1513_v11 = vmul.f32 %v5255_v37, %v1481_v60  ;;  %v1936_v37 = vadd.f32 %v5163_v33, %v5161_v42  ;;  %v1482_v60 = vld [vmem:[#allocation3 + $0xf0] sm:$0xff] }
 0x5e9   : > { %v2677_v28 = vmul.f32 %v5547_v26, %v2676_v50 }
 0x5ea   : > { %v2776_v17 = vadd.f32 %v5535_v52, %v2775_v15 }
 0x5eb   : > { %v3924_v1 = vpop.eup %3923  ;;  %2960 = vperm.xlu1 %3674, %v2743_v14   ;;  %v2678_v10 = vadd.f32 %v5547_v26, %v2677_v28  ;;  %v1479_v14 = vld [vmem:[#allocation3 + $0xd8] sm:$0xff] }
 0x5ec   : > { %v2703_v23 = vmul.f32 %v3924_v1, %v5540_v7  ;;  %v2780_v47 = vsel %vm5584_vm14, %v5535_v52, %v2776_v17  ;;  %vm2708_vm2 = vweird.f32 %v3924_v1  ;;  %v2640_v52 = vsel %vm5597_vm1, %v5508_v32, %v2636_v19 }
 0x5ed   : > { %2910 = vperm.xlu2 %3672, %v2603_v30   ;;  %v2785_v0 = vsel %vm2782_vm3, %v2784_v31, %v2780_v47  ;;  %vm2709_vm6 = vmor %vm2707_vm4, %vm2708_vm2  ;;  %v2645_v12 = vsel %vm2642_vm5, %v2644_v58, %v2640_v52  ;;  %v2683_v7 = vand.u32 2147483647, %v5520_v34  ;;  %v2682_v54 = vsel %vm2681_vm10, %v5547_v26, %v2678_v10  ;;  %v1943_v34 = vpop.f32.mrf.mxu3  ;;  %v1856_v26 = vpop.f32.mrf.mxu2 }
 0x5ee   : > { %v2704_v9 = vsub.f32 1.0, %v2703_v23  ;;  %v1511_v63 = vmul.f32 %v5224_v46, %v1479_v14 }
 0x5ef   : > { %vm2684_vm11 = vcmp.eq.f32.partialorder %v2683_v7, 8.507059e+37 }
 0x5f0   : > { %v2705_v6 = vmul.f32 %v3924_v1, %v2704_v9 }
 0x5f2   : > { %v2871_v41 = vpop.permute.xlu1 %2870  ;;  %v2706_v40 = vadd.f32 %v3924_v1, %v2705_v6 }
 0x5f3   : > { %v2988_v15 = vmul.f32 %v2871_v41, %v2217_v44  ;;  %2975 = vperm.xlu1 %3674, %v2785_v0  }
 0x5f4   : > { %v2710_v62 = vsel %vm2709_vm6, %v3924_v1, %v2706_v40  ;;  %v2687_v1 = vsel %vm2684_vm11, %v2686_v22, %v2682_v54  ;;  %v2891_v40 = vpop.permute.xlu0 %2890 }
 0x5f5   : > { %v3526_v32 = vpack.c.bf16 %v2989_v20, %v2988_v15  ;;  %2925 = vperm.xlu2 %3672, %v2645_v12   ;;  %v2715_v55 = vsel %vm2712_vm7, %v2714_v56, %v2710_v62  ;;  %v1945_v25 = vpop.f32.mrf.mxu3  ;;  %v5622_v24 = vpop.f32.mrf.mxu2  ;;  %v5951_v56 = vld [vmem:[#allocation78_spill] sm:$0xff] }
 0x5f6   : > { %2950 = vperm.xlu0 %3673, %v2715_v55   ;;  %v2188_v12 = vmul.f32 0.0, %v5951_v56 }
 0x5f7   : > { %3582 = vst [vmem:[%s5358_s24 + $0x28] sm:$0xff] %v3526_v32  }
 0x5f8   : > { %v2220_v54 = vadd.f32 %v2188_v12, %v1936_v37 }
 0x5fd   : > { %2940 = vperm.xlu2 %3672, %v2687_v1   ;;  %v5624_v46 = vpop.f32.mrf.mxu3  ;;  %v5627_v38 = vpop.f32.mrf.mxu2 }
 0x5ff   : > { %v1599_v17 = vpop.xlane.xlu2 %1598 }
 0x600   : > { %v1639_v30 = vadd.f32 %v1599_v17, %v1511_v63  ;;  %v1944_v17 = vadd.f32 %v1943_v34, %v1854_v2  ;;  %v1514_v2 = vmul.f32 %v5270_v45, %v1482_v60  ;;  %v2992_v45 = vmul.f32 %v2891_v40, %v5180_v5  ;;  %v5956_v40 = vld [vmem:[#allocation36_spill] sm:$0xff] }
 0x601   : > { %v2195_v60 = vmul.f32 0.0, %v5217_v16 }
 0x602   : > { %1672 = vst.msk [vmem:[#allocation3 + $0xd8] sm:$0xff] %vm313_vm0, %v1639_v30  ;;  %v1946_v30 = vadd.f32 %v1945_v25, %v1856_v26 }
 0x605   : > { %v5630_v52 = vpop.f32.mrf.mxu3  ;;  %v5632_v41 = vpop.f32.mrf.mxu2 }
 0x607   : > { %v2881_v10 = vpop.permute.xlu2 %2880 }
 0x608   : > { %v2990_v1 = vmul.f32 %v2881_v10, %v5132_v48 }
 0x609   : > { %v2333_v23 = vld [vmem:[#allocation3 + $0xd8] sm:$0xff] }
 0x60a   : > { %3925 = vrcp.f32 %v2333_v23  ;;  %v2727_v49 = vand.u32 2147483648, %v2333_v23  ;;  %v2725_v21 = vand.u32 2147483647, %v2333_v23  ;;  %vm2721_vm13 = vweird.f32 %v2333_v23 }
 0x60c   : > { %v2728_v47 = vor.u32 1.1754944e-38, %v2727_v49  ;;  %vm2726_vm15 = vcmp.eq.f32.partialorder %v2725_v21, 8.507059e+37 }
 0x60d   : > { %v5634_v0 = vpop.f32.mrf.mxu3  ;;  %v5639_v62 = vpop.f32.mrf.mxu2 }
 0x610   : > { %v3926_v19 = vpop.eup %3925 }
 0x611   : > { %v2717_v50 = vmul.f32 %v3926_v19, %v2333_v23  ;;  %vm2722_vm12 = vweird.f32 %v3926_v19 }
 0x612   : > { %vm2723_vm14 = vmor %vm2721_vm13, %vm2722_vm12 }
 0x613   : > { %v2718_v59 = vsub.f32 1.0, %v2717_v50  ;;  %v2906_v50 = vpop.permute.xlu0 %2905 }
 0x615   : > { %v2719_v44 = vmul.f32 %v3926_v19, %v2718_v59  ;;  %v5641_v55 = vpop.f32.mrf.mxu3  ;;  %v5952_v59 = vld [vmem:[#allocation23_spill] sm:$0xff] }
 0x616   : > { %v2191_v49 = vmul.f32 0.0, %v5952_v59 }
 0x617   : > { %v2720_v9 = vadd.f32 %v3926_v19, %v2719_v44  ;;  %v5953_v44 = vld [vmem:[#allocation27_spill] sm:$0xff] }
 0x618   : > { %v2192_v21 = vmul.f32 0.0, %v5953_v44 }
 0x619   : > { %v2724_v18 = vsel %vm2723_vm14, %v3926_v19, %v2720_v9  ;;  %v1869_v9 = vpop.f32.mrf.mxu2 }
 0x61a   : > { %v2729_v31 = vsel %vm2726_vm15, %v2728_v47, %v2724_v18  ;;  %v2224_v48 = vadd.f32 %v2192_v21, %v1946_v30  ;;  %v2223_v18 = vadd.f32 %v2191_v49, %v1944_v17  ;;  %v5955_v17 = vld [vmem:[#allocation33_spill] sm:$0xff]  ;;  %v2193_v30 = vmul.f32 0.0, %v5956_v40 }
 0x61b   : > { %2955 = vperm.xlu2 %3672, %v2729_v31   ;;  %v2194_v5 = vmul.f32 0.0, %v5955_v17 }
 0x61d   : > { %v1605_v6 = vpop.xlane.xlu1 %1604  ;;  %v1958_v47 = vpop.f32.mrf.mxu3 }
 0x61e   : > { %v1641_v3 = vadd.f32 %v1605_v6, %v1513_v11  ;;  %v2995_v11 = vmul.f32 %v2906_v50, %v2224_v48 }
 0x620   : > { %1674 = vst.msk [vmem:[#allocation3 + $0xe8] sm:$0xff] %vm313_vm0, %v1641_v3  ;;  %v1941_v3 = vadd.f32 %v5618_v27, %v5616_v29  ;;  %v2198_v29 = vmul.f32 0.0, %v5258_v36 }
 0x627   : > { %v2335_v28 = vld [vmem:[#allocation3 + $0xe8] sm:$0xff] }
 0x628   : > { %3927 = vrcp.f32 %v2335_v28  ;;  %v2755_v32 = vand.u32 2147483648, %v2335_v28  ;;  %v2753_v7 = vand.u32 2147483647, %v2335_v28  ;;  %vm2749_vm2 = vweird.f32 %v2335_v28 }
 0x62a   : > { %v2756_v33 = vor.u32 1.1754944e-38, %v2755_v32  ;;  %vm2754_vm4 = vcmp.eq.f32.partialorder %v2753_v7, 8.507059e+37  ;;  %v1959_v32 = vadd.f32 %v1958_v47, %v1869_v9  ;;  %v1954_v9 = vadd.f32 %v5634_v0, %v5632_v41 }
 0x62b   : > { %v1956_v47 = vadd.f32 %v5641_v55, %v5639_v62 }
 0x62e   : > { %v3928_v58 = vpop.eup %3927 }
 0x62f   : > { %v2745_v20 = vmul.f32 %v3928_v58, %v2335_v28  ;;  %vm2750_vm1 = vweird.f32 %v3928_v58  ;;  %v2921_v28 = vpop.permute.xlu0 %2920 }
 0x630   : > { %vm2751_vm3 = vmor %vm2749_vm2, %vm2750_vm1 }
 0x631   : > { %v2746_v15 = vsub.f32 1.0, %v2745_v20  ;;  %v5954_v20 = vld [vmem:[#allocation29_spill] sm:$0xff] }
 0x632   : > { %v2190_v37 = vmul.f32 0.0, %v5954_v20 }
 0x633   : > { %v2747_v53 = vmul.f32 %v3928_v58, %v2746_v15  ;;  %v1960_v15 = vpop.f32.mrf.mxu3 }
 0x634   : > { %v2222_v12 = vadd.f32 %v2190_v37, %v1941_v3 }
 0x635   : > { %v2886_v22 = vpop.permute.xlu1 %2885  ;;  %v2748_v14 = vadd.f32 %v3928_v58, %v2747_v53 }
 0x636   : > { %v2991_v42 = vmul.f32 %v2886_v22, %v2220_v54  ;;  %v2197_v54 = vmul.f32 0.0, %v5207_v39  ;;  %v1949_v22 = vadd.f32 %v5624_v46, %v5622_v24 }
 0x637   : > { %v2752_v63 = vsel %vm2751_vm3, %v3928_v58, %v2748_v14  ;;  %v1871_v58 = vpop.f32.mrf.mxu2  ;;  %v1951_v14 = vadd.f32 %v5630_v52, %v5627_v38 }
 0x638   : > { %v3531_v23 = vpack.c.bf16 %v2991_v42, %v2990_v1  ;;  %v2757_v19 = vsel %vm2754_vm4, %v2756_v33, %v2752_v63  ;;  %v1961_v10 = vadd.f32 %v1960_v15, %v1871_v58  ;;  %v2936_v1 = vpop.permute.xlu0 %2935  ;;  %v2229_v63 = vadd.f32 %v2197_v54, %v1959_v32 }
 0x639   : > { %2965 = vperm.xlu0 %3673, %v2757_v19   ;;  %v2226_v24 = vadd.f32 %v2194_v5, %v1951_v14  ;;  %v2225_v46 = vadd.f32 %v2193_v30, %v1949_v22 }
 0x63a   : > { %3583 = vst [vmem:[%s5358_s24 + $0x30] sm:$0xff] %v3531_v23   ;;  %v2230_v33 = vadd.f32 %v2198_v29, %v1961_v10 }
 0x63b   : > { %v1963_v23 = vpop.f32.mrf.mxu3 }
 0x63c   : > { %v3001_v19 = vmul.f32 %v2936_v1, %v2230_v33 }
 0x63d   : > { %v2901_v31 = vpop.permute.xlu1 %2900 }
 0x63e   : > { %v2994_v6 = vmul.f32 %v2901_v31, %v2223_v18  ;;  %v2196_v31 = vmul.f32 0.0, %v5226_v13 }
 0x63f   : > { %v1874_v39 = vpop.f32.mrf.mxu2 }
 0x640   : > { %v3541_v34 = vpack.c.bf16 %v2995_v11, %v2994_v6  ;;  %v1608_v26 = vpop.xlane.xlu2 %1607  ;;  %v1964_v13 = vadd.f32 %v1963_v23, %v1874_v39 }
 0x641   : > { %v1642_v25 = vadd.f32 %v1608_v26, %v1514_v2  ;;  %v2227_v26 = vadd.f32 %v2195_v60, %v1954_v9 }
 0x642   : > { %3585 = vst [vmem:[%s5358_s24 + $0x40] sm:$0xff] %v3541_v34  }
 0x643   : > { %1675 = vst.msk [vmem:[#allocation3 + $0xf0] sm:$0xff] %vm313_vm0, %v1642_v25  ;;  %v2228_v25 = vadd.f32 %v2196_v31, %v1956_v47  ;;  %v1965_v3 = vpop.f32.mrf.mxu3  ;;  %v2998_v0 = vmul.f32 %v2921_v28, %v2227_v26 }
 0x645   : > { %v2916_v56 = vpop.permute.xlu1 %2915 }
 0x646   : > { %v2997_v49 = vmul.f32 %v2916_v56, %v2226_v24  ;;  %v2200_v56 = vmul.f32 0.0, %v5244_v8  ;;  %v2201_v8 = vmul.f32 0.0, %v5314_v35 }
 0x647   : > { %v1876_v34 = vpop.f32.mrf.mxu2 }
 0x648   : > { %v2896_v53 = vpop.permute.xlu2 %2895  ;;  %v1966_v20 = vadd.f32 %v1965_v3, %v1876_v34 }
 0x649   : > { %v2993_v7 = vmul.f32 %v2896_v53, %v2222_v12  ;;  %v2199_v12 = vmul.f32 0.0, %v5276_v43  ;;  %v2202_v43 = vmul.f32 0.0, %v5320_v4 }
 0x64a   : > { %v2336_v27 = vld [vmem:[#allocation3 + $0xf0] sm:$0xff]  ;;  %v2232_v10 = vadd.f32 %v2200_v56, %v1966_v20 }
 0x64b   : > { %v3536_v42 = vpack.c.bf16 %v2993_v7, %v2992_v45  ;;  %3929 = vrcp.f32 %v2336_v27  ;;  %v2769_v11 = vand.u32 2147483648, %v2336_v27  ;;  %v2767_v2 = vand.u32 2147483647, %v2336_v27  ;;  %v1968_v29 = vpop.f32.mrf.mxu3 }
 0x64c   : > { %vm2763_vm5 = vweird.f32 %v2336_v27  ;;  %v2231_v53 = vadd.f32 %v2199_v12, %v1964_v13 }
 0x64d   : > { %3584 = vst [vmem:[%s5358_s24 + $0x38] sm:$0xff] %v3536_v42   ;;  %v2931_v36 = vpop.permute.xlu1 %2930  ;;  %v2770_v55 = vor.u32 1.1754944e-38, %v2769_v11  ;;  %vm2768_vm7 = vcmp.eq.f32.partialorder %v2767_v2, 8.507059e+37  ;;  %v2205_v2 = vmul.f32 0.0, %v5342_v57 }
 0x64e   : > { %v3000_v50 = vmul.f32 %v2931_v36, %v2229_v63 }
 0x64f   : > { %v1879_v54 = vpop.f32.mrf.mxu2 }
 0x650   : > { %v3556_v38 = vpack.c.bf16 %v3001_v19, %v3000_v50  ;;  %v2911_v52 = vpop.permute.xlu2 %2910  ;;  %v1969_v1 = vadd.f32 %v1968_v29, %v1879_v54 }
 0x651   : > { %v3930_v59 = vpop.eup %3929  ;;  %v2996_v44 = vmul.f32 %v2911_v52, %v2225_v46  ;;  %v5957_v52 = vld [vmem:[#allocation37_spill] sm:$0xff] }
 0x652   : > { %3588 = vst [vmem:[%s5358_s24 + $0x58] sm:$0xff] %v3556_v38   ;;  %v2759_v21 = vmul.f32 %v3930_v59, %v2336_v27  ;;  %vm2764_vm0 = vweird.f32 %v3930_v59  ;;  %v2233_v63 = vadd.f32 %v2201_v8, %v1969_v1  ;;  %v2203_v4 = vmul.f32 0.0, %v5957_v52 }
 0x653   : > { %v3546_v48 = vpack.c.bf16 %v2997_v49, %v2996_v44  ;;  %vm2765_vm6 = vmor %vm2763_vm5, %vm2764_vm0  ;;  %v1970_v14 = vpop.f32.mrf.mxu3 }
 0x654   : > { %v2760_v18 = vsub.f32 1.0, %v2759_v21 }
 0x655   : > { %3586 = vst [vmem:[%s5358_s24 + $0x48] sm:$0xff] %v3546_v48   ;;  %v2946_v32 = vpop.permute.xlu1 %2945 }
 0x656   : > { %v2761_v6 = vmul.f32 %v3930_v59, %v2760_v18  ;;  %v3003_v45 = vmul.f32 %v2946_v32, %v2232_v10 }
 0x657   : > { %v1881_v22 = vpop.f32.mrf.mxu2 }
 0x658   : > { %v2926_v58 = vpop.permute.xlu2 %2925  ;;  %v2762_v41 = vadd.f32 %v3930_v59, %v2761_v6  ;;  %v1971_v42 = vadd.f32 %v1970_v14, %v1881_v22 }
 0x659   : > { %v2999_v62 = vmul.f32 %v2926_v58, %v2228_v25 }
 0x65a   : > { %v2766_v16 = vsel %vm2765_vm6, %v3930_v59, %v2762_v41  ;;  %v2234_v17 = vadd.f32 %v2202_v43, %v1971_v42  ;;  %v2204_v59 = vmul.f32 0.0, %v5338_v51  ;;  %v2206_v51 = vmul.f32 0.0, %v5327_v61 }
 0x65b   : > { %v3551_v37 = vpack.c.bf16 %v2999_v62, %v2998_v0  ;;  %v2771_v15 = vsel %vm2768_vm7, %v2770_v55, %v2766_v16  ;;  %v1973_v23 = vpop.f32.mrf.mxu3 }
 0x65c   : > { %2970 = vperm.xlu2 %3672, %v2771_v15  }
 0x65d   : > { %3587 = vst [vmem:[%s5358_s24 + $0x50] sm:$0xff] %v3551_v37   ;;  %v2961_v49 = vpop.permute.xlu1 %2960 }
 0x65f   : > { %v1884_v36 = vpop.f32.mrf.mxu2 }
 0x660   : > { %v2941_v28 = vpop.permute.xlu2 %2940  ;;  %v1974_v38 = vadd.f32 %v1973_v23, %v1884_v36 }
 0x661   : > { %v3002_v7 = vmul.f32 %v2941_v28, %v2231_v53 }
 0x662   : > { %v2235_v44 = vadd.f32 %v2203_v4, %v1974_v38 }
 0x663   : > { %v3561_v27 = vpack.c.bf16 %v3003_v45, %v3002_v7  ;;  %v1975_v50 = vpop.f32.mrf.mxu3 }
 0x664   : > { %v3006_v47 = vmul.f32 %v2961_v49, %v2235_v44 }
 0x665   : > { %3589 = vst [vmem:[%s5358_s24 + $0x60] sm:$0xff] %v3561_v27   ;;  %v2976_v34 = vpop.permute.xlu1 %2975 }
 0x667   : > { %v1886_v19 = vpop.f32.mrf.mxu2 }
 0x668   : > { %v2951_v33 = vpop.permute.xlu0 %2950  ;;  %v1976_v35 = vadd.f32 %v1975_v50, %v1886_v19 }
 0x669   : > { %v3004_v40 = vmul.f32 %v2951_v33, %v2233_v63 }
 0x66a   : > { %v2236_v21 = vadd.f32 %v2204_v59, %v1976_v35 }
 0x66b   : > { %v1978_v46 = vpop.f32.mrf.mxu3 }
 0x66f   : > { %v1889_v24 = vpop.f32.mrf.mxu2 }
 0x670   : > { %v1979_v11 = vadd.f32 %v1978_v46, %v1889_v24 }
 0x672   : > { %v2237_v25 = vadd.f32 %v2205_v2, %v1979_v11 }
 0x673   : > { %v1980_v60 = vpop.f32.mrf.mxu3 }
 0x675   : > { %v2956_v5 = vpop.permute.xlu2 %2955 }
 0x676   : > { %v3005_v30 = vmul.f32 %v2956_v5, %v2234_v17 }
 0x677   : > { %v1891_v18 = vpop.f32.mrf.mxu2 }
 0x678   : > { %v3566_v39 = vpack.c.bf16 %v3005_v30, %v3004_v40  ;;  %v1981_v6 = vadd.f32 %v1980_v60, %v1891_v18 }
 0x67a   : > { %3590 = vst [vmem:[%s5358_s24 + $0x68] sm:$0xff] %v3566_v39   ;;  %v2238_v26 = vadd.f32 %v2206_v51, %v1981_v6 }
 0x67c   : > { %v3009_v58 = vmul.f32 %v2976_v34, %v2238_v26 }
 0x6ab   : > { %v2966_v9 = vpop.permute.xlu0 %2965 }
 0x6ac   : > { %v3007_v48 = vmul.f32 %v2966_v9, %v2236_v21 }
 0x6ae   : > { %v3571_v31 = vpack.c.bf16 %v3007_v48, %v3006_v47 }
 0x6b0   : > { %3591 = vst [vmem:[%s5358_s24 + $0x70] sm:$0xff] %v3571_v31  }
 0x6b6   : > { %v2971_v3 = vpop.permute.xlu2 %2970 }
 0x6b7   : > { %v3008_v41 = vmul.f32 %v2971_v3, %v2237_v25 }
 0x6b9   : > { %v3576_v0 = vpack.c.bf16 %v3009_v58, %v3008_v41 }
 0x6bb   : > { %3592 = vst [vmem:[%s5358_s24 + $0x78] sm:$0xff] %v3576_v0  }
 0x6bc   : > { %4048 = shalt.err (!%p4045_p10)
}
 0x6bd   : > { %s4114_s11 = smov 64   ;;  %s4115_s1 = smov 4  }
 0x6be   : > { %3599 = dma.vmem_to_hbm [thread:$0]  (%p4191_p9), %s3090_s21, 2048, %s3092_s22, %s3075_s15, %s4114_s11, %s4114_s11, %s4115_s1  }
 0x6bf PF: > { %p3616_p12 = scmp.ge.s32.totalorder %s4107_s17, 2  ;;  %s3106_s28 = sand.u32 1, %s4087_s12  }
 0x6c0   : > { %s3107_s16 = scalar_lea.sflag [#allocation7], %s3106_s28 }
 0x6c1   : > { %p3612_p13 = pnand %p3616_p12, %p4198_p11 }
 0x6c3   : > { %p3613_p0 = pneg %p3612_p13 }
 0x6c5   : > { %4082 = dma.done.wait (%p3613_p0), %s3107_s16, 2048  }
 0x6c6   : > { %4084 = vsyncadd (%p3613_p0), %s3107_s16, 4294965248  ;;  %s22_s17 = sadd.s32 1, %s4107_s17   ;;  %s5959_s14 = sld [smem:[#allocation15_spill]] }
 0x6c7   : > { %p19_p1 = scmp.ge.s32.totalorder %s22_s17, 10   ;;  %s5960_s26 = sld [smem:[#allocation18_spill]] }
 0x6c8   : > { %s5961_s15 = sld [smem:[#allocation16_spill]]  ;;  %s5963_s12 = smov %s4091_s13 }
 0x6c9   : > { %s5962_s16 = sld [smem:[#allocation17_spill]]  ;;  %21 = sbr.rel (!%p19_p1) target bundleno = 10 (0xa), region = 109 }
 0x6cc   : > { %s5964_s13 = smov %s5959_s14 }
 0x6cd   : > { %s5965_s14 = smov %s5960_s26 }
 0x6ce   :  { %3113 = vsyncpa [#allocation6], 1 }
 0x6cf   :  { %3115 = vsyncpa [#allocation6 + $0x1], 1 }
 0x6d0   :  { %3116 = vsyncpa [#allocation9], 1 }
 0x6d1   :  { %3118 = vsyncpa [#allocation9 + $0x1], 1 }
 0x6d2   :  { %3119 = vsyncpa [#allocation7], 1 }
 0x6d3   :  { %3121 = vsyncpa [#allocation7 + $0x1], 1 }

</bundles_post_ra>
